<compile_context>
chip_gen: v5e
topology: v5e:2x2
jax: 0.10.0
libtpu: 0.0.40
codegen_flags: <defaults>
</compile_context>

<pallas_src>
import functools
import math

import jax
import jax.numpy as jnp
from jax.experimental import pallas as pl
from jax.experimental.pallas import tpu as pltpu


# ----------------------------- BlockSpec helpers -----------------------------

def _invariant_spec(shape):
    """Whole array, same block every grid step (stays resident in VMEM)."""
    zeros = (0,) * len(shape)
    return pl.BlockSpec(tuple(shape), lambda l, _z=zeros: _z)


def _per_layer_spec(shape):
    """Leading dim = layer axis; block = one layer's weights, selected by grid index."""
    blk = (1,) + tuple(shape[1:])
    zeros = (0,) * (len(shape) - 1)
    return pl.BlockSpec(blk, lambda l, _z=zeros: (l,) + _z)


# ----------------------------- in-kernel building blocks -----------------------------

def _ln(x, g, b, eps):
    mu = jnp.mean(x, axis=-1, keepdims=True)
    var = jnp.mean((x - mu) ** 2, axis=-1, keepdims=True)
    return (x - mu) * jax.lax.rsqrt(var + eps) * g + b


def _mha(q_in, k_in, v_in, w, bias_vec, key_bias, extra_bias, attn_buf,
         B, Lq, Lk, H, dh, scale):
    """Multi-head attention with head-fused (full C-wide) projections.

    q_in: (B*Lq, C); k_in/v_in: (B*Lk, C).
    w: (4, C, C) = [Wq, Wk, Wv, Wo]; bias_vec: (4, C).
    key_bias: (B, Lk) additive key-padding bias or None.
    extra_bias: (Lq, Lq) additive (DN attn-mask) bias or None.
    attn_buf: VMEM scratch ref of shape (B*Lq, C) collecting per-head outputs so the
    out-projection is one full-width matmul (no per-head (Lq,dh)@(dh,C) accumulation).
    """
    q = jnp.dot(q_in, w[0], preferred_element_type=jnp.float32) + bias_vec[0:1, :]
    k = jnp.dot(k_in, w[1], preferred_element_type=jnp.float32) + bias_vec[1:2, :]
    v = jnp.dot(v_in, w[2], preferred_element_type=jnp.float32) + bias_vec[2:3, :]
    for b in range(B):
        q0, k0 = b * Lq, b * Lk
        for h in range(H):
            c0 = h * dh
            s = jax.lax.dot_general(
                q[q0:q0 + Lq, c0:c0 + dh], k[k0:k0 + Lk, c0:c0 + dh],
                (((1,), (1,)), ((), ())),
                preferred_element_type=jnp.float32) * scale
            if key_bias is not None:
                s = s + key_bias[b:b + 1, :]
            if extra_bias is not None:
                s = s + extra_bias
            s = s - jnp.max(s, axis=-1, keepdims=True)
            p = jnp.exp(s)
            p = p * pl.reciprocal(jnp.sum(p, axis=-1, keepdims=True), approx=True)
            attn_buf[q0:q0 + Lq, c0:c0 + dh] = jnp.dot(
                p, v[k0:k0 + Lk, c0:c0 + dh], preferred_element_type=jnp.float32)
    return (jnp.dot(attn_buf[...], w[3], preferred_element_type=jnp.float32)
            + bias_vec[3:4, :])


# ----------------------------- fused stack kernels -----------------------------

def _encoder_stack_kernel(x_ref, pos_ref, kbias_ref,
                          wattn_ref, battn_ref, lng_ref, lnb_ref,
                          w1_ref, b1_ref, w2_ref, b2_ref,
                          mem_ref, state_ref, attn_buf,
                          *, B, L, H, dh, scale, eps):
    layer = pl.program_id(0)

    @pl.when(layer == 0)
    def _init():
        state_ref[...] = x_ref[...].astype(jnp.float32)

    x = state_ref[...]                       # (B*L, C), running encoder state
    pos = pos_ref[...].astype(jnp.float32)
    kbias = kbias_ref[...]                   # (B, L) additive key-padding bias
    wa = wattn_ref[0]                        # (4, C, C): [q, k, v, out]
    ba = battn_ref[0]                        # (4, C)
    lng = lng_ref[0]                         # (2, C)
    lnb = lnb_ref[0]
    w1 = w1_ref[0]                           # (C, F)
    b1 = b1_ref[0]                           # (1, F)
    w2 = w2_ref[0]                           # (F, C)
    b2 = b2_ref[0]                           # (1, C)

    qk_in = x + pos                          # query = key = x + pos, value = x
    attn = _mha(qk_in, qk_in, x, wa, ba, kbias, None, attn_buf,
                B, L, L, H, dh, scale)
    x1 = _ln(x + attn, lng[0:1, :], lnb[0:1, :], eps)
    hid = jnp.maximum(
        jnp.dot(x1, w1, preferred_element_type=jnp.float32) + b1, 0.0)
    ff = jnp.dot(hid, w2, preferred_element_type=jnp.float32) + b2
    out = _ln(x1 + ff, lng[1:2, :], lnb[1:2, :], eps)

    state_ref[...] = out
    # constant output block index -> flushed to HBM once at grid end
    mem_ref[...] = out.astype(mem_ref.dtype)


def _decoder_stack_kernel(tgt_ref, qpos_ref, mem_ref, kpos_ref, kbias_ref, sabias_ref,
                          wattn_ref, battn_ref, lng_ref, lnb_ref,
                          w1_ref, b1_ref, w2_ref, b2_ref, ng_ref, nb_ref,
                          inter_ref, state_ref, attn_buf,
                          *, B, Nq, Lk, H, dh, scale, eps):
    layer = pl.program_id(0)

    @pl.when(layer == 0)
    def _init():
        state_ref[...] = tgt_ref[...].astype(jnp.float32)

    tgt = state_ref[...]                     # (B*Nq, C), running decoder state
    qpos = qpos_ref[...].astype(jnp.float32)
    mem = mem_ref[...].astype(jnp.float32)   # (B*Lk, C)
    kpos = kpos_ref[...].astype(jnp.float32)
    kbias = kbias_ref[...]                   # (B, Lk)
    sabias = sabias_ref[...]                 # (Nq, Nq) DN attn-mask bias
    wa = wattn_ref[0]                        # (8, C, C): [sa q,k,v,o, ca q,k,v,o]
    ba = battn_ref[0]                        # (8, C)
    lng = lng_ref[0]                         # (3, C)
    lnb = lnb_ref[0]
    w1 = w1_ref[0]
    b1 = b1_ref[0]
    w2 = w2_ref[0]
    b2 = b2_ref[0]

    # --- self attention: q = k = tgt + query_pos, v = tgt, DN attn-mask bias ---
    q_in = tgt + qpos
    sa = _mha(q_in, q_in, tgt, wa[0:4], ba[0:4], None, sabias, attn_buf,
              B, Nq, Nq, H, dh, scale)
    t1 = _ln(tgt + sa, lng[0:1, :], lnb[0:1, :], eps)

    # --- cross attention: q = t1 + query_pos, k = memory + key_pos, v = memory ---
    ca = _mha(t1 + qpos, mem + kpos, mem, wa[4:8], ba[4:8], kbias, None, attn_buf,
              B, Nq, Lk, H, dh, scale)
    t2 = _ln(t1 + ca, lng[1:2, :], lnb[1:2, :], eps)

    # --- FFN ---
    hid = jnp.maximum(
        jnp.dot(t2, w1, preferred_element_type=jnp.float32) + b1, 0.0)
    ff = jnp.dot(hid, w2, preferred_element_type=jnp.float32) + b2
    t3 = _ln(t2 + ff, lng[2:3, :], lnb[2:3, :], eps)

    state_ref[...] = t3
    # fused final decoder norm -> per-layer intermediate output (no extra kernel)
    inter_ref[0] = _ln(t3, ng_ref[...], nb_ref[...], eps).astype(inter_ref.dtype)


# ----------------------------- wrappers (one pallas_call per stack) -----------------------------

def encoder_stack(x_flat, pos_flat, key_bias, p, B, L, C, H):
    M = B * L
    num_layers = p["wattn"].shape[0]
    dh = C // H
    kernel = functools.partial(_encoder_stack_kernel, B=B, L=L, H=H, dh=dh,
                               scale=1.0 / math.sqrt(dh), eps=1e-5)
    layer_weights = (p["wattn"], p["battn"], p["lng"], p["lnb"],
                     p["w1"], p["b1"], p["w2"], p["b2"])
    in_specs = ([_invariant_spec(x_flat.shape), _invariant_spec(pos_flat.shape),
                 _invariant_spec(key_bias.shape)]
                + [_per_layer_spec(w.shape) for w in layer_weights])
    return pl.pallas_call(
        kernel,
        out_shape=jax.ShapeDtypeStruct((M, C), jnp.float32),
        grid=(num_layers,),
        in_specs=in_specs,
        out_specs=_invariant_spec((M, C)),
        scratch_shapes=[pltpu.VMEM((M, C), jnp.float32),   # running state
                        pltpu.VMEM((M, C), jnp.float32)],  # per-head attention buffer
        compiler_params=pltpu.CompilerParams(dimension_semantics=("arbitrary",)),
    )(x_flat, pos_flat, key_bias, *layer_weights)


def decoder_stack(tgt_flat, qpos_flat, memory, kpos_flat, key_bias, sa_bias,
                  p, B, Nq, Lk, C, H):
    Mq = B * Nq
    num_layers = p["wattn"].shape[0]
    dh = C // H
    kernel = functools.partial(_decoder_stack_kernel, B=B, Nq=Nq, Lk=Lk, H=H, dh=dh,
                               scale=1.0 / math.sqrt(dh), eps=1e-5)
    layer_weights = (p["wattn"], p["battn"], p["lng"], p["lnb"],
                     p["w1"], p["b1"], p["w2"], p["b2"])
    in_specs = ([_invariant_spec(tgt_flat.shape), _invariant_spec(qpos_flat.shape),
                 _invariant_spec(memory.shape), _invariant_spec(kpos_flat.shape),
                 _invariant_spec(key_bias.shape), _invariant_spec(sa_bias.shape)]
                + [_per_layer_spec(w.shape) for w in layer_weights]
                + [_invariant_spec(p["norm_g"].shape), _invariant_spec(p["norm_b"].shape)])
    return pl.pallas_call(
        kernel,
        out_shape=jax.ShapeDtypeStruct((num_layers, Mq, C), jnp.float32),
        grid=(num_layers,),
        in_specs=in_specs,
        out_specs=pl.BlockSpec((1, Mq, C), lambda l: (l, 0, 0)),
        scratch_shapes=[pltpu.VMEM((Mq, C), jnp.float32),   # running state
                        pltpu.VMEM((Mq, C), jnp.float32)],  # per-head attention buffer
        compiler_params=pltpu.CompilerParams(dimension_semantics=("arbitrary",)),
    )(tgt_flat, qpos_flat, memory, kpos_flat, key_bias, sa_bias,
      *layer_weights, p["norm_g"], p["norm_b"])


# ----------------------------- KSDNDetrTransformer forward -----------------------------

def ksdn_detr_transformer_forward(params, x, mask, anchor_box_embed, pos_embed,
                                  target, attn_mask=None, num_heads=4):
    bs, c, h, w = x.shape
    hw = h * w
    # Reference does x.view(bs,c,-1).permute(2,0,1) -> (HW, bs, c); we keep the
    # equivalent batch-folded (bs*HW, c) layout so all matmuls run full-width in one
    # grid step (no grid over batch).
    x_flat = x.reshape(bs, c, hw).transpose(0, 2, 1).reshape(bs * hw, c)
    pos_flat = pos_embed.reshape(bs, c, hw).transpose(0, 2, 1).reshape(bs * hw, c)
    # Additive key-padding bias as a tiny (bs, HW) array (never the (B*H,Lq,Lk) blow-up).
    key_bias = jnp.where(mask.reshape(bs, hw), -1e9, 0.0).astype(jnp.float32)

    # ---- encoder: one pallas_call for all layers ----
    memory = encoder_stack(x_flat, pos_flat, key_bias, params["encoder"],
                           bs, hw, c, num_heads)                  # (bs*hw, c) f32
    encoder_intermediate_output_list = []   # synthetic encoder emits no extras

    # ---- decoder (DN-DETR style): one pallas_call for all layers ----
    dec = params["decoder"]
    nq = target.shape[0]
    references = jax.nn.sigmoid(anchor_box_embed)                 # (nq, bs, 4)
    # ref_point_head: 2-KFLOP matmul -> plain JAX (no kernel launch; XLA fuses it).
    anchor_flat = anchor_box_embed.transpose(1, 0, 2).reshape(bs * nq, 4)
    qpos_flat = jnp.dot(anchor_flat, dec["ref_point_head_w"]) + dec["ref_point_head_b"]

    if attn_mask is not None:               # (nq, nq) bool, True = blocked
        sa_bias = jnp.where(attn_mask, -1e9, 0.0).astype(jnp.float32)
    else:
        sa_bias = jnp.zeros((nq, nq), jnp.float32)

    tgt_flat = target.transpose(1, 0, 2).reshape(bs * nq, c)
    inter = decoder_stack(tgt_flat, qpos_flat, memory, pos_flat, key_bias, sa_bias,
                          dec, bs, nq, hw, c, num_heads)          # (n_dec, bs*nq, c)
    hidden_state = inter.reshape(-1, bs, nq, c).astype(target.dtype)
    decoder_intermediate_output_list = []

    intermediate_output_dict = dict(
        encoder_intermediate_output_list=encoder_intermediate_output_list,
        decoder_intermediate_output_list=decoder_intermediate_output_list,
    )
    # TODO(synk): teacher branch ('feat_t' -> second decoder pass +
    # concat_student_teacher_decoder_output) is skipped because the synthetic encoder
    # returns no intermediate output list, so the reference `if` guard is False.
    return hidden_state, references, intermediate_output_dict


# ----------------------------- deterministic parameter init -----------------------------

def init_params(key, embed_dim=32, ffn_dim=64, num_enc=2, num_dec=2, num_heads=4):
    del num_heads
    C, F = embed_dim, ffn_dim
    keys = iter(jax.random.split(key, 256))

    def xavier(shape):
        fan_in, fan_out = shape[-2], shape[-1]
        bound = math.sqrt(6.0 / (fan_in + fan_out))
        return jax.random.uniform(next(keys), shape, jnp.float32, -bound, bound)

    def attn_stack(n_layers, n_mats):
        # (n_layers, n_mats, C, C): per-layer projection matrices, xavier each (C, C)
        return jnp.stack([jnp.stack([xavier((C, C)) for _ in range(n_mats)])
                          for _ in range(n_layers)])

    def ffn_stack(n_layers):
        return dict(
            w1=jnp.stack([xavier((C, F)) for _ in range(n_layers)]),
            b1=jnp.zeros((n_layers, 1, F), jnp.float32),
            w2=jnp.stack([xavier((F, C)) for _ in range(n_layers)]),
            b2=jnp.zeros((n_layers, 1, C), jnp.float32),
        )

    encoder = dict(
        wattn=attn_stack(num_enc, 4),                         # [q, k, v, out]
        battn=jnp.zeros((num_enc, 4, C), jnp.float32),
        lng=jnp.ones((num_enc, 2, C), jnp.float32),
        lnb=jnp.zeros((num_enc, 2, C), jnp.float32),
        **ffn_stack(num_enc),
    )
    decoder = dict(
        wattn=attn_stack(num_dec, 8),          # [sa q,k,v,out, ca q,k,v,out]
        battn=jnp.zeros((num_dec, 8, C), jnp.float32),
        lng=jnp.ones((num_dec, 3, C), jnp.float32),
        lnb=jnp.zeros((num_dec, 3, C), jnp.float32),
        ref_point_head_w=xavier((4, C)),
        ref_point_head_b=jnp.zeros((1, C), jnp.float32),
        norm_g=jnp.ones((1, C), jnp.float32),
        norm_b=jnp.zeros((1, C), jnp.float32),
        **ffn_stack(num_dec),
    )
    return dict(encoder=encoder, decoder=decoder)


# ----------------------------- main -----------------------------

if __name__ == "__main__":
    key = jax.random.PRNGKey(0)
    k_param, k_x, k_pos, k_anchor, k_tgt = jax.random.split(key, 5)

    bs, c, h, w = 2, 32, 4, 4
    nq, num_heads = 8, 4

    params = init_params(k_param, embed_dim=c, ffn_dim=64, num_enc=2, num_dec=2,
                         num_heads=num_heads)

    x = jax.random.normal(k_x, (bs, c, h, w), jnp.float32)
    pos_embed = jax.random.normal(k_pos, (bs, c, h, w), jnp.float32)
    # padding mask: True = padded pixel (pad last column of batch 1)
    mask = jnp.zeros((bs, h, w), bool).at[1, :, -1].set(True)
    anchor_box_embed = jax.random.normal(k_anchor, (nq, bs, 4), jnp.float32)
    target = jax.random.normal(k_tgt, (nq, bs, c), jnp.float32)
    attn_mask = jnp.zeros((nq, nq), bool)   # DN attn mask (no blocking here)

    fwd = jax.jit(ksdn_detr_transformer_forward, static_argnames=("num_heads",))
    hidden_state, references, inter_dict = fwd(
        params, x, mask, anchor_box_embed, pos_embed, target,
        attn_mask=attn_mask, num_heads=num_heads)

    jax.block_until_ready(hidden_state)
    jax.block_until_ready(references)
    assert hidden_state.shape == (2, bs, nq, c)
    assert references.shape == (nq, bs, 4)
    print("KERNEL_OK")
</pallas_src>

<mosaic_0001>
module attributes {stable_mosaic.version = 11 : i64} {
  func.func @_encoder_stack_kernel(%arg0: i32, %arg1: memref<32x32xf32, #tpu.memory_space<vmem>>, %arg2: memref<32x32xf32, #tpu.memory_space<vmem>>, %arg3: memref<2x16xf32, #tpu.memory_space<vmem>>, %arg4: memref<1x4x32x32xf32, #tpu.memory_space<vmem>>, %arg5: memref<1x4x32xf32, #tpu.memory_space<vmem>>, %arg6: memref<1x2x32xf32, #tpu.memory_space<vmem>>, %arg7: memref<1x2x32xf32, #tpu.memory_space<vmem>>, %arg8: memref<1x32x64xf32, #tpu.memory_space<vmem>>, %arg9: memref<1x1x64xf32, #tpu.memory_space<vmem>>, %arg10: memref<1x64x32xf32, #tpu.memory_space<vmem>>, %arg11: memref<1x1x32xf32, #tpu.memory_space<vmem>>, %arg12: memref<32x32xf32, #tpu.memory_space<vmem>>, %arg13: memref<32x32xf32, #tpu.memory_space<vmem>>, %arg14: memref<32x32xf32, #tpu.memory_space<vmem>>) attributes {dimension_semantics = [#tpu.dimension_semantics<arbitrary>], iteration_bounds = array<i64: 2>, scalar_prefetch = 0 : i64, scratch_operands = 2 : i64, tpu.core_type = #tpu.core_type<tc>, window_params = [{pipeline_mode = #tpu.pipeline_mode<synchronous>, transform_indices = @transform_0, window_bounds = array<i64: 32, 32>}, {pipeline_mode = #tpu.pipeline_mode<synchronous>, transform_indices = @transform_1, window_bounds = array<i64: 32, 32>}, {pipeline_mode = #tpu.pipeline_mode<synchronous>, transform_indices = @transform_2, window_bounds = array<i64: 2, 16>}, {transform_indices = @transform_3, window_bounds = array<i64: 1, 4, 32, 32>}, {transform_indices = @transform_4, window_bounds = array<i64: 1, 4, 32>}, {transform_indices = @transform_5, window_bounds = array<i64: 1, 2, 32>}, {transform_indices = @transform_6, window_bounds = array<i64: 1, 2, 32>}, {transform_indices = @transform_7, window_bounds = array<i64: 1, 32, 64>}, {transform_indices = @transform_8, window_bounds = array<i64: 1, 1, 64>}, {transform_indices = @transform_9, window_bounds = array<i64: 1, 64, 32>}, {transform_indices = @transform_10, window_bounds = array<i64: 1, 1, 32>}, {pipeline_mode = #tpu.pipeline_mode<synchronous>, transform_indices = @transform_11, window_bounds = array<i64: 32, 32>}]} {
    %c0_i32 = arith.constant 0 : i32
    %0 = arith.cmpi eq, %arg0, %c0_i32 : i32
    %1 = arith.extui %0 : i1 to i32
    %c0_i32_0 = arith.constant 0 : i32
    %2 = arith.cmpi ne, %1, %c0_i32_0 : i32
    scf.if %2 {
      %c0_106 = arith.constant 0 : index
      %c0_107 = arith.constant 0 : index
      %276 = vector.load %arg1[%c0_106, %c0_107] : memref<32x32xf32, #tpu.memory_space<vmem>>, vector<32x32xf32>
      %c0_108 = arith.constant 0 : index
      %c0_109 = arith.constant 0 : index
      %277 = vector.load %arg13[%c0_108, %c0_109] : memref<32x32xf32, #tpu.memory_space<vmem>>, vector<32x32xf32>
      tpu.vector_store %arg13[%c0_108, %c0_109], %276 {strides = array<i32>} : memref<32x32xf32, #tpu.memory_space<vmem>>, vector<32x32xf32>,
    } else {
    }
    %c0 = arith.constant 0 : index
    %c0_1 = arith.constant 0 : index
    %3 = vector.load %arg13[%c0, %c0_1] : memref<32x32xf32, #tpu.memory_space<vmem>>, vector<32x32xf32>
    %c0_2 = arith.constant 0 : index
    %c0_3 = arith.constant 0 : index
    %4 = vector.load %arg2[%c0_2, %c0_3] : memref<32x32xf32, #tpu.memory_space<vmem>>, vector<32x32xf32>
    %c0_4 = arith.constant 0 : index
    %c0_5 = arith.constant 0 : index
    %5 = vector.load %arg3[%c0_4, %c0_5] : memref<2x16xf32, #tpu.memory_space<vmem>>, vector<2x16xf32>
    %c0_6 = arith.constant 0 : index
    %c0_7 = arith.constant 0 : index
    %c0_8 = arith.constant 0 : index
    %c0_9 = arith.constant 0 : index
    %6 = vector.load %arg4[%c0_6, %c0_7, %c0_8, %c0_9] : memref<1x4x32x32xf32, #tpu.memory_space<vmem>>, vector<1x4x32x32xf32>
    %7 = vector.shape_cast %6 : vector<1x4x32x32xf32> to vector<4x32x32xf32>
    %c0_10 = arith.constant 0 : index
    %c0_11 = arith.constant 0 : index
    %c0_12 = arith.constant 0 : index
    %8 = vector.load %arg5[%c0_10, %c0_11, %c0_12] : memref<1x4x32xf32, #tpu.memory_space<vmem>>, vector<1x4x32xf32>
    %9 = vector.shape_cast %8 : vector<1x4x32xf32> to vector<4x32xf32>
    %c0_13 = arith.constant 0 : index
    %c0_14 = arith.constant 0 : index
    %c0_15 = arith.constant 0 : index
    %10 = vector.load %arg6[%c0_13, %c0_14, %c0_15] : memref<1x2x32xf32, #tpu.memory_space<vmem>>, vector<1x2x32xf32>
    %11 = vector.shape_cast %10 : vector<1x2x32xf32> to vector<2x32xf32>
    %c0_16 = arith.constant 0 : index
    %c0_17 = arith.constant 0 : index
    %c0_18 = arith.constant 0 : index
    %12 = vector.load %arg7[%c0_16, %c0_17, %c0_18] : memref<1x2x32xf32, #tpu.memory_space<vmem>>, vector<1x2x32xf32>
    %13 = vector.shape_cast %12 : vector<1x2x32xf32> to vector<2x32xf32>
    %c0_19 = arith.constant 0 : index
    %c0_20 = arith.constant 0 : index
    %c0_21 = arith.constant 0 : index
    %14 = vector.load %arg8[%c0_19, %c0_20, %c0_21] : memref<1x32x64xf32, #tpu.memory_space<vmem>>, vector<1x32x64xf32>
    %15 = vector.shape_cast %14 : vector<1x32x64xf32> to vector<32x64xf32>
    %c0_22 = arith.constant 0 : index
    %c0_23 = arith.constant 0 : index
    %c0_24 = arith.constant 0 : index
    %16 = vector.load %arg9[%c0_22, %c0_23, %c0_24] : memref<1x1x64xf32, #tpu.memory_space<vmem>>, vector<1x1x64xf32>
    %17 = vector.shape_cast %16 : vector<1x1x64xf32> to vector<1x64xf32>
    %c0_25 = arith.constant 0 : index
    %c0_26 = arith.constant 0 : index
    %c0_27 = arith.constant 0 : index
    %18 = vector.load %arg10[%c0_25, %c0_26, %c0_27] : memref<1x64x32xf32, #tpu.memory_space<vmem>>, vector<1x64x32xf32>
    %19 = vector.shape_cast %18 : vector<1x64x32xf32> to vector<64x32xf32>
    %c0_28 = arith.constant 0 : index
    %c0_29 = arith.constant 0 : index
    %c0_30 = arith.constant 0 : index
    %20 = vector.load %arg11[%c0_28, %c0_29, %c0_30] : memref<1x1x32xf32, #tpu.memory_space<vmem>>, vector<1x1x32xf32>
    %21 = vector.shape_cast %20 : vector<1x1x32xf32> to vector<1x32xf32>
    %22 = arith.addf %3, %4 : vector<32x32xf32>
    %23 = vector.extract_strided_slice %7 {offsets = [0, 0, 0], sizes = [1, 32, 32], strides = [1, 1, 1]} : vector<4x32x32xf32> to vector<1x32x32xf32>
    %24 = vector.shape_cast %23 : vector<1x32x32xf32> to vector<32x32xf32>
    %cst = arith.constant dense<0.000000e+00> : vector<32x32xf32>
    %25 = tpu.matmul %22, %24, %cst {dimension_numbers = #tpu.dot_dimension_numbers<[1], [0], [0], [1], [0, 0, 1, 1], [], []>} : vector<32x32xf32>, vector<32x32xf32>, vector<32x32xf32> -> vector<32x32xf32>
    %26 = vector.extract_strided_slice %9 {offsets = [0, 0], sizes = [1, 32], strides = [1, 1]} : vector<4x32xf32> to vector<1x32xf32>
    %27 = vector.broadcast %26 : vector<1x32xf32> to vector<32x32xf32>
    %28 = arith.addf %25, %27 : vector<32x32xf32>
    %29 = vector.extract_strided_slice %7 {offsets = [1, 0, 0], sizes = [1, 32, 32], strides = [1, 1, 1]} : vector<4x32x32xf32> to vector<1x32x32xf32>
    %30 = vector.shape_cast %29 : vector<1x32x32xf32> to vector<32x32xf32>
    %cst_31 = arith.constant dense<0.000000e+00> : vector<32x32xf32>
    %31 = tpu.matmul %22, %30, %cst_31 {dimension_numbers = #tpu.dot_dimension_numbers<[1], [0], [0], [1], [0, 0, 1, 1], [], []>} : vector<32x32xf32>, vector<32x32xf32>, vector<32x32xf32> -> vector<32x32xf32>
    %32 = vector.extract_strided_slice %9 {offsets = [1, 0], sizes = [1, 32], strides = [1, 1]} : vector<4x32xf32> to vector<1x32xf32>
    %33 = vector.broadcast %32 : vector<1x32xf32> to vector<32x32xf32>
    %34 = arith.addf %31, %33 : vector<32x32xf32>
    %35 = vector.extract_strided_slice %7 {offsets = [2, 0, 0], sizes = [1, 32, 32], strides = [1, 1, 1]} : vector<4x32x32xf32> to vector<1x32x32xf32>
    %36 = vector.shape_cast %35 : vector<1x32x32xf32> to vector<32x32xf32>
    %cst_32 = arith.constant dense<0.000000e+00> : vector<32x32xf32>
    %37 = tpu.matmul %3, %36, %cst_32 {dimension_numbers = #tpu.dot_dimension_numbers<[1], [0], [0], [1], [0, 0, 1, 1], [], []>} : vector<32x32xf32>, vector<32x32xf32>, vector<32x32xf32> -> vector<32x32xf32>
    %38 = vector.extract_strided_slice %9 {offsets = [2, 0], sizes = [1, 32], strides = [1, 1]} : vector<4x32xf32> to vector<1x32xf32>
    %39 = vector.broadcast %38 : vector<1x32xf32> to vector<32x32xf32>
    %40 = arith.addf %37, %39 : vector<32x32xf32>
    %41 = vector.extract_strided_slice %28 {offsets = [0, 0], sizes = [16, 8], strides = [1, 1]} : vector<32x32xf32> to vector<16x8xf32>
    %42 = vector.extract_strided_slice %34 {offsets = [0, 0], sizes = [16, 8], strides = [1, 1]} : vector<32x32xf32> to vector<16x8xf32>
    %cst_33 = arith.constant dense<0.000000e+00> : vector<16x16xf32>
    %43 = tpu.matmul %41, %42, %cst_33 {dimension_numbers = #tpu.dot_dimension_numbers<[1], [1], [0], [0], [0, 0, 1, 0], [], []>} : vector<16x8xf32>, vector<16x8xf32>, vector<16x16xf32> -> vector<16x16xf32>
    %cst_34 = arith.constant 0.353553385 : f32
    %44 = vector.broadcast %cst_34 : f32 to vector<16x16xf32>
    %45 = arith.mulf %43, %44 : vector<16x16xf32>
    %46 = vector.extract_strided_slice %5 {offsets = [0, 0], sizes = [1, 16], strides = [1, 1]} : vector<2x16xf32> to vector<1x16xf32>
    %47 = vector.broadcast %46 : vector<1x16xf32> to vector<16x16xf32>
    %48 = arith.addf %45, %47 : vector<16x16xf32>
    %cst_35 = arith.constant dense<0xFF800000> : vector<16xf32>
    %49 = vector.multi_reduction <maximumf>, %48, %cst_35 [1] : vector<16x16xf32> to vector<16xf32>
    %50 = vector.shape_cast %49 : vector<16xf32> to vector<16x1xf32>
    %51 = vector.broadcast %50 : vector<16x1xf32> to vector<16x16xf32>
    %52 = arith.subf %48, %51 : vector<16x16xf32>
    %53 = math.exp %52 : vector<16x16xf32>
    %cst_36 = arith.constant dense<0.000000e+00> : vector<16xf32>
    %54 = vector.multi_reduction <add>, %53, %cst_36 [1] : vector<16x16xf32> to vector<16xf32>
    %55 = vector.shape_cast %54 : vector<16xf32> to vector<16x1xf32>
    %56 = tpu.reciprocal %55 {approx = true} : vector<16x1xf32> -> vector<16x1xf32>
    %57 = vector.broadcast %56 : vector<16x1xf32> to vector<16x16xf32>
    %58 = arith.mulf %53, %57 : vector<16x16xf32>
    %59 = vector.extract_strided_slice %40 {offsets = [0, 0], sizes = [16, 8], strides = [1, 1]} : vector<32x32xf32> to vector<16x8xf32>
    %cst_37 = arith.constant dense<0.000000e+00> : vector<16x8xf32>
    %60 = tpu.matmul %58, %59, %cst_37 {dimension_numbers = #tpu.dot_dimension_numbers<[1], [0], [0], [1], [0, 0, 1, 1], [], []>} : vector<16x16xf32>, vector<16x8xf32>, vector<16x8xf32> -> vector<16x8xf32>
    %c0_38 = arith.constant 0 : index
    %c0_39 = arith.constant 0 : index
    %61 = vector.load %arg14[%c0_38, %c0_39] : memref<32x32xf32, #tpu.memory_space<vmem>>, vector<16x8xf32>
    tpu.vector_store %arg14[%c0_38, %c0_39], %60 {strides = array<i32>} : memref<32x32xf32, #tpu.memory_space<vmem>>, vector<16x8xf32>,
    %62 = vector.extract_strided_slice %28 {offsets = [0, 8], sizes = [16, 8], strides = [1, 1]} : vector<32x32xf32> to vector<16x8xf32>
    %63 = vector.extract_strided_slice %34 {offsets = [0, 8], sizes = [16, 8], strides = [1, 1]} : vector<32x32xf32> to vector<16x8xf32>
    %cst_40 = arith.constant dense<0.000000e+00> : vector<16x16xf32>
    %64 = tpu.matmul %62, %63, %cst_40 {dimension_numbers = #tpu.dot_dimension_numbers<[1], [1], [0], [0], [0, 0, 1, 0], [], []>} : vector<16x8xf32>, vector<16x8xf32>, vector<16x16xf32> -> vector<16x16xf32>
    %cst_41 = arith.constant 0.353553385 : f32
    %65 = vector.broadcast %cst_41 : f32 to vector<16x16xf32>
    %66 = arith.mulf %64, %65 : vector<16x16xf32>
    %67 = vector.extract_strided_slice %5 {offsets = [0, 0], sizes = [1, 16], strides = [1, 1]} : vector<2x16xf32> to vector<1x16xf32>
    %68 = vector.broadcast %67 : vector<1x16xf32> to vector<16x16xf32>
    %69 = arith.addf %66, %68 : vector<16x16xf32>
    %cst_42 = arith.constant dense<0xFF800000> : vector<16xf32>
    %70 = vector.multi_reduction <maximumf>, %69, %cst_42 [1] : vector<16x16xf32> to vector<16xf32>
    %71 = vector.shape_cast %70 : vector<16xf32> to vector<16x1xf32>
    %72 = vector.broadcast %71 : vector<16x1xf32> to vector<16x16xf32>
    %73 = arith.subf %69, %72 : vector<16x16xf32>
    %74 = math.exp %73 : vector<16x16xf32>
    %cst_43 = arith.constant dense<0.000000e+00> : vector<16xf32>
    %75 = vector.multi_reduction <add>, %74, %cst_43 [1] : vector<16x16xf32> to vector<16xf32>
    %76 = vector.shape_cast %75 : vector<16xf32> to vector<16x1xf32>
    %77 = tpu.reciprocal %76 {approx = true} : vector<16x1xf32> -> vector<16x1xf32>
    %78 = vector.broadcast %77 : vector<16x1xf32> to vector<16x16xf32>
    %79 = arith.mulf %74, %78 : vector<16x16xf32>
    %80 = vector.extract_strided_slice %40 {offsets = [0, 8], sizes = [16, 8], strides = [1, 1]} : vector<32x32xf32> to vector<16x8xf32>
    %cst_44 = arith.constant dense<0.000000e+00> : vector<16x8xf32>
    %81 = tpu.matmul %79, %80, %cst_44 {dimension_numbers = #tpu.dot_dimension_numbers<[1], [0], [0], [1], [0, 0, 1, 1], [], []>} : vector<16x16xf32>, vector<16x8xf32>, vector<16x8xf32> -> vector<16x8xf32>
    %c0_45 = arith.constant 0 : index
    %c8 = arith.constant 8 : index
    %82 = vector.load %arg14[%c0_45, %c8] : memref<32x32xf32, #tpu.memory_space<vmem>>, vector<16x8xf32>
    tpu.vector_store %arg14[%c0_45, %c8], %81 {strides = array<i32>} : memref<32x32xf32, #tpu.memory_space<vmem>>, vector<16x8xf32>,
    %83 = vector.extract_strided_slice %28 {offsets = [0, 16], sizes = [16, 8], strides = [1, 1]} : vector<32x32xf32> to vector<16x8xf32>
    %84 = vector.extract_strided_slice %34 {offsets = [0, 16], sizes = [16, 8], strides = [1, 1]} : vector<32x32xf32> to vector<16x8xf32>
    %cst_46 = arith.constant dense<0.000000e+00> : vector<16x16xf32>
    %85 = tpu.matmul %83, %84, %cst_46 {dimension_numbers = #tpu.dot_dimension_numbers<[1], [1], [0], [0], [0, 0, 1, 0], [], []>} : vector<16x8xf32>, vector<16x8xf32>, vector<16x16xf32> -> vector<16x16xf32>
    %cst_47 = arith.constant 0.353553385 : f32
    %86 = vector.broadcast %cst_47 : f32 to vector<16x16xf32>
    %87 = arith.mulf %85, %86 : vector<16x16xf32>
    %88 = vector.extract_strided_slice %5 {offsets = [0, 0], sizes = [1, 16], strides = [1, 1]} : vector<2x16xf32> to vector<1x16xf32>
    %89 = vector.broadcast %88 : vector<1x16xf32> to vector<16x16xf32>
    %90 = arith.addf %87, %89 : vector<16x16xf32>
    %cst_48 = arith.constant dense<0xFF800000> : vector<16xf32>
    %91 = vector.multi_reduction <maximumf>, %90, %cst_48 [1] : vector<16x16xf32> to vector<16xf32>
    %92 = vector.shape_cast %91 : vector<16xf32> to vector<16x1xf32>
    %93 = vector.broadcast %92 : vector<16x1xf32> to vector<16x16xf32>
    %94 = arith.subf %90, %93 : vector<16x16xf32>
    %95 = math.exp %94 : vector<16x16xf32>
    %cst_49 = arith.constant dense<0.000000e+00> : vector<16xf32>
    %96 = vector.multi_reduction <add>, %95, %cst_49 [1] : vector<16x16xf32> to vector<16xf32>
    %97 = vector.shape_cast %96 : vector<16xf32> to vector<16x1xf32>
    %98 = tpu.reciprocal %97 {approx = true} : vector<16x1xf32> -> vector<16x1xf32>
    %99 = vector.broadcast %98 : vector<16x1xf32> to vector<16x16xf32>
    %100 = arith.mulf %95, %99 : vector<16x16xf32>
    %101 = vector.extract_strided_slice %40 {offsets = [0, 16], sizes = [16, 8], strides = [1, 1]} : vector<32x32xf32> to vector<16x8xf32>
    %cst_50 = arith.constant dense<0.000000e+00> : vector<16x8xf32>
    %102 = tpu.matmul %100, %101, %cst_50 {dimension_numbers = #tpu.dot_dimension_numbers<[1], [0], [0], [1], [0, 0, 1, 1], [], []>} : vector<16x16xf32>, vector<16x8xf32>, vector<16x8xf32> -> vector<16x8xf32>
    %c0_51 = arith.constant 0 : index
    %c16 = arith.constant 16 : index
    %103 = vector.load %arg14[%c0_51, %c16] : memref<32x32xf32, #tpu.memory_space<vmem>>, vector<16x8xf32>
    tpu.vector_store %arg14[%c0_51, %c16], %102 {strides = array<i32>} : memref<32x32xf32, #tpu.memory_space<vmem>>, vector<16x8xf32>,
    %104 = vector.extract_strided_slice %28 {offsets = [0, 24], sizes = [16, 8], strides = [1, 1]} : vector<32x32xf32> to vector<16x8xf32>
    %105 = vector.extract_strided_slice %34 {offsets = [0, 24], sizes = [16, 8], strides = [1, 1]} : vector<32x32xf32> to vector<16x8xf32>
    %cst_52 = arith.constant dense<0.000000e+00> : vector<16x16xf32>
    %106 = tpu.matmul %104, %105, %cst_52 {dimension_numbers = #tpu.dot_dimension_numbers<[1], [1], [0], [0], [0, 0, 1, 0], [], []>} : vector<16x8xf32>, vector<16x8xf32>, vector<16x16xf32> -> vector<16x16xf32>
    %cst_53 = arith.constant 0.353553385 : f32
    %107 = vector.broadcast %cst_53 : f32 to vector<16x16xf32>
    %108 = arith.mulf %106, %107 : vector<16x16xf32>
    %109 = vector.extract_strided_slice %5 {offsets = [0, 0], sizes = [1, 16], strides = [1, 1]} : vector<2x16xf32> to vector<1x16xf32>
    %110 = vector.broadcast %109 : vector<1x16xf32> to vector<16x16xf32>
    %111 = arith.addf %108, %110 : vector<16x16xf32>
    %cst_54 = arith.constant dense<0xFF800000> : vector<16xf32>
    %112 = vector.multi_reduction <maximumf>, %111, %cst_54 [1] : vector<16x16xf32> to vector<16xf32>
    %113 = vector.shape_cast %112 : vector<16xf32> to vector<16x1xf32>
    %114 = vector.broadcast %113 : vector<16x1xf32> to vector<16x16xf32>
    %115 = arith.subf %111, %114 : vector<16x16xf32>
    %116 = math.exp %115 : vector<16x16xf32>
    %cst_55 = arith.constant dense<0.000000e+00> : vector<16xf32>
    %117 = vector.multi_reduction <add>, %116, %cst_55 [1] : vector<16x16xf32> to vector<16xf32>
    %118 = vector.shape_cast %117 : vector<16xf32> to vector<16x1xf32>
    %119 = tpu.reciprocal %118 {approx = true} : vector<16x1xf32> -> vector<16x1xf32>
    %120 = vector.broadcast %119 : vector<16x1xf32> to vector<16x16xf32>
    %121 = arith.mulf %116, %120 : vector<16x16xf32>
    %122 = vector.extract_strided_slice %40 {offsets = [0, 24], sizes = [16, 8], strides = [1, 1]} : vector<32x32xf32> to vector<16x8xf32>
    %cst_56 = arith.constant dense<0.000000e+00> : vector<16x8xf32>
    %123 = tpu.matmul %121, %122, %cst_56 {dimension_numbers = #tpu.dot_dimension_numbers<[1], [0], [0], [1], [0, 0, 1, 1], [], []>} : vector<16x16xf32>, vector<16x8xf32>, vector<16x8xf32> -> vector<16x8xf32>
    %c0_57 = arith.constant 0 : index
    %c24 = arith.constant 24 : index
    %124 = vector.load %arg14[%c0_57, %c24] : memref<32x32xf32, #tpu.memory_space<vmem>>, vector<16x8xf32>
    tpu.vector_store %arg14[%c0_57, %c24], %123 {strides = array<i32>} : memref<32x32xf32, #tpu.memory_space<vmem>>, vector<16x8xf32>,
    %125 = vector.extract_strided_slice %28 {offsets = [16, 0], sizes = [16, 8], strides = [1, 1]} : vector<32x32xf32> to vector<16x8xf32>
    %126 = vector.extract_strided_slice %34 {offsets = [16, 0], sizes = [16, 8], strides = [1, 1]} : vector<32x32xf32> to vector<16x8xf32>
    %cst_58 = arith.constant dense<0.000000e+00> : vector<16x16xf32>
    %127 = tpu.matmul %125, %126, %cst_58 {dimension_numbers = #tpu.dot_dimension_numbers<[1], [1], [0], [0], [0, 0, 1, 0], [], []>} : vector<16x8xf32>, vector<16x8xf32>, vector<16x16xf32> -> vector<16x16xf32>
    %cst_59 = arith.constant 0.353553385 : f32
    %128 = vector.broadcast %cst_59 : f32 to vector<16x16xf32>
    %129 = arith.mulf %127, %128 : vector<16x16xf32>
    %130 = vector.extract_strided_slice %5 {offsets = [1, 0], sizes = [1, 16], strides = [1, 1]} : vector<2x16xf32> to vector<1x16xf32>
    %131 = vector.broadcast %130 : vector<1x16xf32> to vector<16x16xf32>
    %132 = arith.addf %129, %131 : vector<16x16xf32>
    %cst_60 = arith.constant dense<0xFF800000> : vector<16xf32>
    %133 = vector.multi_reduction <maximumf>, %132, %cst_60 [1] : vector<16x16xf32> to vector<16xf32>
    %134 = vector.shape_cast %133 : vector<16xf32> to vector<16x1xf32>
    %135 = vector.broadcast %134 : vector<16x1xf32> to vector<16x16xf32>
    %136 = arith.subf %132, %135 : vector<16x16xf32>
    %137 = math.exp %136 : vector<16x16xf32>
    %cst_61 = arith.constant dense<0.000000e+00> : vector<16xf32>
    %138 = vector.multi_reduction <add>, %137, %cst_61 [1] : vector<16x16xf32> to vector<16xf32>
    %139 = vector.shape_cast %138 : vector<16xf32> to vector<16x1xf32>
    %140 = tpu.reciprocal %139 {approx = true} : vector<16x1xf32> -> vector<16x1xf32>
    %141 = vector.broadcast %140 : vector<16x1xf32> to vector<16x16xf32>
    %142 = arith.mulf %137, %141 : vector<16x16xf32>
    %143 = vector.extract_strided_slice %40 {offsets = [16, 0], sizes = [16, 8], strides = [1, 1]} : vector<32x32xf32> to vector<16x8xf32>
    %cst_62 = arith.constant dense<0.000000e+00> : vector<16x8xf32>
    %144 = tpu.matmul %142, %143, %cst_62 {dimension_numbers = #tpu.dot_dimension_numbers<[1], [0], [0], [1], [0, 0, 1, 1], [], []>} : vector<16x16xf32>, vector<16x8xf32>, vector<16x8xf32> -> vector<16x8xf32>
    %c16_63 = arith.constant 16 : index
    %c0_64 = arith.constant 0 : index
    %145 = vector.load %arg14[%c16_63, %c0_64] : memref<32x32xf32, #tpu.memory_space<vmem>>, vector<16x8xf32>
    tpu.vector_store %arg14[%c16_63, %c0_64], %144 {strides = array<i32>} : memref<32x32xf32, #tpu.memory_space<vmem>>, vector<16x8xf32>,
    %146 = vector.extract_strided_slice %28 {offsets = [16, 8], sizes = [16, 8], strides = [1, 1]} : vector<32x32xf32> to vector<16x8xf32>
    %147 = vector.extract_strided_slice %34 {offsets = [16, 8], sizes = [16, 8], strides = [1, 1]} : vector<32x32xf32> to vector<16x8xf32>
    %cst_65 = arith.constant dense<0.000000e+00> : vector<16x16xf32>
    %148 = tpu.matmul %146, %147, %cst_65 {dimension_numbers = #tpu.dot_dimension_numbers<[1], [1], [0], [0], [0, 0, 1, 0], [], []>} : vector<16x8xf32>, vector<16x8xf32>, vector<16x16xf32> -> vector<16x16xf32>
    %cst_66 = arith.constant 0.353553385 : f32
    %149 = vector.broadcast %cst_66 : f32 to vector<16x16xf32>
    %150 = arith.mulf %148, %149 : vector<16x16xf32>
    %151 = vector.extract_strided_slice %5 {offsets = [1, 0], sizes = [1, 16], strides = [1, 1]} : vector<2x16xf32> to vector<1x16xf32>
    %152 = vector.broadcast %151 : vector<1x16xf32> to vector<16x16xf32>
    %153 = arith.addf %150, %152 : vector<16x16xf32>
    %cst_67 = arith.constant dense<0xFF800000> : vector<16xf32>
    %154 = vector.multi_reduction <maximumf>, %153, %cst_67 [1] : vector<16x16xf32> to vector<16xf32>
    %155 = vector.shape_cast %154 : vector<16xf32> to vector<16x1xf32>
    %156 = vector.broadcast %155 : vector<16x1xf32> to vector<16x16xf32>
    %157 = arith.subf %153, %156 : vector<16x16xf32>
    %158 = math.exp %157 : vector<16x16xf32>
    %cst_68 = arith.constant dense<0.000000e+00> : vector<16xf32>
    %159 = vector.multi_reduction <add>, %158, %cst_68 [1] : vector<16x16xf32> to vector<16xf32>
    %160 = vector.shape_cast %159 : vector<16xf32> to vector<16x1xf32>
    %161 = tpu.reciprocal %160 {approx = true} : vector<16x1xf32> -> vector<16x1xf32>
    %162 = vector.broadcast %161 : vector<16x1xf32> to vector<16x16xf32>
    %163 = arith.mulf %158, %162 : vector<16x16xf32>
    %164 = vector.extract_strided_slice %40 {offsets = [16, 8], sizes = [16, 8], strides = [1, 1]} : vector<32x32xf32> to vector<16x8xf32>
    %cst_69 = arith.constant dense<0.000000e+00> : vector<16x8xf32>
    %165 = tpu.matmul %163, %164, %cst_69 {dimension_numbers = #tpu.dot_dimension_numbers<[1], [0], [0], [1], [0, 0, 1, 1], [], []>} : vector<16x16xf32>, vector<16x8xf32>, vector<16x8xf32> -> vector<16x8xf32>
    %c16_70 = arith.constant 16 : index
    %c8_71 = arith.constant 8 : index
    %166 = vector.load %arg14[%c16_70, %c8_71] : memref<32x32xf32, #tpu.memory_space<vmem>>, vector<16x8xf32>
    tpu.vector_store %arg14[%c16_70, %c8_71], %165 {strides = array<i32>} : memref<32x32xf32, #tpu.memory_space<vmem>>, vector<16x8xf32>,
    %167 = vector.extract_strided_slice %28 {offsets = [16, 16], sizes = [16, 8], strides = [1, 1]} : vector<32x32xf32> to vector<16x8xf32>
    %168 = vector.extract_strided_slice %34 {offsets = [16, 16], sizes = [16, 8], strides = [1, 1]} : vector<32x32xf32> to vector<16x8xf32>
    %cst_72 = arith.constant dense<0.000000e+00> : vector<16x16xf32>
    %169 = tpu.matmul %167, %168, %cst_72 {dimension_numbers = #tpu.dot_dimension_numbers<[1], [1], [0], [0], [0, 0, 1, 0], [], []>} : vector<16x8xf32>, vector<16x8xf32>, vector<16x16xf32> -> vector<16x16xf32>
    %cst_73 = arith.constant 0.353553385 : f32
    %170 = vector.broadcast %cst_73 : f32 to vector<16x16xf32>
    %171 = arith.mulf %169, %170 : vector<16x16xf32>
    %172 = vector.extract_strided_slice %5 {offsets = [1, 0], sizes = [1, 16], strides = [1, 1]} : vector<2x16xf32> to vector<1x16xf32>
    %173 = vector.broadcast %172 : vector<1x16xf32> to vector<16x16xf32>
    %174 = arith.addf %171, %173 : vector<16x16xf32>
    %cst_74 = arith.constant dense<0xFF800000> : vector<16xf32>
    %175 = vector.multi_reduction <maximumf>, %174, %cst_74 [1] : vector<16x16xf32> to vector<16xf32>
    %176 = vector.shape_cast %175 : vector<16xf32> to vector<16x1xf32>
    %177 = vector.broadcast %176 : vector<16x1xf32> to vector<16x16xf32>
    %178 = arith.subf %174, %177 : vector<16x16xf32>
    %179 = math.exp %178 : vector<16x16xf32>
    %cst_75 = arith.constant dense<0.000000e+00> : vector<16xf32>
    %180 = vector.multi_reduction <add>, %179, %cst_75 [1] : vector<16x16xf32> to vector<16xf32>
    %181 = vector.shape_cast %180 : vector<16xf32> to vector<16x1xf32>
    %182 = tpu.reciprocal %181 {approx = true} : vector<16x1xf32> -> vector<16x1xf32>
    %183 = vector.broadcast %182 : vector<16x1xf32> to vector<16x16xf32>
    %184 = arith.mulf %179, %183 : vector<16x16xf32>
    %185 = vector.extract_strided_slice %40 {offsets = [16, 16], sizes = [16, 8], strides = [1, 1]} : vector<32x32xf32> to vector<16x8xf32>
    %cst_76 = arith.constant dense<0.000000e+00> : vector<16x8xf32>
    %186 = tpu.matmul %184, %185, %cst_76 {dimension_numbers = #tpu.dot_dimension_numbers<[1], [0], [0], [1], [0, 0, 1, 1], [], []>} : vector<16x16xf32>, vector<16x8xf32>, vector<16x8xf32> -> vector<16x8xf32>
    %c16_77 = arith.constant 16 : index
    %c16_78 = arith.constant 16 : index
    %187 = vector.load %arg14[%c16_77, %c16_78] : memref<32x32xf32, #tpu.memory_space<vmem>>, vector<16x8xf32>
    tpu.vector_store %arg14[%c16_77, %c16_78], %186 {strides = array<i32>} : memref<32x32xf32, #tpu.memory_space<vmem>>, vector<16x8xf32>,
    %188 = vector.extract_strided_slice %28 {offsets = [16, 24], sizes = [16, 8], strides = [1, 1]} : vector<32x32xf32> to vector<16x8xf32>
    %189 = vector.extract_strided_slice %34 {offsets = [16, 24], sizes = [16, 8], strides = [1, 1]} : vector<32x32xf32> to vector<16x8xf32>
    %cst_79 = arith.constant dense<0.000000e+00> : vector<16x16xf32>
    %190 = tpu.matmul %188, %189, %cst_79 {dimension_numbers = #tpu.dot_dimension_numbers<[1], [1], [0], [0], [0, 0, 1, 0], [], []>} : vector<16x8xf32>, vector<16x8xf32>, vector<16x16xf32> -> vector<16x16xf32>
    %cst_80 = arith.constant 0.353553385 : f32
    %191 = vector.broadcast %cst_80 : f32 to vector<16x16xf32>
    %192 = arith.mulf %190, %191 : vector<16x16xf32>
    %193 = vector.extract_strided_slice %5 {offsets = [1, 0], sizes = [1, 16], strides = [1, 1]} : vector<2x16xf32> to vector<1x16xf32>
    %194 = vector.broadcast %193 : vector<1x16xf32> to vector<16x16xf32>
    %195 = arith.addf %192, %194 : vector<16x16xf32>
    %cst_81 = arith.constant dense<0xFF800000> : vector<16xf32>
    %196 = vector.multi_reduction <maximumf>, %195, %cst_81 [1] : vector<16x16xf32> to vector<16xf32>
    %197 = vector.shape_cast %196 : vector<16xf32> to vector<16x1xf32>
    %198 = vector.broadcast %197 : vector<16x1xf32> to vector<16x16xf32>
    %199 = arith.subf %195, %198 : vector<16x16xf32>
    %200 = math.exp %199 : vector<16x16xf32>
    %cst_82 = arith.constant dense<0.000000e+00> : vector<16xf32>
    %201 = vector.multi_reduction <add>, %200, %cst_82 [1] : vector<16x16xf32> to vector<16xf32>
    %202 = vector.shape_cast %201 : vector<16xf32> to vector<16x1xf32>
    %203 = tpu.reciprocal %202 {approx = true} : vector<16x1xf32> -> vector<16x1xf32>
    %204 = vector.broadcast %203 : vector<16x1xf32> to vector<16x16xf32>
    %205 = arith.mulf %200, %204 : vector<16x16xf32>
    %206 = vector.extract_strided_slice %40 {offsets = [16, 24], sizes = [16, 8], strides = [1, 1]} : vector<32x32xf32> to vector<16x8xf32>
    %cst_83 = arith.constant dense<0.000000e+00> : vector<16x8xf32>
    %207 = tpu.matmul %205, %206, %cst_83 {dimension_numbers = #tpu.dot_dimension_numbers<[1], [0], [0], [1], [0, 0, 1, 1], [], []>} : vector<16x16xf32>, vector<16x8xf32>, vector<16x8xf32> -> vector<16x8xf32>
    %c16_84 = arith.constant 16 : index
    %c24_85 = arith.constant 24 : index
    %208 = vector.load %arg14[%c16_84, %c24_85] : memref<32x32xf32, #tpu.memory_space<vmem>>, vector<16x8xf32>
    tpu.vector_store %arg14[%c16_84, %c24_85], %207 {strides = array<i32>} : memref<32x32xf32, #tpu.memory_space<vmem>>, vector<16x8xf32>,
    %c0_86 = arith.constant 0 : index
    %c0_87 = arith.constant 0 : index
    %209 = vector.load %arg14[%c0_86, %c0_87] : memref<32x32xf32, #tpu.memory_space<vmem>>, vector<32x32xf32>
    %210 = vector.extract_strided_slice %7 {offsets = [3, 0, 0], sizes = [1, 32, 32], strides = [1, 1, 1]} : vector<4x32x32xf32> to vector<1x32x32xf32>
    %211 = vector.shape_cast %210 : vector<1x32x32xf32> to vector<32x32xf32>
    %cst_88 = arith.constant dense<0.000000e+00> : vector<32x32xf32>
    %212 = tpu.matmul %209, %211, %cst_88 {dimension_numbers = #tpu.dot_dimension_numbers<[1], [0], [0], [1], [0, 0, 1, 1], [], []>} : vector<32x32xf32>, vector<32x32xf32>, vector<32x32xf32> -> vector<32x32xf32>
    %213 = vector.extract_strided_slice %9 {offsets = [3, 0], sizes = [1, 32], strides = [1, 1]} : vector<4x32xf32> to vector<1x32xf32>
    %214 = vector.broadcast %213 : vector<1x32xf32> to vector<32x32xf32>
    %215 = arith.addf %212, %214 : vector<32x32xf32>
    %216 = arith.addf %3, %215 : vector<32x32xf32>
    %217 = vector.extract_strided_slice %11 {offsets = [0, 0], sizes = [1, 32], strides = [1, 1]} : vector<2x32xf32> to vector<1x32xf32>
    %218 = vector.extract_strided_slice %13 {offsets = [0, 0], sizes = [1, 32], strides = [1, 1]} : vector<2x32xf32> to vector<1x32xf32>
    %cst_89 = arith.constant dense<0.000000e+00> : vector<32xf32>
    %219 = vector.multi_reduction <add>, %216, %cst_89 [1] : vector<32x32xf32> to vector<32xf32>
    %220 = vector.shape_cast %219 : vector<32xf32> to vector<32x1xf32>
    %cst_90 = arith.constant 3.200000e+01 : f32
    %221 = vector.broadcast %cst_90 : f32 to vector<32x1xf32>
    %222 = arith.divf %220, %221 : vector<32x1xf32>
    %223 = vector.broadcast %222 : vector<32x1xf32> to vector<32x32xf32>
    %224 = arith.subf %216, %223 : vector<32x32xf32>
    %225 = arith.mulf %224, %224 : vector<32x32xf32>
    %cst_91 = arith.constant dense<0.000000e+00> : vector<32xf32>
    %226 = vector.multi_reduction <add>, %225, %cst_91 [1] : vector<32x32xf32> to vector<32xf32>
    %227 = vector.shape_cast %226 : vector<32xf32> to vector<32x1xf32>
    %cst_92 = arith.constant 3.200000e+01 : f32
    %228 = vector.broadcast %cst_92 : f32 to vector<32x1xf32>
    %229 = arith.divf %227, %228 : vector<32x1xf32>
    %230 = vector.broadcast %222 : vector<32x1xf32> to vector<32x32xf32>
    %231 = arith.subf %216, %230 : vector<32x32xf32>
    %cst_93 = arith.constant 9.99999974E-6 : f32
    %232 = vector.broadcast %cst_93 : f32 to vector<32x1xf32>
    %233 = arith.addf %229, %232 : vector<32x1xf32>
    %234 = math.rsqrt %233 : vector<32x1xf32>
    %235 = vector.broadcast %234 : vector<32x1xf32> to vector<32x32xf32>
    %236 = arith.mulf %231, %235 : vector<32x32xf32>
    %237 = vector.broadcast %217 : vector<1x32xf32> to vector<32x32xf32>
    %238 = arith.mulf %236, %237 : vector<32x32xf32>
    %239 = vector.broadcast %218 : vector<1x32xf32> to vector<32x32xf32>
    %240 = arith.addf %238, %239 : vector<32x32xf32>
    %cst_94 = arith.constant dense<0.000000e+00> : vector<32x64xf32>
    %241 = tpu.matmul %240, %15, %cst_94 {dimension_numbers = #tpu.dot_dimension_numbers<[1], [0], [0], [1], [0, 0, 1, 1], [], []>} : vector<32x32xf32>, vector<32x64xf32>, vector<32x64xf32> -> vector<32x64xf32>
    %242 = vector.broadcast %17 : vector<1x64xf32> to vector<32x64xf32>
    %243 = arith.addf %241, %242 : vector<32x64xf32>
    %cst_95 = arith.constant 0.000000e+00 : f32
    %244 = vector.broadcast %cst_95 : f32 to vector<32x64xf32>
    %245 = arith.maximumf %243, %244 : vector<32x64xf32>
    %cst_96 = arith.constant dense<0.000000e+00> : vector<32x32xf32>
    %246 = tpu.matmul %245, %19, %cst_96 {dimension_numbers = #tpu.dot_dimension_numbers<[1], [0], [0], [1], [0, 0, 1, 1], [], []>} : vector<32x64xf32>, vector<64x32xf32>, vector<32x32xf32> -> vector<32x32xf32>
    %247 = vector.broadcast %21 : vector<1x32xf32> to vector<32x32xf32>
    %248 = arith.addf %246, %247 : vector<32x32xf32>
    %249 = arith.addf %240, %248 : vector<32x32xf32>
    %250 = vector.extract_strided_slice %11 {offsets = [1, 0], sizes = [1, 32], strides = [1, 1]} : vector<2x32xf32> to vector<1x32xf32>
    %251 = vector.extract_strided_slice %13 {offsets = [1, 0], sizes = [1, 32], strides = [1, 1]} : vector<2x32xf32> to vector<1x32xf32>
    %cst_97 = arith.constant dense<0.000000e+00> : vector<32xf32>
    %252 = vector.multi_reduction <add>, %249, %cst_97 [1] : vector<32x32xf32> to vector<32xf32>
    %253 = vector.shape_cast %252 : vector<32xf32> to vector<32x1xf32>
    %cst_98 = arith.constant 3.200000e+01 : f32
    %254 = vector.broadcast %cst_98 : f32 to vector<32x1xf32>
    %255 = arith.divf %253, %254 : vector<32x1xf32>
    %256 = vector.broadcast %255 : vector<32x1xf32> to vector<32x32xf32>
    %257 = arith.subf %249, %256 : vector<32x32xf32>
    %258 = arith.mulf %257, %257 : vector<32x32xf32>
    %cst_99 = arith.constant dense<0.000000e+00> : vector<32xf32>
    %259 = vector.multi_reduction <add>, %258, %cst_99 [1] : vector<32x32xf32> to vector<32xf32>
    %260 = vector.shape_cast %259 : vector<32xf32> to vector<32x1xf32>
    %cst_100 = arith.constant 3.200000e+01 : f32
    %261 = vector.broadcast %cst_100 : f32 to vector<32x1xf32>
    %262 = arith.divf %260, %261 : vector<32x1xf32>
    %263 = vector.broadcast %255 : vector<32x1xf32> to vector<32x32xf32>
    %264 = arith.subf %249, %263 : vector<32x32xf32>
    %cst_101 = arith.constant 9.99999974E-6 : f32
    %265 = vector.broadcast %cst_101 : f32 to vector<32x1xf32>
    %266 = arith.addf %262, %265 : vector<32x1xf32>
    %267 = math.rsqrt %266 : vector<32x1xf32>
    %268 = vector.broadcast %267 : vector<32x1xf32> to vector<32x32xf32>
    %269 = arith.mulf %264, %268 : vector<32x32xf32>
    %270 = vector.broadcast %250 : vector<1x32xf32> to vector<32x32xf32>
    %271 = arith.mulf %269, %270 : vector<32x32xf32>
    %272 = vector.broadcast %251 : vector<1x32xf32> to vector<32x32xf32>
    %273 = arith.addf %271, %272 : vector<32x32xf32>
    %c0_102 = arith.constant 0 : index
    %c0_103 = arith.constant 0 : index
    %274 = vector.load %arg13[%c0_102, %c0_103] : memref<32x32xf32, #tpu.memory_space<vmem>>, vector<32x32xf32>
    tpu.vector_store %arg13[%c0_102, %c0_103], %273 {strides = array<i32>} : memref<32x32xf32, #tpu.memory_space<vmem>>, vector<32x32xf32>,
    %c0_104 = arith.constant 0 : index
    %c0_105 = arith.constant 0 : index
    %275 = vector.load %arg12[%c0_104, %c0_105] : memref<32x32xf32, #tpu.memory_space<vmem>>, vector<32x32xf32>
    tpu.vector_store %arg12[%c0_104, %c0_105], %273 {strides = array<i32>} : memref<32x32xf32, #tpu.memory_space<vmem>>, vector<32x32xf32>,
    return
  }
  func.func @transform_0(%arg0: i32) -> (i32, i32) {
    %c0_i32 = arith.constant 0 : i32
    %c0_i32_0 = arith.constant 0 : i32
    %c0_i32_1 = arith.constant 0 : i32
    return %c0_i32, %c0_i32_0 : i32, i32
  }
  func.func @transform_1(%arg0: i32) -> (i32, i32) {
    %c0_i32 = arith.constant 0 : i32
    %c0_i32_0 = arith.constant 0 : i32
    %c0_i32_1 = arith.constant 0 : i32
    return %c0_i32, %c0_i32_0 : i32, i32
  }
  func.func @transform_2(%arg0: i32) -> (i32, i32) {
    %c0_i32 = arith.constant 0 : i32
    %c0_i32_0 = arith.constant 0 : i32
    %c0_i32_1 = arith.constant 0 : i32
    return %c0_i32, %c0_i32_0 : i32, i32
  }
  func.func @transform_3(%arg0: i32) -> (i32, i32, i32, i32) {
    %c0_i32 = arith.constant 0 : i32
    %c0_i32_0 = arith.constant 0 : i32
    %c0_i32_1 = arith.constant 0 : i32
    %c0_i32_2 = arith.constant 0 : i32
    return %arg0, %c0_i32, %c0_i32_0, %c0_i32_1 : i32, i32, i32, i32
  }
  func.func @transform_4(%arg0: i32) -> (i32, i32, i32) {
    %c0_i32 = arith.constant 0 : i32
    %c0_i32_0 = arith.constant 0 : i32
    %c0_i32_1 = arith.constant 0 : i32
    return %arg0, %c0_i32, %c0_i32_0 : i32, i32, i32
  }
  func.func @transform_5(%arg0: i32) -> (i32, i32, i32) {
    %c0_i32 = arith.constant 0 : i32
    %c0_i32_0 = arith.constant 0 : i32
    %c0_i32_1 = arith.constant 0 : i32
    return %arg0, %c0_i32, %c0_i32_0 : i32, i32, i32
  }
  func.func @transform_6(%arg0: i32) -> (i32, i32, i32) {
    %c0_i32 = arith.constant 0 : i32
    %c0_i32_0 = arith.constant 0 : i32
    %c0_i32_1 = arith.constant 0 : i32
    return %arg0, %c0_i32, %c0_i32_0 : i32, i32, i32
  }
  func.func @transform_7(%arg0: i32) -> (i32, i32, i32) {
    %c0_i32 = arith.constant 0 : i32
    %c0_i32_0 = arith.constant 0 : i32
    %c0_i32_1 = arith.constant 0 : i32
    return %arg0, %c0_i32, %c0_i32_0 : i32, i32, i32
  }
  func.func @transform_8(%arg0: i32) -> (i32, i32, i32) {
    %c0_i32 = arith.constant 0 : i32
    %c0_i32_0 = arith.constant 0 : i32
    %c0_i32_1 = arith.constant 0 : i32
    return %arg0, %c0_i32, %c0_i32_0 : i32, i32, i32
  }
  func.func @transform_9(%arg0: i32) -> (i32, i32, i32) {
    %c0_i32 = arith.constant 0 : i32
    %c0_i32_0 = arith.constant 0 : i32
    %c0_i32_1 = arith.constant 0 : i32
    return %arg0, %c0_i32, %c0_i32_0 : i32, i32, i32
  }
  func.func @transform_10(%arg0: i32) -> (i32, i32, i32) {
    %c0_i32 = arith.constant 0 : i32
    %c0_i32_0 = arith.constant 0 : i32
    %c0_i32_1 = arith.constant 0 : i32
    return %arg0, %c0_i32, %c0_i32_0 : i32, i32, i32
  }
  func.func @transform_11(%arg0: i32) -> (i32, i32) {
    %c0_i32 = arith.constant 0 : i32
    %c0_i32_0 = arith.constant 0 : i32
    %c0_i32_1 = arith.constant 0 : i32
    return %c0_i32, %c0_i32_0 : i32, i32
  }
}

module attributes {stable_mosaic.version = 11 : i64} {
  func.func @_decoder_stack_kernel(%arg0: i32, %arg1: memref<16x32xf32, #tpu.memory_space<vmem>>, %arg2: memref<16x32xf32, #tpu.memory_space<vmem>>, %arg3: memref<32x32xf32, #tpu.memory_space<vmem>>, %arg4: memref<32x32xf32, #tpu.memory_space<vmem>>, %arg5: memref<2x16xf32, #tpu.memory_space<vmem>>, %arg6: memref<8x8xf32, #tpu.memory_space<vmem>>, %arg7: memref<1x8x32x32xf32, #tpu.memory_space<vmem>>, %arg8: memref<1x8x32xf32, #tpu.memory_space<vmem>>, %arg9: memref<1x3x32xf32, #tpu.memory_space<vmem>>, %arg10: memref<1x3x32xf32, #tpu.memory_space<vmem>>, %arg11: memref<1x32x64xf32, #tpu.memory_space<vmem>>, %arg12: memref<1x1x64xf32, #tpu.memory_space<vmem>>, %arg13: memref<1x64x32xf32, #tpu.memory_space<vmem>>, %arg14: memref<1x1x32xf32, #tpu.memory_space<vmem>>, %arg15: memref<1x32xf32, #tpu.memory_space<vmem>>, %arg16: memref<1x32xf32, #tpu.memory_space<vmem>>, %arg17: memref<1x16x32xf32, #tpu.memory_space<vmem>>, %arg18: memref<16x32xf32, #tpu.memory_space<vmem>>, %arg19: memref<16x32xf32, #tpu.memory_space<vmem>>) attributes {dimension_semantics = [#tpu.dimension_semantics<arbitrary>], iteration_bounds = array<i64: 2>, scalar_prefetch = 0 : i64, scratch_operands = 2 : i64, tpu.core_type = #tpu.core_type<tc>, window_params = [{pipeline_mode = #tpu.pipeline_mode<synchronous>, transform_indices = @transform_0, window_bounds = array<i64: 16, 32>}, {pipeline_mode = #tpu.pipeline_mode<synchronous>, transform_indices = @transform_1, window_bounds = array<i64: 16, 32>}, {pipeline_mode = #tpu.pipeline_mode<synchronous>, transform_indices = @transform_2, window_bounds = array<i64: 32, 32>}, {pipeline_mode = #tpu.pipeline_mode<synchronous>, transform_indices = @transform_3, window_bounds = array<i64: 32, 32>}, {pipeline_mode = #tpu.pipeline_mode<synchronous>, transform_indices = @transform_4, window_bounds = array<i64: 2, 16>}, {pipeline_mode = #tpu.pipeline_mode<synchronous>, transform_indices = @transform_5, window_bounds = array<i64: 8, 8>}, {transform_indices = @transform_6, window_bounds = array<i64: 1, 8, 32, 32>}, {transform_indices = @transform_7, window_bounds = array<i64: 1, 8, 32>}, {transform_indices = @transform_8, window_bounds = array<i64: 1, 3, 32>}, {transform_indices = @transform_9, window_bounds = array<i64: 1, 3, 32>}, {transform_indices = @transform_10, window_bounds = array<i64: 1, 32, 64>}, {transform_indices = @transform_11, window_bounds = array<i64: 1, 1, 64>}, {transform_indices = @transform_12, window_bounds = array<i64: 1, 64, 32>}, {transform_indices = @transform_13, window_bounds = array<i64: 1, 1, 32>}, {pipeline_mode = #tpu.pipeline_mode<synchronous>, transform_indices = @transform_14, window_bounds = array<i64: 1, 32>}, {pipeline_mode = #tpu.pipeline_mode<synchronous>, transform_indices = @transform_15, window_bounds = array<i64: 1, 32>}, {transform_indices = @transform_16, window_bounds = array<i64: 1, 16, 32>}]} {
    %c0_i32 = arith.constant 0 : i32
    %0 = arith.cmpi eq, %arg0, %c0_i32 : i32
    %1 = arith.extui %0 : i1 to i32
    %c0_i32_0 = arith.constant 0 : i32
    %2 = arith.cmpi ne, %1, %c0_i32_0 : i32
    scf.if %2 {
      %c0_189 = arith.constant 0 : index
      %c0_190 = arith.constant 0 : index
      %513 = vector.load %arg1[%c0_189, %c0_190] : memref<16x32xf32, #tpu.memory_space<vmem>>, vector<16x32xf32>
      %c0_191 = arith.constant 0 : index
      %c0_192 = arith.constant 0 : index
      %514 = vector.load %arg18[%c0_191, %c0_192] : memref<16x32xf32, #tpu.memory_space<vmem>>, vector<16x32xf32>
      tpu.vector_store %arg18[%c0_191, %c0_192], %513 {strides = array<i32>} : memref<16x32xf32, #tpu.memory_space<vmem>>, vector<16x32xf32>,
    } else {
    }
    %c0 = arith.constant 0 : index
    %c0_1 = arith.constant 0 : index
    %3 = vector.load %arg18[%c0, %c0_1] : memref<16x32xf32, #tpu.memory_space<vmem>>, vector<16x32xf32>
    %c0_2 = arith.constant 0 : index
    %c0_3 = arith.constant 0 : index
    %4 = vector.load %arg2[%c0_2, %c0_3] : memref<16x32xf32, #tpu.memory_space<vmem>>, vector<16x32xf32>
    %c0_4 = arith.constant 0 : index
    %c0_5 = arith.constant 0 : index
    %5 = vector.load %arg3[%c0_4, %c0_5] : memref<32x32xf32, #tpu.memory_space<vmem>>, vector<32x32xf32>
    %c0_6 = arith.constant 0 : index
    %c0_7 = arith.constant 0 : index
    %6 = vector.load %arg4[%c0_6, %c0_7] : memref<32x32xf32, #tpu.memory_space<vmem>>, vector<32x32xf32>
    %c0_8 = arith.constant 0 : index
    %c0_9 = arith.constant 0 : index
    %7 = vector.load %arg5[%c0_8, %c0_9] : memref<2x16xf32, #tpu.memory_space<vmem>>, vector<2x16xf32>
    %c0_10 = arith.constant 0 : index
    %c0_11 = arith.constant 0 : index
    %8 = vector.load %arg6[%c0_10, %c0_11] : memref<8x8xf32, #tpu.memory_space<vmem>>, vector<8x8xf32>
    %c0_12 = arith.constant 0 : index
    %c0_13 = arith.constant 0 : index
    %c0_14 = arith.constant 0 : index
    %c0_15 = arith.constant 0 : index
    %9 = vector.load %arg7[%c0_12, %c0_13, %c0_14, %c0_15] : memref<1x8x32x32xf32, #tpu.memory_space<vmem>>, vector<1x8x32x32xf32>
    %10 = vector.shape_cast %9 : vector<1x8x32x32xf32> to vector<8x32x32xf32>
    %c0_16 = arith.constant 0 : index
    %c0_17 = arith.constant 0 : index
    %c0_18 = arith.constant 0 : index
    %11 = vector.load %arg8[%c0_16, %c0_17, %c0_18] : memref<1x8x32xf32, #tpu.memory_space<vmem>>, vector<1x8x32xf32>
    %12 = vector.shape_cast %11 : vector<1x8x32xf32> to vector<8x32xf32>
    %c0_19 = arith.constant 0 : index
    %c0_20 = arith.constant 0 : index
    %c0_21 = arith.constant 0 : index
    %13 = vector.load %arg9[%c0_19, %c0_20, %c0_21] : memref<1x3x32xf32, #tpu.memory_space<vmem>>, vector<1x3x32xf32>
    %14 = vector.shape_cast %13 : vector<1x3x32xf32> to vector<3x32xf32>
    %c0_22 = arith.constant 0 : index
    %c0_23 = arith.constant 0 : index
    %c0_24 = arith.constant 0 : index
    %15 = vector.load %arg10[%c0_22, %c0_23, %c0_24] : memref<1x3x32xf32, #tpu.memory_space<vmem>>, vector<1x3x32xf32>
    %16 = vector.shape_cast %15 : vector<1x3x32xf32> to vector<3x32xf32>
    %c0_25 = arith.constant 0 : index
    %c0_26 = arith.constant 0 : index
    %c0_27 = arith.constant 0 : index
    %17 = vector.load %arg11[%c0_25, %c0_26, %c0_27] : memref<1x32x64xf32, #tpu.memory_space<vmem>>, vector<1x32x64xf32>
    %18 = vector.shape_cast %17 : vector<1x32x64xf32> to vector<32x64xf32>
    %c0_28 = arith.constant 0 : index
    %c0_29 = arith.constant 0 : index
    %c0_30 = arith.constant 0 : index
    %19 = vector.load %arg12[%c0_28, %c0_29, %c0_30] : memref<1x1x64xf32, #tpu.memory_space<vmem>>, vector<1x1x64xf32>
    %20 = vector.shape_cast %19 : vector<1x1x64xf32> to vector<1x64xf32>
    %c0_31 = arith.constant 0 : index
    %c0_32 = arith.constant 0 : index
    %c0_33 = arith.constant 0 : index
    %21 = vector.load %arg13[%c0_31, %c0_32, %c0_33] : memref<1x64x32xf32, #tpu.memory_space<vmem>>, vector<1x64x32xf32>
    %22 = vector.shape_cast %21 : vector<1x64x32xf32> to vector<64x32xf32>
    %c0_34 = arith.constant 0 : index
    %c0_35 = arith.constant 0 : index
    %c0_36 = arith.constant 0 : index
    %23 = vector.load %arg14[%c0_34, %c0_35, %c0_36] : memref<1x1x32xf32, #tpu.memory_space<vmem>>, vector<1x1x32xf32>
    %24 = vector.shape_cast %23 : vector<1x1x32xf32> to vector<1x32xf32>
    %25 = arith.addf %3, %4 : vector<16x32xf32>
    %26 = vector.extract_strided_slice %10 {offsets = [0, 0, 0], sizes = [4, 32, 32], strides = [1, 1, 1]} : vector<8x32x32xf32> to vector<4x32x32xf32>
    %27 = vector.extract_strided_slice %12 {offsets = [0, 0], sizes = [4, 32], strides = [1, 1]} : vector<8x32xf32> to vector<4x32xf32>
    %28 = vector.extract_strided_slice %26 {offsets = [0, 0, 0], sizes = [1, 32, 32], strides = [1, 1, 1]} : vector<4x32x32xf32> to vector<1x32x32xf32>
    %29 = vector.shape_cast %28 : vector<1x32x32xf32> to vector<32x32xf32>
    %cst = arith.constant dense<0.000000e+00> : vector<16x32xf32>
    %30 = tpu.matmul %25, %29, %cst {dimension_numbers = #tpu.dot_dimension_numbers<[1], [0], [0], [1], [0, 0, 1, 1], [], []>} : vector<16x32xf32>, vector<32x32xf32>, vector<16x32xf32> -> vector<16x32xf32>
    %31 = vector.extract_strided_slice %27 {offsets = [0, 0], sizes = [1, 32], strides = [1, 1]} : vector<4x32xf32> to vector<1x32xf32>
    %32 = vector.broadcast %31 : vector<1x32xf32> to vector<16x32xf32>
    %33 = arith.addf %30, %32 : vector<16x32xf32>
    %34 = vector.extract_strided_slice %26 {offsets = [1, 0, 0], sizes = [1, 32, 32], strides = [1, 1, 1]} : vector<4x32x32xf32> to vector<1x32x32xf32>
    %35 = vector.shape_cast %34 : vector<1x32x32xf32> to vector<32x32xf32>
    %cst_37 = arith.constant dense<0.000000e+00> : vector<16x32xf32>
    %36 = tpu.matmul %25, %35, %cst_37 {dimension_numbers = #tpu.dot_dimension_numbers<[1], [0], [0], [1], [0, 0, 1, 1], [], []>} : vector<16x32xf32>, vector<32x32xf32>, vector<16x32xf32> -> vector<16x32xf32>
    %37 = vector.extract_strided_slice %27 {offsets = [1, 0], sizes = [1, 32], strides = [1, 1]} : vector<4x32xf32> to vector<1x32xf32>
    %38 = vector.broadcast %37 : vector<1x32xf32> to vector<16x32xf32>
    %39 = arith.addf %36, %38 : vector<16x32xf32>
    %40 = vector.extract_strided_slice %26 {offsets = [2, 0, 0], sizes = [1, 32, 32], strides = [1, 1, 1]} : vector<4x32x32xf32> to vector<1x32x32xf32>
    %41 = vector.shape_cast %40 : vector<1x32x32xf32> to vector<32x32xf32>
    %cst_38 = arith.constant dense<0.000000e+00> : vector<16x32xf32>
    %42 = tpu.matmul %3, %41, %cst_38 {dimension_numbers = #tpu.dot_dimension_numbers<[1], [0], [0], [1], [0, 0, 1, 1], [], []>} : vector<16x32xf32>, vector<32x32xf32>, vector<16x32xf32> -> vector<16x32xf32>
    %43 = vector.extract_strided_slice %27 {offsets = [2, 0], sizes = [1, 32], strides = [1, 1]} : vector<4x32xf32> to vector<1x32xf32>
    %44 = vector.broadcast %43 : vector<1x32xf32> to vector<16x32xf32>
    %45 = arith.addf %42, %44 : vector<16x32xf32>
    %46 = vector.extract_strided_slice %33 {offsets = [0, 0], sizes = [8, 8], strides = [1, 1]} : vector<16x32xf32> to vector<8x8xf32>
    %47 = vector.extract_strided_slice %39 {offsets = [0, 0], sizes = [8, 8], strides = [1, 1]} : vector<16x32xf32> to vector<8x8xf32>
    %cst_39 = arith.constant dense<0.000000e+00> : vector<8x8xf32>
    %48 = tpu.matmul %46, %47, %cst_39 {dimension_numbers = #tpu.dot_dimension_numbers<[1], [1], [0], [0], [0, 0, 1, 0], [], []>} : vector<8x8xf32>, vector<8x8xf32>, vector<8x8xf32> -> vector<8x8xf32>
    %cst_40 = arith.constant 0.353553385 : f32
    %49 = vector.broadcast %cst_40 : f32 to vector<8x8xf32>
    %50 = arith.mulf %48, %49 : vector<8x8xf32>
    %51 = arith.addf %50, %8 : vector<8x8xf32>
    %cst_41 = arith.constant dense<0xFF800000> : vector<8xf32>
    %52 = vector.multi_reduction <maximumf>, %51, %cst_41 [1] : vector<8x8xf32> to vector<8xf32>
    %53 = vector.shape_cast %52 : vector<8xf32> to vector<8x1xf32>
    %54 = vector.broadcast %53 : vector<8x1xf32> to vector<8x8xf32>
    %55 = arith.subf %51, %54 : vector<8x8xf32>
    %56 = math.exp %55 : vector<8x8xf32>
    %cst_42 = arith.constant dense<0.000000e+00> : vector<8xf32>
    %57 = vector.multi_reduction <add>, %56, %cst_42 [1] : vector<8x8xf32> to vector<8xf32>
    %58 = vector.shape_cast %57 : vector<8xf32> to vector<8x1xf32>
    %59 = tpu.reciprocal %58 {approx = true} : vector<8x1xf32> -> vector<8x1xf32>
    %60 = vector.broadcast %59 : vector<8x1xf32> to vector<8x8xf32>
    %61 = arith.mulf %56, %60 : vector<8x8xf32>
    %62 = vector.extract_strided_slice %45 {offsets = [0, 0], sizes = [8, 8], strides = [1, 1]} : vector<16x32xf32> to vector<8x8xf32>
    %cst_43 = arith.constant dense<0.000000e+00> : vector<8x8xf32>
    %63 = tpu.matmul %61, %62, %cst_43 {dimension_numbers = #tpu.dot_dimension_numbers<[1], [0], [0], [1], [0, 0, 1, 1], [], []>} : vector<8x8xf32>, vector<8x8xf32>, vector<8x8xf32> -> vector<8x8xf32>
    %c0_44 = arith.constant 0 : index
    %c0_45 = arith.constant 0 : index
    %64 = vector.load %arg19[%c0_44, %c0_45] : memref<16x32xf32, #tpu.memory_space<vmem>>, vector<8x8xf32>
    tpu.vector_store %arg19[%c0_44, %c0_45], %63 {strides = array<i32>} : memref<16x32xf32, #tpu.memory_space<vmem>>, vector<8x8xf32>,
    %65 = vector.extract_strided_slice %33 {offsets = [0, 8], sizes = [8, 8], strides = [1, 1]} : vector<16x32xf32> to vector<8x8xf32>
    %66 = vector.extract_strided_slice %39 {offsets = [0, 8], sizes = [8, 8], strides = [1, 1]} : vector<16x32xf32> to vector<8x8xf32>
    %cst_46 = arith.constant dense<0.000000e+00> : vector<8x8xf32>
    %67 = tpu.matmul %65, %66, %cst_46 {dimension_numbers = #tpu.dot_dimension_numbers<[1], [1], [0], [0], [0, 0, 1, 0], [], []>} : vector<8x8xf32>, vector<8x8xf32>, vector<8x8xf32> -> vector<8x8xf32>
    %cst_47 = arith.constant 0.353553385 : f32
    %68 = vector.broadcast %cst_47 : f32 to vector<8x8xf32>
    %69 = arith.mulf %67, %68 : vector<8x8xf32>
    %70 = arith.addf %69, %8 : vector<8x8xf32>
    %cst_48 = arith.constant dense<0xFF800000> : vector<8xf32>
    %71 = vector.multi_reduction <maximumf>, %70, %cst_48 [1] : vector<8x8xf32> to vector<8xf32>
    %72 = vector.shape_cast %71 : vector<8xf32> to vector<8x1xf32>
    %73 = vector.broadcast %72 : vector<8x1xf32> to vector<8x8xf32>
    %74 = arith.subf %70, %73 : vector<8x8xf32>
    %75 = math.exp %74 : vector<8x8xf32>
    %cst_49 = arith.constant dense<0.000000e+00> : vector<8xf32>
    %76 = vector.multi_reduction <add>, %75, %cst_49 [1] : vector<8x8xf32> to vector<8xf32>
    %77 = vector.shape_cast %76 : vector<8xf32> to vector<8x1xf32>
    %78 = tpu.reciprocal %77 {approx = true} : vector<8x1xf32> -> vector<8x1xf32>
    %79 = vector.broadcast %78 : vector<8x1xf32> to vector<8x8xf32>
    %80 = arith.mulf %75, %79 : vector<8x8xf32>
    %81 = vector.extract_strided_slice %45 {offsets = [0, 8], sizes = [8, 8], strides = [1, 1]} : vector<16x32xf32> to vector<8x8xf32>
    %cst_50 = arith.constant dense<0.000000e+00> : vector<8x8xf32>
    %82 = tpu.matmul %80, %81, %cst_50 {dimension_numbers = #tpu.dot_dimension_numbers<[1], [0], [0], [1], [0, 0, 1, 1], [], []>} : vector<8x8xf32>, vector<8x8xf32>, vector<8x8xf32> -> vector<8x8xf32>
    %c0_51 = arith.constant 0 : index
    %c8 = arith.constant 8 : index
    %83 = vector.load %arg19[%c0_51, %c8] : memref<16x32xf32, #tpu.memory_space<vmem>>, vector<8x8xf32>
    tpu.vector_store %arg19[%c0_51, %c8], %82 {strides = array<i32>} : memref<16x32xf32, #tpu.memory_space<vmem>>, vector<8x8xf32>,
    %84 = vector.extract_strided_slice %33 {offsets = [0, 16], sizes = [8, 8], strides = [1, 1]} : vector<16x32xf32> to vector<8x8xf32>
    %85 = vector.extract_strided_slice %39 {offsets = [0, 16], sizes = [8, 8], strides = [1, 1]} : vector<16x32xf32> to vector<8x8xf32>
    %cst_52 = arith.constant dense<0.000000e+00> : vector<8x8xf32>
    %86 = tpu.matmul %84, %85, %cst_52 {dimension_numbers = #tpu.dot_dimension_numbers<[1], [1], [0], [0], [0, 0, 1, 0], [], []>} : vector<8x8xf32>, vector<8x8xf32>, vector<8x8xf32> -> vector<8x8xf32>
    %cst_53 = arith.constant 0.353553385 : f32
    %87 = vector.broadcast %cst_53 : f32 to vector<8x8xf32>
    %88 = arith.mulf %86, %87 : vector<8x8xf32>
    %89 = arith.addf %88, %8 : vector<8x8xf32>
    %cst_54 = arith.constant dense<0xFF800000> : vector<8xf32>
    %90 = vector.multi_reduction <maximumf>, %89, %cst_54 [1] : vector<8x8xf32> to vector<8xf32>
    %91 = vector.shape_cast %90 : vector<8xf32> to vector<8x1xf32>
    %92 = vector.broadcast %91 : vector<8x1xf32> to vector<8x8xf32>
    %93 = arith.subf %89, %92 : vector<8x8xf32>
    %94 = math.exp %93 : vector<8x8xf32>
    %cst_55 = arith.constant dense<0.000000e+00> : vector<8xf32>
    %95 = vector.multi_reduction <add>, %94, %cst_55 [1] : vector<8x8xf32> to vector<8xf32>
    %96 = vector.shape_cast %95 : vector<8xf32> to vector<8x1xf32>
    %97 = tpu.reciprocal %96 {approx = true} : vector<8x1xf32> -> vector<8x1xf32>
    %98 = vector.broadcast %97 : vector<8x1xf32> to vector<8x8xf32>
    %99 = arith.mulf %94, %98 : vector<8x8xf32>
    %100 = vector.extract_strided_slice %45 {offsets = [0, 16], sizes = [8, 8], strides = [1, 1]} : vector<16x32xf32> to vector<8x8xf32>
    %cst_56 = arith.constant dense<0.000000e+00> : vector<8x8xf32>
    %101 = tpu.matmul %99, %100, %cst_56 {dimension_numbers = #tpu.dot_dimension_numbers<[1], [0], [0], [1], [0, 0, 1, 1], [], []>} : vector<8x8xf32>, vector<8x8xf32>, vector<8x8xf32> -> vector<8x8xf32>
    %c0_57 = arith.constant 0 : index
    %c16 = arith.constant 16 : index
    %102 = vector.load %arg19[%c0_57, %c16] : memref<16x32xf32, #tpu.memory_space<vmem>>, vector<8x8xf32>
    tpu.vector_store %arg19[%c0_57, %c16], %101 {strides = array<i32>} : memref<16x32xf32, #tpu.memory_space<vmem>>, vector<8x8xf32>,
    %103 = vector.extract_strided_slice %33 {offsets = [0, 24], sizes = [8, 8], strides = [1, 1]} : vector<16x32xf32> to vector<8x8xf32>
    %104 = vector.extract_strided_slice %39 {offsets = [0, 24], sizes = [8, 8], strides = [1, 1]} : vector<16x32xf32> to vector<8x8xf32>
    %cst_58 = arith.constant dense<0.000000e+00> : vector<8x8xf32>
    %105 = tpu.matmul %103, %104, %cst_58 {dimension_numbers = #tpu.dot_dimension_numbers<[1], [1], [0], [0], [0, 0, 1, 0], [], []>} : vector<8x8xf32>, vector<8x8xf32>, vector<8x8xf32> -> vector<8x8xf32>
    %cst_59 = arith.constant 0.353553385 : f32
    %106 = vector.broadcast %cst_59 : f32 to vector<8x8xf32>
    %107 = arith.mulf %105, %106 : vector<8x8xf32>
    %108 = arith.addf %107, %8 : vector<8x8xf32>
    %cst_60 = arith.constant dense<0xFF800000> : vector<8xf32>
    %109 = vector.multi_reduction <maximumf>, %108, %cst_60 [1] : vector<8x8xf32> to vector<8xf32>
    %110 = vector.shape_cast %109 : vector<8xf32> to vector<8x1xf32>
    %111 = vector.broadcast %110 : vector<8x1xf32> to vector<8x8xf32>
    %112 = arith.subf %108, %111 : vector<8x8xf32>
    %113 = math.exp %112 : vector<8x8xf32>
    %cst_61 = arith.constant dense<0.000000e+00> : vector<8xf32>
    %114 = vector.multi_reduction <add>, %113, %cst_61 [1] : vector<8x8xf32> to vector<8xf32>
    %115 = vector.shape_cast %114 : vector<8xf32> to vector<8x1xf32>
    %116 = tpu.reciprocal %115 {approx = true} : vector<8x1xf32> -> vector<8x1xf32>
    %117 = vector.broadcast %116 : vector<8x1xf32> to vector<8x8xf32>
    %118 = arith.mulf %113, %117 : vector<8x8xf32>
    %119 = vector.extract_strided_slice %45 {offsets = [0, 24], sizes = [8, 8], strides = [1, 1]} : vector<16x32xf32> to vector<8x8xf32>
    %cst_62 = arith.constant dense<0.000000e+00> : vector<8x8xf32>
    %120 = tpu.matmul %118, %119, %cst_62 {dimension_numbers = #tpu.dot_dimension_numbers<[1], [0], [0], [1], [0, 0, 1, 1], [], []>} : vector<8x8xf32>, vector<8x8xf32>, vector<8x8xf32> -> vector<8x8xf32>
    %c0_63 = arith.constant 0 : index
    %c24 = arith.constant 24 : index
    %121 = vector.load %arg19[%c0_63, %c24] : memref<16x32xf32, #tpu.memory_space<vmem>>, vector<8x8xf32>
    tpu.vector_store %arg19[%c0_63, %c24], %120 {strides = array<i32>} : memref<16x32xf32, #tpu.memory_space<vmem>>, vector<8x8xf32>,
    %122 = vector.extract_strided_slice %33 {offsets = [8, 0], sizes = [8, 8], strides = [1, 1]} : vector<16x32xf32> to vector<8x8xf32>
    %123 = vector.extract_strided_slice %39 {offsets = [8, 0], sizes = [8, 8], strides = [1, 1]} : vector<16x32xf32> to vector<8x8xf32>
    %cst_64 = arith.constant dense<0.000000e+00> : vector<8x8xf32>
    %124 = tpu.matmul %122, %123, %cst_64 {dimension_numbers = #tpu.dot_dimension_numbers<[1], [1], [0], [0], [0, 0, 1, 0], [], []>} : vector<8x8xf32>, vector<8x8xf32>, vector<8x8xf32> -> vector<8x8xf32>
    %cst_65 = arith.constant 0.353553385 : f32
    %125 = vector.broadcast %cst_65 : f32 to vector<8x8xf32>
    %126 = arith.mulf %124, %125 : vector<8x8xf32>
    %127 = arith.addf %126, %8 : vector<8x8xf32>
    %cst_66 = arith.constant dense<0xFF800000> : vector<8xf32>
    %128 = vector.multi_reduction <maximumf>, %127, %cst_66 [1] : vector<8x8xf32> to vector<8xf32>
    %129 = vector.shape_cast %128 : vector<8xf32> to vector<8x1xf32>
    %130 = vector.broadcast %129 : vector<8x1xf32> to vector<8x8xf32>
    %131 = arith.subf %127, %130 : vector<8x8xf32>
    %132 = math.exp %131 : vector<8x8xf32>
    %cst_67 = arith.constant dense<0.000000e+00> : vector<8xf32>
    %133 = vector.multi_reduction <add>, %132, %cst_67 [1] : vector<8x8xf32> to vector<8xf32>
    %134 = vector.shape_cast %133 : vector<8xf32> to vector<8x1xf32>
    %135 = tpu.reciprocal %134 {approx = true} : vector<8x1xf32> -> vector<8x1xf32>
    %136 = vector.broadcast %135 : vector<8x1xf32> to vector<8x8xf32>
    %137 = arith.mulf %132, %136 : vector<8x8xf32>
    %138 = vector.extract_strided_slice %45 {offsets = [8, 0], sizes = [8, 8], strides = [1, 1]} : vector<16x32xf32> to vector<8x8xf32>
    %cst_68 = arith.constant dense<0.000000e+00> : vector<8x8xf32>
    %139 = tpu.matmul %137, %138, %cst_68 {dimension_numbers = #tpu.dot_dimension_numbers<[1], [0], [0], [1], [0, 0, 1, 1], [], []>} : vector<8x8xf32>, vector<8x8xf32>, vector<8x8xf32> -> vector<8x8xf32>
    %c8_69 = arith.constant 8 : index
    %c0_70 = arith.constant 0 : index
    %140 = vector.load %arg19[%c8_69, %c0_70] : memref<16x32xf32, #tpu.memory_space<vmem>>, vector<8x8xf32>
    tpu.vector_store %arg19[%c8_69, %c0_70], %139 {strides = array<i32>} : memref<16x32xf32, #tpu.memory_space<vmem>>, vector<8x8xf32>,
    %141 = vector.extract_strided_slice %33 {offsets = [8, 8], sizes = [8, 8], strides = [1, 1]} : vector<16x32xf32> to vector<8x8xf32>
    %142 = vector.extract_strided_slice %39 {offsets = [8, 8], sizes = [8, 8], strides = [1, 1]} : vector<16x32xf32> to vector<8x8xf32>
    %cst_71 = arith.constant dense<0.000000e+00> : vector<8x8xf32>
    %143 = tpu.matmul %141, %142, %cst_71 {dimension_numbers = #tpu.dot_dimension_numbers<[1], [1], [0], [0], [0, 0, 1, 0], [], []>} : vector<8x8xf32>, vector<8x8xf32>, vector<8x8xf32> -> vector<8x8xf32>
    %cst_72 = arith.constant 0.353553385 : f32
    %144 = vector.broadcast %cst_72 : f32 to vector<8x8xf32>
    %145 = arith.mulf %143, %144 : vector<8x8xf32>
    %146 = arith.addf %145, %8 : vector<8x8xf32>
    %cst_73 = arith.constant dense<0xFF800000> : vector<8xf32>
    %147 = vector.multi_reduction <maximumf>, %146, %cst_73 [1] : vector<8x8xf32> to vector<8xf32>
    %148 = vector.shape_cast %147 : vector<8xf32> to vector<8x1xf32>
    %149 = vector.broadcast %148 : vector<8x1xf32> to vector<8x8xf32>
    %150 = arith.subf %146, %149 : vector<8x8xf32>
    %151 = math.exp %150 : vector<8x8xf32>
    %cst_74 = arith.constant dense<0.000000e+00> : vector<8xf32>
    %152 = vector.multi_reduction <add>, %151, %cst_74 [1] : vector<8x8xf32> to vector<8xf32>
    %153 = vector.shape_cast %152 : vector<8xf32> to vector<8x1xf32>
    %154 = tpu.reciprocal %153 {approx = true} : vector<8x1xf32> -> vector<8x1xf32>
    %155 = vector.broadcast %154 : vector<8x1xf32> to vector<8x8xf32>
    %156 = arith.mulf %151, %155 : vector<8x8xf32>
    %157 = vector.extract_strided_slice %45 {offsets = [8, 8], sizes = [8, 8], strides = [1, 1]} : vector<16x32xf32> to vector<8x8xf32>
    %cst_75 = arith.constant dense<0.000000e+00> : vector<8x8xf32>
    %158 = tpu.matmul %156, %157, %cst_75 {dimension_numbers = #tpu.dot_dimension_numbers<[1], [0], [0], [1], [0, 0, 1, 1], [], []>} : vector<8x8xf32>, vector<8x8xf32>, vector<8x8xf32> -> vector<8x8xf32>
    %c8_76 = arith.constant 8 : index
    %c8_77 = arith.constant 8 : index
    %159 = vector.load %arg19[%c8_76, %c8_77] : memref<16x32xf32, #tpu.memory_space<vmem>>, vector<8x8xf32>
    tpu.vector_store %arg19[%c8_76, %c8_77], %158 {strides = array<i32>} : memref<16x32xf32, #tpu.memory_space<vmem>>, vector<8x8xf32>,
    %160 = vector.extract_strided_slice %33 {offsets = [8, 16], sizes = [8, 8], strides = [1, 1]} : vector<16x32xf32> to vector<8x8xf32>
    %161 = vector.extract_strided_slice %39 {offsets = [8, 16], sizes = [8, 8], strides = [1, 1]} : vector<16x32xf32> to vector<8x8xf32>
    %cst_78 = arith.constant dense<0.000000e+00> : vector<8x8xf32>
    %162 = tpu.matmul %160, %161, %cst_78 {dimension_numbers = #tpu.dot_dimension_numbers<[1], [1], [0], [0], [0, 0, 1, 0], [], []>} : vector<8x8xf32>, vector<8x8xf32>, vector<8x8xf32> -> vector<8x8xf32>
    %cst_79 = arith.constant 0.353553385 : f32
    %163 = vector.broadcast %cst_79 : f32 to vector<8x8xf32>
    %164 = arith.mulf %162, %163 : vector<8x8xf32>
    %165 = arith.addf %164, %8 : vector<8x8xf32>
    %cst_80 = arith.constant dense<0xFF800000> : vector<8xf32>
    %166 = vector.multi_reduction <maximumf>, %165, %cst_80 [1] : vector<8x8xf32> to vector<8xf32>
    %167 = vector.shape_cast %166 : vector<8xf32> to vector<8x1xf32>
    %168 = vector.broadcast %167 : vector<8x1xf32> to vector<8x8xf32>
    %169 = arith.subf %165, %168 : vector<8x8xf32>
    %170 = math.exp %169 : vector<8x8xf32>
    %cst_81 = arith.constant dense<0.000000e+00> : vector<8xf32>
    %171 = vector.multi_reduction <add>, %170, %cst_81 [1] : vector<8x8xf32> to vector<8xf32>
    %172 = vector.shape_cast %171 : vector<8xf32> to vector<8x1xf32>
    %173 = tpu.reciprocal %172 {approx = true} : vector<8x1xf32> -> vector<8x1xf32>
    %174 = vector.broadcast %173 : vector<8x1xf32> to vector<8x8xf32>
    %175 = arith.mulf %170, %174 : vector<8x8xf32>
    %176 = vector.extract_strided_slice %45 {offsets = [8, 16], sizes = [8, 8], strides = [1, 1]} : vector<16x32xf32> to vector<8x8xf32>
    %cst_82 = arith.constant dense<0.000000e+00> : vector<8x8xf32>
    %177 = tpu.matmul %175, %176, %cst_82 {dimension_numbers = #tpu.dot_dimension_numbers<[1], [0], [0], [1], [0, 0, 1, 1], [], []>} : vector<8x8xf32>, vector<8x8xf32>, vector<8x8xf32> -> vector<8x8xf32>
    %c8_83 = arith.constant 8 : index
    %c16_84 = arith.constant 16 : index
    %178 = vector.load %arg19[%c8_83, %c16_84] : memref<16x32xf32, #tpu.memory_space<vmem>>, vector<8x8xf32>
    tpu.vector_store %arg19[%c8_83, %c16_84], %177 {strides = array<i32>} : memref<16x32xf32, #tpu.memory_space<vmem>>, vector<8x8xf32>,
    %179 = vector.extract_strided_slice %33 {offsets = [8, 24], sizes = [8, 8], strides = [1, 1]} : vector<16x32xf32> to vector<8x8xf32>
    %180 = vector.extract_strided_slice %39 {offsets = [8, 24], sizes = [8, 8], strides = [1, 1]} : vector<16x32xf32> to vector<8x8xf32>
    %cst_85 = arith.constant dense<0.000000e+00> : vector<8x8xf32>
    %181 = tpu.matmul %179, %180, %cst_85 {dimension_numbers = #tpu.dot_dimension_numbers<[1], [1], [0], [0], [0, 0, 1, 0], [], []>} : vector<8x8xf32>, vector<8x8xf32>, vector<8x8xf32> -> vector<8x8xf32>
    %cst_86 = arith.constant 0.353553385 : f32
    %182 = vector.broadcast %cst_86 : f32 to vector<8x8xf32>
    %183 = arith.mulf %181, %182 : vector<8x8xf32>
    %184 = arith.addf %183, %8 : vector<8x8xf32>
    %cst_87 = arith.constant dense<0xFF800000> : vector<8xf32>
    %185 = vector.multi_reduction <maximumf>, %184, %cst_87 [1] : vector<8x8xf32> to vector<8xf32>
    %186 = vector.shape_cast %185 : vector<8xf32> to vector<8x1xf32>
    %187 = vector.broadcast %186 : vector<8x1xf32> to vector<8x8xf32>
    %188 = arith.subf %184, %187 : vector<8x8xf32>
    %189 = math.exp %188 : vector<8x8xf32>
    %cst_88 = arith.constant dense<0.000000e+00> : vector<8xf32>
    %190 = vector.multi_reduction <add>, %189, %cst_88 [1] : vector<8x8xf32> to vector<8xf32>
    %191 = vector.shape_cast %190 : vector<8xf32> to vector<8x1xf32>
    %192 = tpu.reciprocal %191 {approx = true} : vector<8x1xf32> -> vector<8x1xf32>
    %193 = vector.broadcast %192 : vector<8x1xf32> to vector<8x8xf32>
    %194 = arith.mulf %189, %193 : vector<8x8xf32>
    %195 = vector.extract_strided_slice %45 {offsets = [8, 24], sizes = [8, 8], strides = [1, 1]} : vector<16x32xf32> to vector<8x8xf32>
    %cst_89 = arith.constant dense<0.000000e+00> : vector<8x8xf32>
    %196 = tpu.matmul %194, %195, %cst_89 {dimension_numbers = #tpu.dot_dimension_numbers<[1], [0], [0], [1], [0, 0, 1, 1], [], []>} : vector<8x8xf32>, vector<8x8xf32>, vector<8x8xf32> -> vector<8x8xf32>
    %c8_90 = arith.constant 8 : index
    %c24_91 = arith.constant 24 : index
    %197 = vector.load %arg19[%c8_90, %c24_91] : memref<16x32xf32, #tpu.memory_space<vmem>>, vector<8x8xf32>
    tpu.vector_store %arg19[%c8_90, %c24_91], %196 {strides = array<i32>} : memref<16x32xf32, #tpu.memory_space<vmem>>, vector<8x8xf32>,
    %c0_92 = arith.constant 0 : index
    %c0_93 = arith.constant 0 : index
    %198 = vector.load %arg19[%c0_92, %c0_93] : memref<16x32xf32, #tpu.memory_space<vmem>>, vector<16x32xf32>
    %199 = vector.extract_strided_slice %26 {offsets = [3, 0, 0], sizes = [1, 32, 32], strides = [1, 1, 1]} : vector<4x32x32xf32> to vector<1x32x32xf32>
    %200 = vector.shape_cast %199 : vector<1x32x32xf32> to vector<32x32xf32>
    %cst_94 = arith.constant dense<0.000000e+00> : vector<16x32xf32>
    %201 = tpu.matmul %198, %200, %cst_94 {dimension_numbers = #tpu.dot_dimension_numbers<[1], [0], [0], [1], [0, 0, 1, 1], [], []>} : vector<16x32xf32>, vector<32x32xf32>, vector<16x32xf32> -> vector<16x32xf32>
    %202 = vector.extract_strided_slice %27 {offsets = [3, 0], sizes = [1, 32], strides = [1, 1]} : vector<4x32xf32> to vector<1x32xf32>
    %203 = vector.broadcast %202 : vector<1x32xf32> to vector<16x32xf32>
    %204 = arith.addf %201, %203 : vector<16x32xf32>
    %205 = arith.addf %3, %204 : vector<16x32xf32>
    %206 = vector.extract_strided_slice %14 {offsets = [0, 0], sizes = [1, 32], strides = [1, 1]} : vector<3x32xf32> to vector<1x32xf32>
    %207 = vector.extract_strided_slice %16 {offsets = [0, 0], sizes = [1, 32], strides = [1, 1]} : vector<3x32xf32> to vector<1x32xf32>
    %cst_95 = arith.constant dense<0.000000e+00> : vector<16xf32>
    %208 = vector.multi_reduction <add>, %205, %cst_95 [1] : vector<16x32xf32> to vector<16xf32>
    %209 = vector.shape_cast %208 : vector<16xf32> to vector<16x1xf32>
    %cst_96 = arith.constant 3.200000e+01 : f32
    %210 = vector.broadcast %cst_96 : f32 to vector<16x1xf32>
    %211 = arith.divf %209, %210 : vector<16x1xf32>
    %212 = vector.broadcast %211 : vector<16x1xf32> to vector<16x32xf32>
    %213 = arith.subf %205, %212 : vector<16x32xf32>
    %214 = arith.mulf %213, %213 : vector<16x32xf32>
    %cst_97 = arith.constant dense<0.000000e+00> : vector<16xf32>
    %215 = vector.multi_reduction <add>, %214, %cst_97 [1] : vector<16x32xf32> to vector<16xf32>
    %216 = vector.shape_cast %215 : vector<16xf32> to vector<16x1xf32>
    %cst_98 = arith.constant 3.200000e+01 : f32
    %217 = vector.broadcast %cst_98 : f32 to vector<16x1xf32>
    %218 = arith.divf %216, %217 : vector<16x1xf32>
    %219 = vector.broadcast %211 : vector<16x1xf32> to vector<16x32xf32>
    %220 = arith.subf %205, %219 : vector<16x32xf32>
    %cst_99 = arith.constant 9.99999974E-6 : f32
    %221 = vector.broadcast %cst_99 : f32 to vector<16x1xf32>
    %222 = arith.addf %218, %221 : vector<16x1xf32>
    %223 = math.rsqrt %222 : vector<16x1xf32>
    %224 = vector.broadcast %223 : vector<16x1xf32> to vector<16x32xf32>
    %225 = arith.mulf %220, %224 : vector<16x32xf32>
    %226 = vector.broadcast %206 : vector<1x32xf32> to vector<16x32xf32>
    %227 = arith.mulf %225, %226 : vector<16x32xf32>
    %228 = vector.broadcast %207 : vector<1x32xf32> to vector<16x32xf32>
    %229 = arith.addf %227, %228 : vector<16x32xf32>
    %230 = arith.addf %229, %4 : vector<16x32xf32>
    %231 = arith.addf %5, %6 : vector<32x32xf32>
    %232 = vector.extract_strided_slice %10 {offsets = [4, 0, 0], sizes = [4, 32, 32], strides = [1, 1, 1]} : vector<8x32x32xf32> to vector<4x32x32xf32>
    %233 = vector.extract_strided_slice %12 {offsets = [4, 0], sizes = [4, 32], strides = [1, 1]} : vector<8x32xf32> to vector<4x32xf32>
    %234 = vector.extract_strided_slice %232 {offsets = [0, 0, 0], sizes = [1, 32, 32], strides = [1, 1, 1]} : vector<4x32x32xf32> to vector<1x32x32xf32>
    %235 = vector.shape_cast %234 : vector<1x32x32xf32> to vector<32x32xf32>
    %cst_100 = arith.constant dense<0.000000e+00> : vector<16x32xf32>
    %236 = tpu.matmul %230, %235, %cst_100 {dimension_numbers = #tpu.dot_dimension_numbers<[1], [0], [0], [1], [0, 0, 1, 1], [], []>} : vector<16x32xf32>, vector<32x32xf32>, vector<16x32xf32> -> vector<16x32xf32>
    %237 = vector.extract_strided_slice %233 {offsets = [0, 0], sizes = [1, 32], strides = [1, 1]} : vector<4x32xf32> to vector<1x32xf32>
    %238 = vector.broadcast %237 : vector<1x32xf32> to vector<16x32xf32>
    %239 = arith.addf %236, %238 : vector<16x32xf32>
    %240 = vector.extract_strided_slice %232 {offsets = [1, 0, 0], sizes = [1, 32, 32], strides = [1, 1, 1]} : vector<4x32x32xf32> to vector<1x32x32xf32>
    %241 = vector.shape_cast %240 : vector<1x32x32xf32> to vector<32x32xf32>
    %cst_101 = arith.constant dense<0.000000e+00> : vector<32x32xf32>
    %242 = tpu.matmul %231, %241, %cst_101 {dimension_numbers = #tpu.dot_dimension_numbers<[1], [0], [0], [1], [0, 0, 1, 1], [], []>} : vector<32x32xf32>, vector<32x32xf32>, vector<32x32xf32> -> vector<32x32xf32>
    %243 = vector.extract_strided_slice %233 {offsets = [1, 0], sizes = [1, 32], strides = [1, 1]} : vector<4x32xf32> to vector<1x32xf32>
    %244 = vector.broadcast %243 : vector<1x32xf32> to vector<32x32xf32>
    %245 = arith.addf %242, %244 : vector<32x32xf32>
    %246 = vector.extract_strided_slice %232 {offsets = [2, 0, 0], sizes = [1, 32, 32], strides = [1, 1, 1]} : vector<4x32x32xf32> to vector<1x32x32xf32>
    %247 = vector.shape_cast %246 : vector<1x32x32xf32> to vector<32x32xf32>
    %cst_102 = arith.constant dense<0.000000e+00> : vector<32x32xf32>
    %248 = tpu.matmul %5, %247, %cst_102 {dimension_numbers = #tpu.dot_dimension_numbers<[1], [0], [0], [1], [0, 0, 1, 1], [], []>} : vector<32x32xf32>, vector<32x32xf32>, vector<32x32xf32> -> vector<32x32xf32>
    %249 = vector.extract_strided_slice %233 {offsets = [2, 0], sizes = [1, 32], strides = [1, 1]} : vector<4x32xf32> to vector<1x32xf32>
    %250 = vector.broadcast %249 : vector<1x32xf32> to vector<32x32xf32>
    %251 = arith.addf %248, %250 : vector<32x32xf32>
    %252 = vector.extract_strided_slice %239 {offsets = [0, 0], sizes = [8, 8], strides = [1, 1]} : vector<16x32xf32> to vector<8x8xf32>
    %253 = vector.extract_strided_slice %245 {offsets = [0, 0], sizes = [16, 8], strides = [1, 1]} : vector<32x32xf32> to vector<16x8xf32>
    %cst_103 = arith.constant dense<0.000000e+00> : vector<8x16xf32>
    %254 = tpu.matmul %252, %253, %cst_103 {dimension_numbers = #tpu.dot_dimension_numbers<[1], [1], [0], [0], [0, 0, 1, 0], [], []>} : vector<8x8xf32>, vector<16x8xf32>, vector<8x16xf32> -> vector<8x16xf32>
    %cst_104 = arith.constant 0.353553385 : f32
    %255 = vector.broadcast %cst_104 : f32 to vector<8x16xf32>
    %256 = arith.mulf %254, %255 : vector<8x16xf32>
    %257 = vector.extract_strided_slice %7 {offsets = [0, 0], sizes = [1, 16], strides = [1, 1]} : vector<2x16xf32> to vector<1x16xf32>
    %258 = vector.broadcast %257 : vector<1x16xf32> to vector<8x16xf32>
    %259 = arith.addf %256, %258 : vector<8x16xf32>
    %cst_105 = arith.constant dense<0xFF800000> : vector<8xf32>
    %260 = vector.multi_reduction <maximumf>, %259, %cst_105 [1] : vector<8x16xf32> to vector<8xf32>
    %261 = vector.shape_cast %260 : vector<8xf32> to vector<8x1xf32>
    %262 = vector.broadcast %261 : vector<8x1xf32> to vector<8x16xf32>
    %263 = arith.subf %259, %262 : vector<8x16xf32>
    %264 = math.exp %263 : vector<8x16xf32>
    %cst_106 = arith.constant dense<0.000000e+00> : vector<8xf32>
    %265 = vector.multi_reduction <add>, %264, %cst_106 [1] : vector<8x16xf32> to vector<8xf32>
    %266 = vector.shape_cast %265 : vector<8xf32> to vector<8x1xf32>
    %267 = tpu.reciprocal %266 {approx = true} : vector<8x1xf32> -> vector<8x1xf32>
    %268 = vector.broadcast %267 : vector<8x1xf32> to vector<8x16xf32>
    %269 = arith.mulf %264, %268 : vector<8x16xf32>
    %270 = vector.extract_strided_slice %251 {offsets = [0, 0], sizes = [16, 8], strides = [1, 1]} : vector<32x32xf32> to vector<16x8xf32>
    %cst_107 = arith.constant dense<0.000000e+00> : vector<8x8xf32>
    %271 = tpu.matmul %269, %270, %cst_107 {dimension_numbers = #tpu.dot_dimension_numbers<[1], [0], [0], [1], [0, 0, 1, 1], [], []>} : vector<8x16xf32>, vector<16x8xf32>, vector<8x8xf32> -> vector<8x8xf32>
    %c0_108 = arith.constant 0 : index
    %c0_109 = arith.constant 0 : index
    %272 = vector.load %arg19[%c0_108, %c0_109] : memref<16x32xf32, #tpu.memory_space<vmem>>, vector<8x8xf32>
    tpu.vector_store %arg19[%c0_108, %c0_109], %271 {strides = array<i32>} : memref<16x32xf32, #tpu.memory_space<vmem>>, vector<8x8xf32>,
    %273 = vector.extract_strided_slice %239 {offsets = [0, 8], sizes = [8, 8], strides = [1, 1]} : vector<16x32xf32> to vector<8x8xf32>
    %274 = vector.extract_strided_slice %245 {offsets = [0, 8], sizes = [16, 8], strides = [1, 1]} : vector<32x32xf32> to vector<16x8xf32>
    %cst_110 = arith.constant dense<0.000000e+00> : vector<8x16xf32>
    %275 = tpu.matmul %273, %274, %cst_110 {dimension_numbers = #tpu.dot_dimension_numbers<[1], [1], [0], [0], [0, 0, 1, 0], [], []>} : vector<8x8xf32>, vector<16x8xf32>, vector<8x16xf32> -> vector<8x16xf32>
    %cst_111 = arith.constant 0.353553385 : f32
    %276 = vector.broadcast %cst_111 : f32 to vector<8x16xf32>
    %277 = arith.mulf %275, %276 : vector<8x16xf32>
    %278 = vector.extract_strided_slice %7 {offsets = [0, 0], sizes = [1, 16], strides = [1, 1]} : vector<2x16xf32> to vector<1x16xf32>
    %279 = vector.broadcast %278 : vector<1x16xf32> to vector<8x16xf32>
    %280 = arith.addf %277, %279 : vector<8x16xf32>
    %cst_112 = arith.constant dense<0xFF800000> : vector<8xf32>
    %281 = vector.multi_reduction <maximumf>, %280, %cst_112 [1] : vector<8x16xf32> to vector<8xf32>
    %282 = vector.shape_cast %281 : vector<8xf32> to vector<8x1xf32>
    %283 = vector.broadcast %282 : vector<8x1xf32> to vector<8x16xf32>
    %284 = arith.subf %280, %283 : vector<8x16xf32>
    %285 = math.exp %284 : vector<8x16xf32>
    %cst_113 = arith.constant dense<0.000000e+00> : vector<8xf32>
    %286 = vector.multi_reduction <add>, %285, %cst_113 [1] : vector<8x16xf32> to vector<8xf32>
    %287 = vector.shape_cast %286 : vector<8xf32> to vector<8x1xf32>
    %288 = tpu.reciprocal %287 {approx = true} : vector<8x1xf32> -> vector<8x1xf32>
    %289 = vector.broadcast %288 : vector<8x1xf32> to vector<8x16xf32>
    %290 = arith.mulf %285, %289 : vector<8x16xf32>
    %291 = vector.extract_strided_slice %251 {offsets = [0, 8], sizes = [16, 8], strides = [1, 1]} : vector<32x32xf32> to vector<16x8xf32>
    %cst_114 = arith.constant dense<0.000000e+00> : vector<8x8xf32>
    %292 = tpu.matmul %290, %291, %cst_114 {dimension_numbers = #tpu.dot_dimension_numbers<[1], [0], [0], [1], [0, 0, 1, 1], [], []>} : vector<8x16xf32>, vector<16x8xf32>, vector<8x8xf32> -> vector<8x8xf32>
    %c0_115 = arith.constant 0 : index
    %c8_116 = arith.constant 8 : index
    %293 = vector.load %arg19[%c0_115, %c8_116] : memref<16x32xf32, #tpu.memory_space<vmem>>, vector<8x8xf32>
    tpu.vector_store %arg19[%c0_115, %c8_116], %292 {strides = array<i32>} : memref<16x32xf32, #tpu.memory_space<vmem>>, vector<8x8xf32>,
    %294 = vector.extract_strided_slice %239 {offsets = [0, 16], sizes = [8, 8], strides = [1, 1]} : vector<16x32xf32> to vector<8x8xf32>
    %295 = vector.extract_strided_slice %245 {offsets = [0, 16], sizes = [16, 8], strides = [1, 1]} : vector<32x32xf32> to vector<16x8xf32>
    %cst_117 = arith.constant dense<0.000000e+00> : vector<8x16xf32>
    %296 = tpu.matmul %294, %295, %cst_117 {dimension_numbers = #tpu.dot_dimension_numbers<[1], [1], [0], [0], [0, 0, 1, 0], [], []>} : vector<8x8xf32>, vector<16x8xf32>, vector<8x16xf32> -> vector<8x16xf32>
    %cst_118 = arith.constant 0.353553385 : f32
    %297 = vector.broadcast %cst_118 : f32 to vector<8x16xf32>
    %298 = arith.mulf %296, %297 : vector<8x16xf32>
    %299 = vector.extract_strided_slice %7 {offsets = [0, 0], sizes = [1, 16], strides = [1, 1]} : vector<2x16xf32> to vector<1x16xf32>
    %300 = vector.broadcast %299 : vector<1x16xf32> to vector<8x16xf32>
    %301 = arith.addf %298, %300 : vector<8x16xf32>
    %cst_119 = arith.constant dense<0xFF800000> : vector<8xf32>
    %302 = vector.multi_reduction <maximumf>, %301, %cst_119 [1] : vector<8x16xf32> to vector<8xf32>
    %303 = vector.shape_cast %302 : vector<8xf32> to vector<8x1xf32>
    %304 = vector.broadcast %303 : vector<8x1xf32> to vector<8x16xf32>
    %305 = arith.subf %301, %304 : vector<8x16xf32>
    %306 = math.exp %305 : vector<8x16xf32>
    %cst_120 = arith.constant dense<0.000000e+00> : vector<8xf32>
    %307 = vector.multi_reduction <add>, %306, %cst_120 [1] : vector<8x16xf32> to vector<8xf32>
    %308 = vector.shape_cast %307 : vector<8xf32> to vector<8x1xf32>
    %309 = tpu.reciprocal %308 {approx = true} : vector<8x1xf32> -> vector<8x1xf32>
    %310 = vector.broadcast %309 : vector<8x1xf32> to vector<8x16xf32>
    %311 = arith.mulf %306, %310 : vector<8x16xf32>
    %312 = vector.extract_strided_slice %251 {offsets = [0, 16], sizes = [16, 8], strides = [1, 1]} : vector<32x32xf32> to vector<16x8xf32>
    %cst_121 = arith.constant dense<0.000000e+00> : vector<8x8xf32>
    %313 = tpu.matmul %311, %312, %cst_121 {dimension_numbers = #tpu.dot_dimension_numbers<[1], [0], [0], [1], [0, 0, 1, 1], [], []>} : vector<8x16xf32>, vector<16x8xf32>, vector<8x8xf32> -> vector<8x8xf32>
    %c0_122 = arith.constant 0 : index
    %c16_123 = arith.constant 16 : index
    %314 = vector.load %arg19[%c0_122, %c16_123] : memref<16x32xf32, #tpu.memory_space<vmem>>, vector<8x8xf32>
    tpu.vector_store %arg19[%c0_122, %c16_123], %313 {strides = array<i32>} : memref<16x32xf32, #tpu.memory_space<vmem>>, vector<8x8xf32>,
    %315 = vector.extract_strided_slice %239 {offsets = [0, 24], sizes = [8, 8], strides = [1, 1]} : vector<16x32xf32> to vector<8x8xf32>
    %316 = vector.extract_strided_slice %245 {offsets = [0, 24], sizes = [16, 8], strides = [1, 1]} : vector<32x32xf32> to vector<16x8xf32>
    %cst_124 = arith.constant dense<0.000000e+00> : vector<8x16xf32>
    %317 = tpu.matmul %315, %316, %cst_124 {dimension_numbers = #tpu.dot_dimension_numbers<[1], [1], [0], [0], [0, 0, 1, 0], [], []>} : vector<8x8xf32>, vector<16x8xf32>, vector<8x16xf32> -> vector<8x16xf32>
    %cst_125 = arith.constant 0.353553385 : f32
    %318 = vector.broadcast %cst_125 : f32 to vector<8x16xf32>
    %319 = arith.mulf %317, %318 : vector<8x16xf32>
    %320 = vector.extract_strided_slice %7 {offsets = [0, 0], sizes = [1, 16], strides = [1, 1]} : vector<2x16xf32> to vector<1x16xf32>
    %321 = vector.broadcast %320 : vector<1x16xf32> to vector<8x16xf32>
    %322 = arith.addf %319, %321 : vector<8x16xf32>
    %cst_126 = arith.constant dense<0xFF800000> : vector<8xf32>
    %323 = vector.multi_reduction <maximumf>, %322, %cst_126 [1] : vector<8x16xf32> to vector<8xf32>
    %324 = vector.shape_cast %323 : vector<8xf32> to vector<8x1xf32>
    %325 = vector.broadcast %324 : vector<8x1xf32> to vector<8x16xf32>
    %326 = arith.subf %322, %325 : vector<8x16xf32>
    %327 = math.exp %326 : vector<8x16xf32>
    %cst_127 = arith.constant dense<0.000000e+00> : vector<8xf32>
    %328 = vector.multi_reduction <add>, %327, %cst_127 [1] : vector<8x16xf32> to vector<8xf32>
    %329 = vector.shape_cast %328 : vector<8xf32> to vector<8x1xf32>
    %330 = tpu.reciprocal %329 {approx = true} : vector<8x1xf32> -> vector<8x1xf32>
    %331 = vector.broadcast %330 : vector<8x1xf32> to vector<8x16xf32>
    %332 = arith.mulf %327, %331 : vector<8x16xf32>
    %333 = vector.extract_strided_slice %251 {offsets = [0, 24], sizes = [16, 8], strides = [1, 1]} : vector<32x32xf32> to vector<16x8xf32>
    %cst_128 = arith.constant dense<0.000000e+00> : vector<8x8xf32>
    %334 = tpu.matmul %332, %333, %cst_128 {dimension_numbers = #tpu.dot_dimension_numbers<[1], [0], [0], [1], [0, 0, 1, 1], [], []>} : vector<8x16xf32>, vector<16x8xf32>, vector<8x8xf32> -> vector<8x8xf32>
    %c0_129 = arith.constant 0 : index
    %c24_130 = arith.constant 24 : index
    %335 = vector.load %arg19[%c0_129, %c24_130] : memref<16x32xf32, #tpu.memory_space<vmem>>, vector<8x8xf32>
    tpu.vector_store %arg19[%c0_129, %c24_130], %334 {strides = array<i32>} : memref<16x32xf32, #tpu.memory_space<vmem>>, vector<8x8xf32>,
    %336 = vector.extract_strided_slice %239 {offsets = [8, 0], sizes = [8, 8], strides = [1, 1]} : vector<16x32xf32> to vector<8x8xf32>
    %337 = vector.extract_strided_slice %245 {offsets = [16, 0], sizes = [16, 8], strides = [1, 1]} : vector<32x32xf32> to vector<16x8xf32>
    %cst_131 = arith.constant dense<0.000000e+00> : vector<8x16xf32>
    %338 = tpu.matmul %336, %337, %cst_131 {dimension_numbers = #tpu.dot_dimension_numbers<[1], [1], [0], [0], [0, 0, 1, 0], [], []>} : vector<8x8xf32>, vector<16x8xf32>, vector<8x16xf32> -> vector<8x16xf32>
    %cst_132 = arith.constant 0.353553385 : f32
    %339 = vector.broadcast %cst_132 : f32 to vector<8x16xf32>
    %340 = arith.mulf %338, %339 : vector<8x16xf32>
    %341 = vector.extract_strided_slice %7 {offsets = [1, 0], sizes = [1, 16], strides = [1, 1]} : vector<2x16xf32> to vector<1x16xf32>
    %342 = vector.broadcast %341 : vector<1x16xf32> to vector<8x16xf32>
    %343 = arith.addf %340, %342 : vector<8x16xf32>
    %cst_133 = arith.constant dense<0xFF800000> : vector<8xf32>
    %344 = vector.multi_reduction <maximumf>, %343, %cst_133 [1] : vector<8x16xf32> to vector<8xf32>
    %345 = vector.shape_cast %344 : vector<8xf32> to vector<8x1xf32>
    %346 = vector.broadcast %345 : vector<8x1xf32> to vector<8x16xf32>
    %347 = arith.subf %343, %346 : vector<8x16xf32>
    %348 = math.exp %347 : vector<8x16xf32>
    %cst_134 = arith.constant dense<0.000000e+00> : vector<8xf32>
    %349 = vector.multi_reduction <add>, %348, %cst_134 [1] : vector<8x16xf32> to vector<8xf32>
    %350 = vector.shape_cast %349 : vector<8xf32> to vector<8x1xf32>
    %351 = tpu.reciprocal %350 {approx = true} : vector<8x1xf32> -> vector<8x1xf32>
    %352 = vector.broadcast %351 : vector<8x1xf32> to vector<8x16xf32>
    %353 = arith.mulf %348, %352 : vector<8x16xf32>
    %354 = vector.extract_strided_slice %251 {offsets = [16, 0], sizes = [16, 8], strides = [1, 1]} : vector<32x32xf32> to vector<16x8xf32>
    %cst_135 = arith.constant dense<0.000000e+00> : vector<8x8xf32>
    %355 = tpu.matmul %353, %354, %cst_135 {dimension_numbers = #tpu.dot_dimension_numbers<[1], [0], [0], [1], [0, 0, 1, 1], [], []>} : vector<8x16xf32>, vector<16x8xf32>, vector<8x8xf32> -> vector<8x8xf32>
    %c8_136 = arith.constant 8 : index
    %c0_137 = arith.constant 0 : index
    %356 = vector.load %arg19[%c8_136, %c0_137] : memref<16x32xf32, #tpu.memory_space<vmem>>, vector<8x8xf32>
    tpu.vector_store %arg19[%c8_136, %c0_137], %355 {strides = array<i32>} : memref<16x32xf32, #tpu.memory_space<vmem>>, vector<8x8xf32>,
    %357 = vector.extract_strided_slice %239 {offsets = [8, 8], sizes = [8, 8], strides = [1, 1]} : vector<16x32xf32> to vector<8x8xf32>
    %358 = vector.extract_strided_slice %245 {offsets = [16, 8], sizes = [16, 8], strides = [1, 1]} : vector<32x32xf32> to vector<16x8xf32>
    %cst_138 = arith.constant dense<0.000000e+00> : vector<8x16xf32>
    %359 = tpu.matmul %357, %358, %cst_138 {dimension_numbers = #tpu.dot_dimension_numbers<[1], [1], [0], [0], [0, 0, 1, 0], [], []>} : vector<8x8xf32>, vector<16x8xf32>, vector<8x16xf32> -> vector<8x16xf32>
    %cst_139 = arith.constant 0.353553385 : f32
    %360 = vector.broadcast %cst_139 : f32 to vector<8x16xf32>
    %361 = arith.mulf %359, %360 : vector<8x16xf32>
    %362 = vector.extract_strided_slice %7 {offsets = [1, 0], sizes = [1, 16], strides = [1, 1]} : vector<2x16xf32> to vector<1x16xf32>
    %363 = vector.broadcast %362 : vector<1x16xf32> to vector<8x16xf32>
    %364 = arith.addf %361, %363 : vector<8x16xf32>
    %cst_140 = arith.constant dense<0xFF800000> : vector<8xf32>
    %365 = vector.multi_reduction <maximumf>, %364, %cst_140 [1] : vector<8x16xf32> to vector<8xf32>
    %366 = vector.shape_cast %365 : vector<8xf32> to vector<8x1xf32>
    %367 = vector.broadcast %366 : vector<8x1xf32> to vector<8x16xf32>
    %368 = arith.subf %364, %367 : vector<8x16xf32>
    %369 = math.exp %368 : vector<8x16xf32>
    %cst_141 = arith.constant dense<0.000000e+00> : vector<8xf32>
    %370 = vector.multi_reduction <add>, %369, %cst_141 [1] : vector<8x16xf32> to vector<8xf32>
    %371 = vector.shape_cast %370 : vector<8xf32> to vector<8x1xf32>
    %372 = tpu.reciprocal %371 {approx = true} : vector<8x1xf32> -> vector<8x1xf32>
    %373 = vector.broadcast %372 : vector<8x1xf32> to vector<8x16xf32>
    %374 = arith.mulf %369, %373 : vector<8x16xf32>
    %375 = vector.extract_strided_slice %251 {offsets = [16, 8], sizes = [16, 8], strides = [1, 1]} : vector<32x32xf32> to vector<16x8xf32>
    %cst_142 = arith.constant dense<0.000000e+00> : vector<8x8xf32>
    %376 = tpu.matmul %374, %375, %cst_142 {dimension_numbers = #tpu.dot_dimension_numbers<[1], [0], [0], [1], [0, 0, 1, 1], [], []>} : vector<8x16xf32>, vector<16x8xf32>, vector<8x8xf32> -> vector<8x8xf32>
    %c8_143 = arith.constant 8 : index
    %c8_144 = arith.constant 8 : index
    %377 = vector.load %arg19[%c8_143, %c8_144] : memref<16x32xf32, #tpu.memory_space<vmem>>, vector<8x8xf32>
    tpu.vector_store %arg19[%c8_143, %c8_144], %376 {strides = array<i32>} : memref<16x32xf32, #tpu.memory_space<vmem>>, vector<8x8xf32>,
    %378 = vector.extract_strided_slice %239 {offsets = [8, 16], sizes = [8, 8], strides = [1, 1]} : vector<16x32xf32> to vector<8x8xf32>
    %379 = vector.extract_strided_slice %245 {offsets = [16, 16], sizes = [16, 8], strides = [1, 1]} : vector<32x32xf32> to vector<16x8xf32>
    %cst_145 = arith.constant dense<0.000000e+00> : vector<8x16xf32>
    %380 = tpu.matmul %378, %379, %cst_145 {dimension_numbers = #tpu.dot_dimension_numbers<[1], [1], [0], [0], [0, 0, 1, 0], [], []>} : vector<8x8xf32>, vector<16x8xf32>, vector<8x16xf32> -> vector<8x16xf32>
    %cst_146 = arith.constant 0.353553385 : f32
    %381 = vector.broadcast %cst_146 : f32 to vector<8x16xf32>
    %382 = arith.mulf %380, %381 : vector<8x16xf32>
    %383 = vector.extract_strided_slice %7 {offsets = [1, 0], sizes = [1, 16], strides = [1, 1]} : vector<2x16xf32> to vector<1x16xf32>
    %384 = vector.broadcast %383 : vector<1x16xf32> to vector<8x16xf32>
    %385 = arith.addf %382, %384 : vector<8x16xf32>
    %cst_147 = arith.constant dense<0xFF800000> : vector<8xf32>
    %386 = vector.multi_reduction <maximumf>, %385, %cst_147 [1] : vector<8x16xf32> to vector<8xf32>
    %387 = vector.shape_cast %386 : vector<8xf32> to vector<8x1xf32>
    %388 = vector.broadcast %387 : vector<8x1xf32> to vector<8x16xf32>
    %389 = arith.subf %385, %388 : vector<8x16xf32>
    %390 = math.exp %389 : vector<8x16xf32>
    %cst_148 = arith.constant dense<0.000000e+00> : vector<8xf32>
    %391 = vector.multi_reduction <add>, %390, %cst_148 [1] : vector<8x16xf32> to vector<8xf32>
    %392 = vector.shape_cast %391 : vector<8xf32> to vector<8x1xf32>
    %393 = tpu.reciprocal %392 {approx = true} : vector<8x1xf32> -> vector<8x1xf32>
    %394 = vector.broadcast %393 : vector<8x1xf32> to vector<8x16xf32>
    %395 = arith.mulf %390, %394 : vector<8x16xf32>
    %396 = vector.extract_strided_slice %251 {offsets = [16, 16], sizes = [16, 8], strides = [1, 1]} : vector<32x32xf32> to vector<16x8xf32>
    %cst_149 = arith.constant dense<0.000000e+00> : vector<8x8xf32>
    %397 = tpu.matmul %395, %396, %cst_149 {dimension_numbers = #tpu.dot_dimension_numbers<[1], [0], [0], [1], [0, 0, 1, 1], [], []>} : vector<8x16xf32>, vector<16x8xf32>, vector<8x8xf32> -> vector<8x8xf32>
    %c8_150 = arith.constant 8 : index
    %c16_151 = arith.constant 16 : index
    %398 = vector.load %arg19[%c8_150, %c16_151] : memref<16x32xf32, #tpu.memory_space<vmem>>, vector<8x8xf32>
    tpu.vector_store %arg19[%c8_150, %c16_151], %397 {strides = array<i32>} : memref<16x32xf32, #tpu.memory_space<vmem>>, vector<8x8xf32>,
    %399 = vector.extract_strided_slice %239 {offsets = [8, 24], sizes = [8, 8], strides = [1, 1]} : vector<16x32xf32> to vector<8x8xf32>
    %400 = vector.extract_strided_slice %245 {offsets = [16, 24], sizes = [16, 8], strides = [1, 1]} : vector<32x32xf32> to vector<16x8xf32>
    %cst_152 = arith.constant dense<0.000000e+00> : vector<8x16xf32>
    %401 = tpu.matmul %399, %400, %cst_152 {dimension_numbers = #tpu.dot_dimension_numbers<[1], [1], [0], [0], [0, 0, 1, 0], [], []>} : vector<8x8xf32>, vector<16x8xf32>, vector<8x16xf32> -> vector<8x16xf32>
    %cst_153 = arith.constant 0.353553385 : f32
    %402 = vector.broadcast %cst_153 : f32 to vector<8x16xf32>
    %403 = arith.mulf %401, %402 : vector<8x16xf32>
    %404 = vector.extract_strided_slice %7 {offsets = [1, 0], sizes = [1, 16], strides = [1, 1]} : vector<2x16xf32> to vector<1x16xf32>
    %405 = vector.broadcast %404 : vector<1x16xf32> to vector<8x16xf32>
    %406 = arith.addf %403, %405 : vector<8x16xf32>
    %cst_154 = arith.constant dense<0xFF800000> : vector<8xf32>
    %407 = vector.multi_reduction <maximumf>, %406, %cst_154 [1] : vector<8x16xf32> to vector<8xf32>
    %408 = vector.shape_cast %407 : vector<8xf32> to vector<8x1xf32>
    %409 = vector.broadcast %408 : vector<8x1xf32> to vector<8x16xf32>
    %410 = arith.subf %406, %409 : vector<8x16xf32>
    %411 = math.exp %410 : vector<8x16xf32>
    %cst_155 = arith.constant dense<0.000000e+00> : vector<8xf32>
    %412 = vector.multi_reduction <add>, %411, %cst_155 [1] : vector<8x16xf32> to vector<8xf32>
    %413 = vector.shape_cast %412 : vector<8xf32> to vector<8x1xf32>
    %414 = tpu.reciprocal %413 {approx = true} : vector<8x1xf32> -> vector<8x1xf32>
    %415 = vector.broadcast %414 : vector<8x1xf32> to vector<8x16xf32>
    %416 = arith.mulf %411, %415 : vector<8x16xf32>
    %417 = vector.extract_strided_slice %251 {offsets = [16, 24], sizes = [16, 8], strides = [1, 1]} : vector<32x32xf32> to vector<16x8xf32>
    %cst_156 = arith.constant dense<0.000000e+00> : vector<8x8xf32>
    %418 = tpu.matmul %416, %417, %cst_156 {dimension_numbers = #tpu.dot_dimension_numbers<[1], [0], [0], [1], [0, 0, 1, 1], [], []>} : vector<8x16xf32>, vector<16x8xf32>, vector<8x8xf32> -> vector<8x8xf32>
    %c8_157 = arith.constant 8 : index
    %c24_158 = arith.constant 24 : index
    %419 = vector.load %arg19[%c8_157, %c24_158] : memref<16x32xf32, #tpu.memory_space<vmem>>, vector<8x8xf32>
    tpu.vector_store %arg19[%c8_157, %c24_158], %418 {strides = array<i32>} : memref<16x32xf32, #tpu.memory_space<vmem>>, vector<8x8xf32>,
    %c0_159 = arith.constant 0 : index
    %c0_160 = arith.constant 0 : index
    %420 = vector.load %arg19[%c0_159, %c0_160] : memref<16x32xf32, #tpu.memory_space<vmem>>, vector<16x32xf32>
    %421 = vector.extract_strided_slice %232 {offsets = [3, 0, 0], sizes = [1, 32, 32], strides = [1, 1, 1]} : vector<4x32x32xf32> to vector<1x32x32xf32>
    %422 = vector.shape_cast %421 : vector<1x32x32xf32> to vector<32x32xf32>
    %cst_161 = arith.constant dense<0.000000e+00> : vector<16x32xf32>
    %423 = tpu.matmul %420, %422, %cst_161 {dimension_numbers = #tpu.dot_dimension_numbers<[1], [0], [0], [1], [0, 0, 1, 1], [], []>} : vector<16x32xf32>, vector<32x32xf32>, vector<16x32xf32> -> vector<16x32xf32>
    %424 = vector.extract_strided_slice %233 {offsets = [3, 0], sizes = [1, 32], strides = [1, 1]} : vector<4x32xf32> to vector<1x32xf32>
    %425 = vector.broadcast %424 : vector<1x32xf32> to vector<16x32xf32>
    %426 = arith.addf %423, %425 : vector<16x32xf32>
    %427 = arith.addf %229, %426 : vector<16x32xf32>
    %428 = vector.extract_strided_slice %14 {offsets = [1, 0], sizes = [1, 32], strides = [1, 1]} : vector<3x32xf32> to vector<1x32xf32>
    %429 = vector.extract_strided_slice %16 {offsets = [1, 0], sizes = [1, 32], strides = [1, 1]} : vector<3x32xf32> to vector<1x32xf32>
    %cst_162 = arith.constant dense<0.000000e+00> : vector<16xf32>
    %430 = vector.multi_reduction <add>, %427, %cst_162 [1] : vector<16x32xf32> to vector<16xf32>
    %431 = vector.shape_cast %430 : vector<16xf32> to vector<16x1xf32>
    %cst_163 = arith.constant 3.200000e+01 : f32
    %432 = vector.broadcast %cst_163 : f32 to vector<16x1xf32>
    %433 = arith.divf %431, %432 : vector<16x1xf32>
    %434 = vector.broadcast %433 : vector<16x1xf32> to vector<16x32xf32>
    %435 = arith.subf %427, %434 : vector<16x32xf32>
    %436 = arith.mulf %435, %435 : vector<16x32xf32>
    %cst_164 = arith.constant dense<0.000000e+00> : vector<16xf32>
    %437 = vector.multi_reduction <add>, %436, %cst_164 [1] : vector<16x32xf32> to vector<16xf32>
    %438 = vector.shape_cast %437 : vector<16xf32> to vector<16x1xf32>
    %cst_165 = arith.constant 3.200000e+01 : f32
    %439 = vector.broadcast %cst_165 : f32 to vector<16x1xf32>
    %440 = arith.divf %438, %439 : vector<16x1xf32>
    %441 = vector.broadcast %433 : vector<16x1xf32> to vector<16x32xf32>
    %442 = arith.subf %427, %441 : vector<16x32xf32>
    %cst_166 = arith.constant 9.99999974E-6 : f32
    %443 = vector.broadcast %cst_166 : f32 to vector<16x1xf32>
    %444 = arith.addf %440, %443 : vector<16x1xf32>
    %445 = math.rsqrt %444 : vector<16x1xf32>
    %446 = vector.broadcast %445 : vector<16x1xf32> to vector<16x32xf32>
    %447 = arith.mulf %442, %446 : vector<16x32xf32>
    %448 = vector.broadcast %428 : vector<1x32xf32> to vector<16x32xf32>
    %449 = arith.mulf %447, %448 : vector<16x32xf32>
    %450 = vector.broadcast %429 : vector<1x32xf32> to vector<16x32xf32>
    %451 = arith.addf %449, %450 : vector<16x32xf32>
    %cst_167 = arith.constant dense<0.000000e+00> : vector<16x64xf32>
    %452 = tpu.matmul %451, %18, %cst_167 {dimension_numbers = #tpu.dot_dimension_numbers<[1], [0], [0], [1], [0, 0, 1, 1], [], []>} : vector<16x32xf32>, vector<32x64xf32>, vector<16x64xf32> -> vector<16x64xf32>
    %453 = vector.broadcast %20 : vector<1x64xf32> to vector<16x64xf32>
    %454 = arith.addf %452, %453 : vector<16x64xf32>
    %cst_168 = arith.constant 0.000000e+00 : f32
    %455 = vector.broadcast %cst_168 : f32 to vector<16x64xf32>
    %456 = arith.maximumf %454, %455 : vector<16x64xf32>
    %cst_169 = arith.constant dense<0.000000e+00> : vector<16x32xf32>
    %457 = tpu.matmul %456, %22, %cst_169 {dimension_numbers = #tpu.dot_dimension_numbers<[1], [0], [0], [1], [0, 0, 1, 1], [], []>} : vector<16x64xf32>, vector<64x32xf32>, vector<16x32xf32> -> vector<16x32xf32>
    %458 = vector.broadcast %24 : vector<1x32xf32> to vector<16x32xf32>
    %459 = arith.addf %457, %458 : vector<16x32xf32>
    %460 = arith.addf %451, %459 : vector<16x32xf32>
    %461 = vector.extract_strided_slice %14 {offsets = [2, 0], sizes = [1, 32], strides = [1, 1]} : vector<3x32xf32> to vector<1x32xf32>
    %462 = vector.extract_strided_slice %16 {offsets = [2, 0], sizes = [1, 32], strides = [1, 1]} : vector<3x32xf32> to vector<1x32xf32>
    %cst_170 = arith.constant dense<0.000000e+00> : vector<16xf32>
    %463 = vector.multi_reduction <add>, %460, %cst_170 [1] : vector<16x32xf32> to vector<16xf32>
    %464 = vector.shape_cast %463 : vector<16xf32> to vector<16x1xf32>
    %cst_171 = arith.constant 3.200000e+01 : f32
    %465 = vector.broadcast %cst_171 : f32 to vector<16x1xf32>
    %466 = arith.divf %464, %465 : vector<16x1xf32>
    %467 = vector.broadcast %466 : vector<16x1xf32> to vector<16x32xf32>
    %468 = arith.subf %460, %467 : vector<16x32xf32>
    %469 = arith.mulf %468, %468 : vector<16x32xf32>
    %cst_172 = arith.constant dense<0.000000e+00> : vector<16xf32>
    %470 = vector.multi_reduction <add>, %469, %cst_172 [1] : vector<16x32xf32> to vector<16xf32>
    %471 = vector.shape_cast %470 : vector<16xf32> to vector<16x1xf32>
    %cst_173 = arith.constant 3.200000e+01 : f32
    %472 = vector.broadcast %cst_173 : f32 to vector<16x1xf32>
    %473 = arith.divf %471, %472 : vector<16x1xf32>
    %474 = vector.broadcast %466 : vector<16x1xf32> to vector<16x32xf32>
    %475 = arith.subf %460, %474 : vector<16x32xf32>
    %cst_174 = arith.constant 9.99999974E-6 : f32
    %476 = vector.broadcast %cst_174 : f32 to vector<16x1xf32>
    %477 = arith.addf %473, %476 : vector<16x1xf32>
    %478 = math.rsqrt %477 : vector<16x1xf32>
    %479 = vector.broadcast %478 : vector<16x1xf32> to vector<16x32xf32>
    %480 = arith.mulf %475, %479 : vector<16x32xf32>
    %481 = vector.broadcast %461 : vector<1x32xf32> to vector<16x32xf32>
    %482 = arith.mulf %480, %481 : vector<16x32xf32>
    %483 = vector.broadcast %462 : vector<1x32xf32> to vector<16x32xf32>
    %484 = arith.addf %482, %483 : vector<16x32xf32>
    %c0_175 = arith.constant 0 : index
    %c0_176 = arith.constant 0 : index
    %485 = vector.load %arg18[%c0_175, %c0_176] : memref<16x32xf32, #tpu.memory_space<vmem>>, vector<16x32xf32>
    tpu.vector_store %arg18[%c0_175, %c0_176], %484 {strides = array<i32>} : memref<16x32xf32, #tpu.memory_space<vmem>>, vector<16x32xf32>,
    %c0_177 = arith.constant 0 : index
    %c0_178 = arith.constant 0 : index
    %486 = vector.load %arg15[%c0_177, %c0_178] : memref<1x32xf32, #tpu.memory_space<vmem>>, vector<1x32xf32>
    %c0_179 = arith.constant 0 : index
    %c0_180 = arith.constant 0 : index
    %487 = vector.load %arg16[%c0_179, %c0_180] : memref<1x32xf32, #tpu.memory_space<vmem>>, vector<1x32xf32>
    %cst_181 = arith.constant dense<0.000000e+00> : vector<16xf32>
    %488 = vector.multi_reduction <add>, %484, %cst_181 [1] : vector<16x32xf32> to vector<16xf32>
    %489 = vector.shape_cast %488 : vector<16xf32> to vector<16x1xf32>
    %cst_182 = arith.constant 3.200000e+01 : f32
    %490 = vector.broadcast %cst_182 : f32 to vector<16x1xf32>
    %491 = arith.divf %489, %490 : vector<16x1xf32>
    %492 = vector.broadcast %491 : vector<16x1xf32> to vector<16x32xf32>
    %493 = arith.subf %484, %492 : vector<16x32xf32>
    %494 = arith.mulf %493, %493 : vector<16x32xf32>
    %cst_183 = arith.constant dense<0.000000e+00> : vector<16xf32>
    %495 = vector.multi_reduction <add>, %494, %cst_183 [1] : vector<16x32xf32> to vector<16xf32>
    %496 = vector.shape_cast %495 : vector<16xf32> to vector<16x1xf32>
    %cst_184 = arith.constant 3.200000e+01 : f32
    %497 = vector.broadcast %cst_184 : f32 to vector<16x1xf32>
    %498 = arith.divf %496, %497 : vector<16x1xf32>
    %499 = vector.broadcast %491 : vector<16x1xf32> to vector<16x32xf32>
    %500 = arith.subf %484, %499 : vector<16x32xf32>
    %cst_185 = arith.constant 9.99999974E-6 : f32
    %501 = vector.broadcast %cst_185 : f32 to vector<16x1xf32>
    %502 = arith.addf %498, %501 : vector<16x1xf32>
    %503 = math.rsqrt %502 : vector<16x1xf32>
    %504 = vector.broadcast %503 : vector<16x1xf32> to vector<16x32xf32>
    %505 = arith.mulf %500, %504 : vector<16x32xf32>
    %506 = vector.broadcast %486 : vector<1x32xf32> to vector<16x32xf32>
    %507 = arith.mulf %505, %506 : vector<16x32xf32>
    %508 = vector.broadcast %487 : vector<1x32xf32> to vector<16x32xf32>
    %509 = arith.addf %507, %508 : vector<16x32xf32>
    %c0_186 = arith.constant 0 : index
    %c0_187 = arith.constant 0 : index
    %c0_188 = arith.constant 0 : index
    %510 = vector.load %arg17[%c0_186, %c0_187, %c0_188] : memref<1x16x32xf32, #tpu.memory_space<vmem>>, vector<1x16x32xf32>
    %511 = vector.shape_cast %510 : vector<1x16x32xf32> to vector<16x32xf32>
    %512 = vector.shape_cast %509 : vector<16x32xf32> to vector<1x16x32xf32>
    tpu.vector_store %arg17[%c0_186, %c0_187, %c0_188], %512 {strides = array<i32>} : memref<1x16x32xf32, #tpu.memory_space<vmem>>, vector<1x16x32xf32>,
    return
  }
  func.func @transform_0(%arg0: i32) -> (i32, i32) {
    %c0_i32 = arith.constant 0 : i32
    %c0_i32_0 = arith.constant 0 : i32
    %c0_i32_1 = arith.constant 0 : i32
    return %c0_i32, %c0_i32_0 : i32, i32
  }
  func.func @transform_1(%arg0: i32) -> (i32, i32) {
    %c0_i32 = arith.constant 0 : i32
    %c0_i32_0 = arith.constant 0 : i32
    %c0_i32_1 = arith.constant 0 : i32
    return %c0_i32, %c0_i32_0 : i32, i32
  }
  func.func @transform_2(%arg0: i32) -> (i32, i32) {
    %c0_i32 = arith.constant 0 : i32
    %c0_i32_0 = arith.constant 0 : i32
    %c0_i32_1 = arith.constant 0 : i32
    return %c0_i32, %c0_i32_0 : i32, i32
  }
  func.func @transform_3(%arg0: i32) -> (i32, i32) {
    %c0_i32 = arith.constant 0 : i32
    %c0_i32_0 = arith.constant 0 : i32
    %c0_i32_1 = arith.constant 0 : i32
    return %c0_i32, %c0_i32_0 : i32, i32
  }
  func.func @transform_4(%arg0: i32) -> (i32, i32) {
    %c0_i32 = arith.constant 0 : i32
    %c0_i32_0 = arith.constant 0 : i32
    %c0_i32_1 = arith.constant 0 : i32
    return %c0_i32, %c0_i32_0 : i32, i32
  }
  func.func @transform_5(%arg0: i32) -> (i32, i32) {
    %c0_i32 = arith.constant 0 : i32
    %c0_i32_0 = arith.constant 0 : i32
    %c0_i32_1 = arith.constant 0 : i32
    return %c0_i32, %c0_i32_0 : i32, i32
  }
  func.func @transform_6(%arg0: i32) -> (i32, i32, i32, i32) {
    %c0_i32 = arith.constant 0 : i32
    %c0_i32_0 = arith.constant 0 : i32
    %c0_i32_1 = arith.constant 0 : i32
    %c0_i32_2 = arith.constant 0 : i32
    return %arg0, %c0_i32, %c0_i32_0, %c0_i32_1 : i32, i32, i32, i32
  }
  func.func @transform_7(%arg0: i32) -> (i32, i32, i32) {
    %c0_i32 = arith.constant 0 : i32
    %c0_i32_0 = arith.constant 0 : i32
    %c0_i32_1 = arith.constant 0 : i32
    return %arg0, %c0_i32, %c0_i32_0 : i32, i32, i32
  }
  func.func @transform_8(%arg0: i32) -> (i32, i32, i32) {
    %c0_i32 = arith.constant 0 : i32
    %c0_i32_0 = arith.constant 0 : i32
    %c0_i32_1 = arith.constant 0 : i32
    return %arg0, %c0_i32, %c0_i32_0 : i32, i32, i32
  }
  func.func @transform_9(%arg0: i32) -> (i32, i32, i32) {
    %c0_i32 = arith.constant 0 : i32
    %c0_i32_0 = arith.constant 0 : i32
    %c0_i32_1 = arith.constant 0 : i32
    return %arg0, %c0_i32, %c0_i32_0 : i32, i32, i32
  }
  func.func @transform_10(%arg0: i32) -> (i32, i32, i32) {
    %c0_i32 = arith.constant 0 : i32
    %c0_i32_0 = arith.constant 0 : i32
    %c0_i32_1 = arith.constant 0 : i32
    return %arg0, %c0_i32, %c0_i32_0 : i32, i32, i32
  }
  func.func @transform_11(%arg0: i32) -> (i32, i32, i32) {
    %c0_i32 = arith.constant 0 : i32
    %c0_i32_0 = arith.constant 0 : i32
    %c0_i32_1 = arith.constant 0 : i32
    return %arg0, %c0_i32, %c0_i32_0 : i32, i32, i32
  }
  func.func @transform_12(%arg0: i32) -> (i32, i32, i32) {
    %c0_i32 = arith.constant 0 : i32
    %c0_i32_0 = arith.constant 0 : i32
    %c0_i32_1 = arith.constant 0 : i32
    return %arg0, %c0_i32, %c0_i32_0 : i32, i32, i32
  }
  func.func @transform_13(%arg0: i32) -> (i32, i32, i32) {
    %c0_i32 = arith.constant 0 : i32
    %c0_i32_0 = arith.constant 0 : i32
    %c0_i32_1 = arith.constant 0 : i32
    return %arg0, %c0_i32, %c0_i32_0 : i32, i32, i32
  }
  func.func @transform_14(%arg0: i32) -> (i32, i32) {
    %c0_i32 = arith.constant 0 : i32
    %c0_i32_0 = arith.constant 0 : i32
    %c0_i32_1 = arith.constant 0 : i32
    return %c0_i32, %c0_i32_0 : i32, i32
  }
  func.func @transform_15(%arg0: i32) -> (i32, i32) {
    %c0_i32 = arith.constant 0 : i32
    %c0_i32_0 = arith.constant 0 : i32
    %c0_i32_1 = arith.constant 0 : i32
    return %c0_i32, %c0_i32_0 : i32, i32
  }
  func.func @transform_16(%arg0: i32) -> (i32, i32, i32) {
    %c0_i32 = arith.constant 0 : i32
    %c0_i32_0 = arith.constant 0 : i32
    %c0_i32_1 = arith.constant 0 : i32
    return %arg0, %c0_i32, %c0_i32_0 : i32, i32, i32
  }
}

</mosaic_0001>

<bundles_post_ra>
// kernel: ksdn_detr_transformer_forward.2
= control target key start
LH: loop header
LB: loop body
LE: loop exit
PB: predicated region body
PF: predicated region fallthrough
CT: control target
= control target key end

     0   :  { %s3012_s0 = inlined_call_operand.vmem [shape: f32[32,32], index: 0, kind: input, shape index: {}]   ;;  %s3013_s1 = inlined_call_operand.vmem [shape: f32[32,32], index: 1, kind: input, shape index: {}]   ;;  %s3014_s2 = inlined_call_operand.vmem [shape: f32[2,16], index: 2, kind: input, shape index: {}]   ;;  %s3015_s3 = inlined_call_operand.hbm [shape: f32[2,4,32,32], index: 3, kind: input, shape index: {}]   ;;  %s3016_s4 = inlined_call_operand.vmem [shape: f32[2,4,32], index: 4, kind: input, shape index: {}]   ;;  %s3017_s5 = inlined_call_operand.vmem [shape: f32[2,2,32], index: 5, kind: input, shape index: {}]   ;;  %s3018_s6 = inlined_call_operand.vmem [shape: f32[2,2,32], index: 6, kind: input, shape index: {}]   ;;  %s3019_s7 = inlined_call_operand.vmem [shape: f32[2,32,64], index: 7, kind: input, shape index: {}]   ;;  %s3020_s8 = inlined_call_operand.vmem [shape: f32[2,1,64], index: 8, kind: input, shape index: {}]   ;;  %s3021_s9 = inlined_call_operand.vmem [shape: f32[2,64,32], index: 9, kind: input, shape index: {}]   ;;  %s3022_s10 = inlined_call_operand.vmem [shape: f32[2,1,32], index: 10, kind: input, shape index: {}]   ;;  %s3023_s11 = inlined_call_operand.vmem [shape: f32[32,32], index: 11, kind: output, shape index: {}]  }
   0x1   :  { %3028 = sst [smem:[#allocation11_spill]] %s3015_s3 }
   0x2   :  { %3029 = sst [smem:[#allocation12_spill]] %s3016_s4 }
   0x3   :  { %3030 = sst [smem:[#allocation13_spill]] %s3017_s5 }
   0x4   :  { %16 = vsyncpa [#allocation5], 0 }
   0x5   :  { %18 = vsyncpa [#allocation5 + $0x1], 0  ;;  %s2415_s17 = smov 0   ;;  %s2417_s18 = smov 0  }
   0x6   :  { %s2419_s19 = smov 0   ;;  %s2421_s20 = smov 0  }
   0x7 LB: > { %3031 = sst [smem:[#allocation7_spill]] %s2336_s18  ;;  %s2434_s21 = sadd.s32 4294967295, %s2344_s20   ;;  %s2344_s20 = sphi %s2421_s20, %s3041_s20   ;;  %s2340_s19 = sphi %s2419_s19, %s3044_s19   ;;  %s2336_s18 = sphi %s2417_s18, %s3043_s18   ;;  %s2332_s17 = sphi %s2415_s17, %s3042_s17  }
   0x8   : > { %3032 = sst [smem:[#allocation8_spill]] %s2340_s19  ;;  %s2437_s22 = sadd.s32 1, %s2344_s20  }
   0x9   : > { %3033 = sst [smem:[#allocation9_spill]] %s2437_s22  ;;  %s91_s23 = ssub.s32 %s2344_s20, %s2437_s22 }
   0xa   : > { %s94_s24 = sadd.s32 1, %s2340_s19  ;;  %p92_p0 = scmp.eq.s32.totalorder %s91_s23, 0 }
   0xb   : > { %p101_p1 = scmp.ne.s32.totalorder %s2340_s19, %s2336_s18  ;;  %p102_p2 = scmp.eq.s32.totalorder %s2344_s20, 0 }
   0xc   : > { %p107_p3 = scmp.ne.s32.totalorder %s2336_s18, %s2332_s17  ;;  %p108_p5 = scmp.eq.s32.totalorder %s2434_s21, 0 }
   0xd   : > { %s2447_s25 = scalar_select %p92_p0, %s2340_s19, %s94_s24  }
   0xe   : > { %p2449_p4 = por %p102_p2, %p101_p1  ;;  %p2120_p6 = scmp.lt.s32.totalorder %s2344_s20, 2 }
   0xf   : > { %3034 = sst [smem:[#allocation10_spill]] %s2447_s25  ;;  %p2455_p7 = por %p108_p5, %p107_p3 }
  0x10   : > { %s343_s28 = sand.u32 1, %s2340_s19   ;;  %s2107_s30 = sshll.u32 %s2344_s20, 7 }
  0x11   : > { %s2020_s29 = sshll.u32 %s343_s28, 7  ;;  %s3037_s3 = sld [smem:[#allocation11_spill]] }
  0x12   : > { %s347_s15 = scalar_lea.vmem [#allocation4], %s2020_s29  ;;  %p2466_p8 = pnand %p2120_p6, %p2449_p4 }
  0x13   : > { %s355_s16 = sshll.u32 %s347_s15, 4  ;;  %p2023_p9 = scmp.ge.s32.totalorder %s2344_s20, 1  ;;  %s356_s16 = int_to_ptr.vmem [resolvable:$true] %s355_s16 }
  0x14   : > { %s344_s24 = scalar_lea.sflag [#allocation5], %s343_s28  ;;  %p2284_p11 = pneg %p2466_p8 }
  0x17   : > { %s352_s14 = scalar_lea.hbm %s3037_s3, %s2107_s30  ;;  %s2287_s12 = scalar_lea.hbm %s3037_s3, 256 }
  0x18   : > { %s353_s17 = sshll.u32 %s352_s14, 4  ;;  %s354_s17 = int_to_ptr.hbm [resolvable:$true] %s353_s17 }
  0x19   : > { %s2280_s25 = sshra.s32 %s354_s17, 4  ;;  %s2281_s25 = int_to_ptr.hbm [resolvable:$true] %s2280_s25 }
  0x1a   : > { %s2282_s19 = scalar_lea.hbm %s2281_s25, 128  ;;  %p2288_p0 = scmp.lt.s32.totalorder %s2281_s25, %s3037_s3 }
  0x1b   : > { %p2283_p10 = scmp.ne.s32.totalorder %s2281_s25, %s2282_s19  ;;  %p2289_p1 = scmp.lt.s32.totalorder %s2287_s12, %s2282_s19 }
  0x1d   : > { %p2285_p12 = pnand %p2284_p11, %p2283_p10  ;;  %p2290_p2 = por %p2289_p1, %p2288_p0 }
  0x1f   : > { %p2286_p13 = pneg %p2285_p12 }
  0x21   : > { %p2291_p3 = pnand %p2290_p2, %p2286_p13 }
  0x23   : > { %2294 = shalt.err (!%p2291_p3)
}
  0x24   : > { %s2346_s28 = smov 128   ;;  %s2347_s14 = smov 8  }
  0x25   : > { %2119 = dma.hbm_to_vmem [thread:$0]  (!%p2466_p8), %s354_s17, 2048, %s356_s16, %s344_s24, %s2346_s28, %s2346_s28, %s2347_s14  }
  0x26   : > { %p412_p4 = scmp.lt.s32.totalorder %s2344_s20, 3 }
  0x28   : > { %p413_p5 = pnand %p2023_p9, %p412_p4 }
  0x29   : > { %s418_s15 = sand.u32 (!%p413_p5), 1, %s2336_s18  }
  0x2a   : > { %416 = sbr.rel (%p413_p5) target bundleno = 2027 (0x7eb), region = 64  ;;  %s2024_s29 = sshll.u32 (!%p413_p5), %s418_s15, 7 }
  0x2b   : > { %s419_s25 = scalar_lea.sflag (!%p413_p5), [#allocation5], %s418_s15  ;;  %s2485_s19 = scalar_lea.vmem (!%p413_p5), [#allocation4], %s2024_s29 }
  0x2f   : > { %2327 = dma.done.wait (%p2455_p7), %s419_s25, 2048  }
  0x30   : > { %2329 = vsyncadd (%p2455_p7), %s419_s25, 4294965248  ;;  %p485_p6 = scmp.lt.s32.totalorder %s2434_s21, 1  ;;  %s3039_s4 = sld [smem:[#allocation12_spill]] }
  0x31   : > { %s3040_s5 = sld [smem:[#allocation13_spill]]  ;;  %p2032_p7 = scmp.ne.s32.totalorder %s2434_s21, 0 }
  0x32   : > { %s2493_s16 = scalar_select %p485_p6, %s2434_s21, 1 }
  0x34   : > { %s2025_s20 = sshll.u32 %s2493_s16, 2  ;;  %s2026_s17 = sshll.u32 %s2493_s16, 1 }
  0x35   : > { %s2510_s14 = scalar_lea.vmem %s3018_s6, %s2026_s17  ;;  %s2108_s15 = sshll.u32 %s2493_s16, 5 }
  0x36   : > { %s2500_s30 = scalar_lea.vmem %s3039_s4, %s2025_s20  ;;  %s2516_s3 = scalar_lea.vmem %s3019_s7, %s2108_s15 }
  0x37   : > { %s2505_s26 = scalar_lea.vmem %s3040_s5, %s2026_s17  ;;  %s504_s20 = scalar_lea.vmem %s3020_s8, %s2493_s16 }
  0x38   : > { %s2109_s24 = sshll.u32 %s2493_s16, 6  ;;  %s512_s12 = scalar_lea.vmem %s3022_s10, %s2493_s16 }
  0x39   : > { %s2530_s17 = scalar_lea.vmem %s3021_s9, %s2109_s24  ;;  %516 = sbr.rel (%p2032_p7) target bundleno = 67 (0x43), region = 72 }
  0x3e   : > { %v517_v0 = vld [vmem:[%s3012_s0] sm:$0xff]  ;;  %vm521_vm0 = vcmask 261120   ;;  %v518_v1 = vld [vmem:[%s3012_s0 + $0x8] sm:$0xff]  ;;  %v519_v2 = vld [vmem:[%s3012_s0 + $0x10] sm:$0xff] }
  0x3f   : > { %522 = vst.msk [vmem:[#allocation2] sm:$0xff] %vm521_vm0, %v517_v0  ;;  %v520_v3 = vld [vmem:[%s3012_s0 + $0x18] sm:$0xff] }
  0x40   : > { %523 = vst.msk [vmem:[#allocation2 + $0x8] sm:$0xff] %vm521_vm0, %v518_v1 }
  0x41   : > { %524 = vst.msk [vmem:[#allocation2 + $0x10] sm:$0xff] %vm521_vm0, %v519_v2 }
  0x42   : > { %525 = vst.msk [vmem:[#allocation2 + $0x18] sm:$0xff] %vm521_vm0, %v520_v3 }
  0x43 PF: > { %v538_v4 = vld [vmem:[%s2485_s19 + $0x18] sm:$0xff]  ;;  %v537_v5 = vld [vmem:[%s2485_s19 + $0x10] sm:$0xff]  ;;  %v536_v8 = vld [vmem:[%s2485_s19 + $0x8] sm:$0xff]  ;;  %vm573_vm1 = vcmask 261120   ;;  %s2348_s15 = smov 112   ;;  %s2349_s29 = smov 120  }
  0x44   : > { %2110 = vmatpush.msra.mxu1 %v538_v4  ;;  %v532_v7 = vld [vmem:[%s3013_s1 + $0x10] sm:$0xff]  ;;  %598 = vmatpush.msra.mxu0 %v538_v4  ;;  %v535_v9 = vld [vmem:[%s2485_s19] sm:$0xff]  ;;  %v542_v13 = vld [vmem:[%s2485_s19 + $0x38] sm:$0xff]  ;;  %vm687_vm2 = vcmask 64512   ;;  %vm728_vm3 = vcmask 130048   ;;  %s2351_s22 = smov 8  }
  0x45   : > { %v530_v12 = vld [vmem:[%s3013_s1] sm:$0xff]  ;;  %v541_v15 = vld [vmem:[%s2485_s19 + $0x30] sm:$0xff]  ;;  %v533_v17 = vld [vmem:[%s3013_s1 + $0x18] sm:$0xff]  ;;  %s2352_s21 = smov 16   ;;  %s2353_s25 = smov 24   ;;  %vm892_vm4 = vcmask 130112  }
  0x46   : > { %2111 = vmatpush.msra.mxu1 %v537_v5  ;;  %599 = vmatpush.msra.mxu0 %v537_v5  ;;  %v526_v11 = vld [vmem:[#allocation2] sm:$0xff]  ;;  %v540_v18 = vld [vmem:[%s2485_s19 + $0x28] sm:$0xff]  ;;  %v546_v24 = vld [vmem:[%s2485_s19 + $0x58] sm:$0xff]  ;;  %vm1003_vm5 = vcmask 195712   ;;  %vm1114_vm6 = vcmask 261312  }
  0x47   : > { %v568_v14 = vadd.f32 %v530_v12, %v526_v11  ;;  %v527_v19 = vld [vmem:[#allocation2 + $0x8] sm:$0xff]  ;;  %v539_v22 = vld [vmem:[%s2485_s19 + $0x20] sm:$0xff]  ;;  %v545_v25 = vld [vmem:[%s2485_s19 + $0x50] sm:$0xff]  ;;  %670 = vmatpush.msra.mxu2 %v546_v24 }
  0x48   : > { %v528_v6 = vld [vmem:[#allocation2 + $0x10] sm:$0xff]  ;;  %2112 = vmatpush.msra.mxu1 %v536_v8  ;;  %600 = vmatpush.msra.mxu0 %v536_v8  ;;  %v531_v20 = vld [vmem:[%s3013_s1 + $0x8] sm:$0xff]  ;;  %v543_v27 = vld [vmem:[%s2485_s19 + $0x40] sm:$0xff] }
  0x49   : > { %v570_v10 = vadd.f32 %v532_v7, %v528_v6  ;;  %v529_v16 = vld [vmem:[#allocation2 + $0x18] sm:$0xff]  ;;  %v569_v23 = vadd.f32 %v531_v20, %v527_v19  ;;  %v544_v26 = vld [vmem:[%s2485_s19 + $0x48] sm:$0xff]  ;;  %671 = vmatpush.msra.mxu2 %v545_v25  ;;  %v2582_v30 = vld [vmem:[%s2500_s30] sm:$0xf]  ;;  %s2350_s30 = smov 104  }
  0x4a   : > { %2113 = vmatpush.msra.mxu1 %v535_v9  ;;  %601 = vmatpush.msra.mxu0 %v535_v9  ;;  %v571_v21 = vadd.f32 %v533_v17, %v529_v16  ;;  %v615_v31 = vperm.slane %v2582_v30, 1  ;;  %v572_v35 = vperm.slane %v2582_v30, 0  ;;  %v2605_v46 = vperm.slane %v2582_v30, 2  ;;  %v2635_v0 = vld [vmem:[%s3014_s2] sm:$0x3] }
  0x4b   : > { %2035 = vmatmul.msk.f32.vlgmr.msra.gmra.mxu1 %vm573_vm1, %v570_v10  ;;  %2033 = vmatmul.msk.f32.vlgmr.msra.gmra.mxu0 %vm573_vm1, %v568_v14  ;;  %v2638_v1 = vperm.slane %v2635_v0, 0 }
  0x4c   : > { %628 = vmatpush.msrb.mxu1 %v542_v13  ;;  %672 = vmatpush.msra.mxu2 %v544_v26 }
  0x4e   : > { %629 = vmatpush.msrb.mxu1 %v541_v15  ;;  %673 = vmatpush.msra.mxu2 %v543_v27 }
  0x4f   : > { %2041 = vmatmul.msk.f32.vlgmr.msra.gmra.mxu2 %vm573_vm1, %v526_v11 }
  0x50   : > { %630 = vmatpush.msrb.mxu1 %v540_v18 }
  0x52   : > { %631 = vmatpush.msrb.mxu1 %v539_v22 }
  0x53   : > { %2036 = vmatmul.msk.f32.gmra.mxu1 %vm573_vm1, %v571_v21  ;;  %2034 = vmatmul.msk.f32.gmra.mxu0 %vm573_vm1, %v569_v23 }
  0x57   : > { %2042 = vmatmul.msk.f32.gmra.mxu2 %vm573_vm1, %v527_v19 }
  0x5b   : > { %2037 = vmatmul.msk.f32.vlgmr.msrb.gmra.mxu1 %vm573_vm1, %v568_v14 }
  0x5f   : > { %2043 = vmatmul.msk.f32.gmra.mxu2 %vm573_vm1, %v528_v6 }
  0x63   : > { %2038 = vmatmul.msk.f32.gmra.mxu1 %vm573_vm1, %v569_v23 }
  0x67   : > { %2044 = vmatmul.msk.f32.gmra.mxu2 %vm573_vm1, %v529_v16 }
  0x6b   : > { %2039 = vmatmul.msk.f32.gmra.mxu1 %vm573_vm1, %v570_v10 }
  0x73   : > { %2040 = vmatmul.msk.f32.gmra.mxu1 %vm573_vm1, %v571_v21 }
  0xc8   : > { %v609_v28 = vpop.f32.mrf.mxu1  ;;  %v603_v34 = vpop.f32.mrf.mxu0 }
  0xc9   : > { %v604_v36 = vadd.f32 %v603_v34, %v572_v35  ;;  %v610_v47 = vadd.f32 %v609_v28, %v572_v35 }
  0xd0   : > { %v612_v29 = vpop.f32.mrf.mxu1  ;;  %v606_v39 = vpop.f32.mrf.mxu0 }
  0xd1   : > { %v607_v40 = vadd.f32 %v606_v39, %v572_v35  ;;  %v613_v51 = vadd.f32 %v612_v29, %v572_v35 }
  0xd2   : > { %v675_v45 = vpop.f32.mrf.mxu2 }
  0xd3   : > { %v676_v50 = vadd.f32 %v675_v45, %v2605_v46 }
  0xd8   : > { %v633_v32 = vpop.f32.mrf.mxu1 }
  0xd9   : > { %v634_v33 = vadd.f32 %v633_v32, %v615_v31 }
  0xda   : > { %v678_v48 = vpop.f32.mrf.mxu2 }
  0xdb   : > { %899 = vrot.lane.b32.xlu2 %v634_v33, %s2348_s15  ;;  %786 = vrot.lane.b32.xlu1 %v634_v33, %s2349_s29  ;;  %v679_v49 = vadd.f32 %v678_v48, %v2605_v46 }
  0xdd   : > { %v2162_v52 = vpack.i.bf16 %v676_v50, %v679_v49 }
  0xe0   : > { %v636_v37 = vpop.f32.mrf.mxu1 }
  0xe1   : > { %v637_v38 = vadd.f32 %v636_v37, %v615_v31 }
  0xe3   : > { %788 = vrot.lane.b32.xlu0 %v637_v38, %s2349_s29  ;;  %2045 = vmatpush.xpose.msk.msra.mxu3 %vm687_vm2, %v637_v38 }
  0xe4   : > { %895 = vrot.lane.b32.xlu2 %v604_v36, %s2348_s15  ;;  %782 = vrot.lane.b32.xlu1 %v604_v36, %s2349_s29 }
  0xe7   : > { %2046 = vmatpush.xpose.msk.msra.mxu3 %vm687_vm2, %v634_v33 }
  0xe8   : > { %v639_v41 = vpop.f32.mrf.mxu1 }
  0xe9   : > { %v640_v43 = vadd.f32 %v639_v41, %v615_v31 }
  0xea   : > { %2047 = vmatmul.msk.f32.vlgmr.msra.gmra.mxu3 %vm687_vm2, %v604_v36 }
  0xeb   : > { %901 = vrot.lane.b32.xlu0 %v637_v38, %s2348_s15  ;;  %771 = vmatpush.msrb.mxu3 %v679_v49 }
  0xec   : > { %897 = vrot.lane.b32.xlu2 %v607_v40, %s2348_s15  ;;  %1012 = vrot.lane.b32.xlu1 %v637_v38, %s2350_s30 }
  0xed   : > { %772 = vmatpush.msrb.mxu3 %v676_v50 }
  0xf0   : > { %v642_v42 = vpop.f32.mrf.mxu1 }
  0xf1   : > { %v643_v44 = vadd.f32 %v642_v42, %v615_v31 }
  0xf2   : > { %2048 = vmatmul.msk.f32.gmra.mxu3 %vm687_vm2, %v607_v40 }
  0xf3   : > { %784 = vrot.lane.b32.xlu0 %v607_v40, %s2349_s29 }
  0xf4   : > { %1008 = vrot.lane.b32.xlu2 %v607_v40, %s2350_s30  ;;  %1006 = vrot.lane.b32.xlu1 %v604_v36, %s2350_s30 }
  0xfb   : > { %1010 = vrot.lane.b32.xlu0 %v634_v33, %s2350_s30  ;;  %v2665_v33 = vpop.f32.mrf.mxu2 }
  0xfc   : > { %1214 = vrot.lane.b32.xlu2 %v640_v43, %s2349_s29  ;;  %1328 = vrot.lane.b32.xlu1 %v643_v44, %s2348_s15 }
 0x103   : > { %1216 = vrot.lane.b32.xlu0 %v643_v44, %s2349_s29  ;;  %v2672_v38 = vpop.f32.mrf.mxu2 }
 0x104   : > { %1322 = vrot.lane.b32.xlu2 %v610_v47, %s2348_s15  ;;  %1326 = vrot.lane.b32.xlu1 %v640_v43, %s2348_s15 }
 0x10b   : > { %1210 = vrot.lane.b32.xlu0 %v610_v47, %s2349_s29 }
 0x10c   : > { %1324 = vrot.lane.b32.xlu2 %v613_v51, %s2348_s15  ;;  %1438 = vrot.lane.b32.xlu1 %v643_v44, %s2350_s30 }
 0x113   : > { %1212 = vrot.lane.b32.xlu0 %v613_v51, %s2349_s29 }
 0x114   : > { %1434 = vrot.lane.b32.xlu2 %v613_v51, %s2350_s30  ;;  %1432 = vrot.lane.b32.xlu1 %v610_v47, %s2350_s30 }
 0x11b   : > { %1436 = vrot.lane.b32.xlu0 %v640_v43, %s2350_s30 }
 0x11c   : > { %2173 = vrot.lane.b32.xlu2 %v2162_v52, %s2350_s30  ;;  %2168 = vrot.lane.b32.xlu1 %v2162_v52, %s2348_s15 }
 0x123   : > { %2163 = vrot.lane.b32.xlu0 %v2162_v52, %s2349_s29 }
 0x135   : > { %v900_v53 = vpop.permute.xlu2 %899 }
 0x13e   : > { %v896_v55 = vpop.permute.xlu2 %895 }
 0x146   : > { %v898_v58 = vpop.permute.xlu2 %897 }
 0x14d   : > { %v787_v54 = vpop.permute.xlu1 %786 }
 0x14e   : > { %v1009_v61 = vpop.permute.xlu2 %1008 }
 0x155   : > { %v789_v56 = vpop.permute.xlu0 %788 }
 0x156   : > { %v783_v57 = vpop.permute.xlu1 %782  ;;  %2051 = vmatpush.xpose.msk.msrb.mxu0 %vm687_vm2, %v789_v56  ;;  %v1215_v4 = vpop.permute.xlu2 %1214 }
 0x15a   : > { %2052 = vmatpush.xpose.msk.msrb.mxu0 %vm687_vm2, %v787_v54 }
 0x15d   : > { %v902_v59 = vpop.permute.xlu0 %901  ;;  %2053 = vmatmul.msk.f32.vlgmr.msrb.gmra.mxu0 %vm687_vm2, %v783_v57 }
 0x15e   : > { %v1013_v60 = vpop.permute.xlu1 %1012  ;;  %2057 = vmatpush.xpose.msk.msrb.mxu2 %vm687_vm2, %v902_v59  ;;  %v1323_v13 = vpop.permute.xlu2 %1322 }
 0x15f   : > { %2063 = vmatpush.xpose.msk.msra.mxu0 %vm687_vm2, %v1013_v60 }
 0x162   : > { %2058 = vmatpush.xpose.msk.msrb.mxu2 %vm687_vm2, %v900_v53 }
 0x165   : > { %v785_v62 = vpop.permute.xlu0 %784  ;;  %2059 = vmatmul.msk.f32.vlgmr.msrb.gmra.mxu2 %vm687_vm2, %v896_v55 }
 0x166   : > { %2069 = vmatpush.xpose.msk.msra.mxu2 %vm687_vm2, %v643_v44  ;;  %v1007_v63 = vpop.permute.xlu1 %1006  ;;  %2054 = vmatmul.msk.f32.gmra.mxu0 %vm687_vm2, %v785_v62  ;;  %v1325_v18 = vpop.permute.xlu2 %1324 }
 0x16a   : > { %2070 = vmatpush.xpose.msk.msra.mxu2 %vm687_vm2, %v640_v43 }
 0x16d   : > { %v1011_v2 = vpop.permute.xlu0 %1010  ;;  %2060 = vmatmul.msk.f32.gmra.mxu2 %vm687_vm2, %v898_v58  ;;  %v717_v3 = vpop.f32.mrf.mxu3 }
 0x16e   : > { %v1329_v5 = vpop.permute.xlu1 %1328  ;;  %v723_v6 = vmul.f32 0.35355338, %v717_v3  ;;  %2064 = vmatpush.xpose.msk.msra.mxu0 %vm687_vm2, %v1011_v2  ;;  %v1435_v20 = vpop.permute.xlu2 %1434  ;;  %v1154_v3 = vperm.slane %v2635_v0, 1 }
 0x16f   : > { %2081 = vmatpush.xpose.msk.msrb.mxu2 %vm687_vm2, %v1329_v5 }
 0x170   : > { %v726_v7 = vadd.f32 %v2638_v1, %v723_v6 }
 0x171   : > { %2065 = vmatmul.msk.f32.vlgmr.msra.gmra.mxu0 %vm687_vm2, %v1007_v63 }
 0x172   : > { %v729_v8 = vsel %vm728_vm3, %v726_v7, -inf }
 0x173   : > { %730 = vmax.xlane.f32.xlu0 %v729_v8 }
 0x175   : > { %v1217_v9 = vpop.permute.xlu0 %1216  ;;  %2071 = vmatmul.msk.f32.vlgmr.msra.gmra.mxu2 %vm687_vm2, %v610_v47  ;;  %v720_v10 = vpop.f32.mrf.mxu3 }
 0x176   : > { %v1327_v11 = vpop.permute.xlu1 %1326  ;;  %v724_v12 = vmul.f32 0.35355338, %v720_v10  ;;  %2075 = vmatpush.xpose.msk.msrb.mxu0 %vm687_vm2, %v1217_v9  ;;  %v2174_v23 = vpop.permute.xlu2 %2173 }
 0x177   : > { %2082 = vmatpush.xpose.msk.msrb.mxu2 %vm687_vm2, %v1327_v11  ;;  %v2175_v28 = vunpack.i.l.bf16 %v2174_v23  ;;  %v2176_v32 = vunpack.i.h.bf16 %v2174_v23 }
 0x178   : > { %v2650_v14 = vadd.f32 %v2638_v1, %v724_v12 }
 0x179   : > { %2066 = vmatmul.msk.f32.gmra.mxu0 %vm687_vm2, %v1009_v61 }
 0x17a   : > { %2076 = vmatpush.xpose.msk.msrb.mxu0 %vm687_vm2, %v1215_v4  ;;  %v732_v15 = vsel %vm728_vm3, %v2650_v14, -inf }
 0x17b   : > { %733 = vmax.xlane.f32.xlu2 %v732_v15 }
 0x17d   : > { %v1211_v16 = vpop.permute.xlu0 %1210  ;;  %2072 = vmatmul.msk.f32.gmra.mxu2 %vm687_vm2, %v613_v51 }
 0x17e   : > { %v1439_v17 = vpop.permute.xlu1 %1438 }
 0x17f   : > { %2087 = vmatpush.xpose.msk.msra.mxu0 %vm687_vm2, %v1439_v17 }
 0x181   : > { %2077 = vmatmul.msk.f32.vlgmr.msrb.gmra.mxu0 %vm687_vm2, %v1211_v16 }
 0x185   : > { %v1213_v19 = vpop.permute.xlu0 %1212  ;;  %2083 = vmatmul.msk.f32.vlgmr.msrb.gmra.mxu2 %vm687_vm2, %v1323_v13 }
 0x186   : > { %v1433_v22 = vpop.permute.xlu1 %1432 }
 0x189   : > { %2078 = vmatmul.msk.f32.gmra.mxu0 %vm687_vm2, %v1213_v19 }
 0x18d   : > { %v1437_v21 = vpop.permute.xlu0 %1436  ;;  %2084 = vmatmul.msk.f32.gmra.mxu2 %vm687_vm2, %v1325_v18 }
 0x18e   : > { %2088 = vmatpush.xpose.msk.msra.mxu0 %vm687_vm2, %v1437_v21  ;;  %v2169_v27 = vpop.permute.xlu1 %2168 }
 0x18f   : > { %v2171_v29 = vunpack.i.h.bf16 %v2169_v27  ;;  %v2170_v31 = vunpack.i.l.bf16 %v2169_v27 }
 0x191   : > { %2089 = vmatmul.msk.f32.vlgmr.msra.gmra.mxu0 %vm687_vm2, %v1433_v22  ;;  %986 = vmatpush.msra.mxu3 %v2170_v31 }
 0x193   : > { %987 = vmatpush.msra.mxu3 %v2171_v29 }
 0x195   : > { %v2164_v24 = vpop.permute.xlu0 %2163 }
 0x196   : > { %v2166_v25 = vunpack.i.h.bf16 %v2164_v24  ;;  %v2165_v26 = vunpack.i.l.bf16 %v2164_v24 }
 0x198   : > { %875 = vmatpush.msra.mxu1 %v2165_v26 }
 0x199   : > { %2090 = vmatmul.msk.f32.gmra.mxu0 %vm687_vm2, %v1435_v20 }
 0x19a   : > { %876 = vmatpush.msra.mxu1 %v2166_v25 }
 0x19c   : > { %1097 = vmatpush.msrb.mxu1 %v2175_v28 }
 0x19e   : > { %1098 = vmatpush.msrb.mxu1 %v2176_v32 }
 0x1da   : > { %v815_v34 = vpop.f32.mrf.mxu0 }
 0x1db   : > { %v821_v35 = vmul.f32 0.35355338, %v815_v34 }
 0x1dd   : > { %v2668_v36 = vadd.f32 %v821_v35, %v2638_v1 }
 0x1df   : > { %v825_v37 = vsel %vm728_vm3, %v2668_v36, -inf }
 0x1e0   : > { %826 = vmax.xlane.f32.xlu1 %v825_v37 }
 0x1e3   : > { %v818_v39 = vpop.f32.mrf.mxu0 }
 0x1e4   : > { %v822_v40 = vmul.f32 0.35355338, %v818_v39 }
 0x1e6   : > { %v731_v41 = vpop.xlane.xlu0 %730  ;;  %v2675_v42 = vadd.f32 %v822_v40, %v2638_v1 }
 0x1e7   : > { %v735_v43 = vsub.f32 %v726_v7, %v731_v41 }
 0x1e8   : > { %v928_v44 = vpop.f32.mrf.mxu2  ;;  %v828_v45 = vsel %vm728_vm3, %v2675_v42, -inf }
 0x1e9   : > { %v737_v47 = vmul.f32 1.442695, %v735_v43  ;;  %v934_v48 = vmul.f32 0.35355338, %v928_v44  ;;  %829 = vmax.xlane.f32.xlu2 %v828_v45 }
 0x1eb   : > { %v2680_v49 = vadd.f32 %v934_v48, %v2638_v1  ;;  %2194 = vpow2.f32 %v737_v47 }
 0x1ed   : > { %v938_v50 = vsel %vm728_vm3, %v2680_v49, -inf }
 0x1ee   : > { %v1039_v51 = vpop.f32.mrf.mxu0  ;;  %939 = vmax.xlane.f32.xlu0 %v938_v50  ;;  %v734_v54 = vpop.xlane.xlu2 %733 }
 0x1ef   : > { %v1045_v52 = vmul.f32 0.35355338, %v1039_v51  ;;  %v736_v60 = vsub.f32 %v2650_v14, %v734_v54 }
 0x1f0   : > { %v931_v53 = vpop.f32.mrf.mxu2 }
 0x1f1   : > { %v935_v55 = vmul.f32 0.35355338, %v931_v53  ;;  %v2685_v56 = vadd.f32 %v1045_v52, %v2638_v1  ;;  %v2687_v57 = vpop.eup %2194  ;;  %v739_v4 = vmul.f32 1.442695, %v736_v60 }
 0x1f2   : > { %v741_v61 = vsel %vm728_vm3, %v2687_v57, 0.0 }
 0x1f3   : > { %v1049_v58 = vsel %vm728_vm3, %v2685_v56, -inf  ;;  %v2692_v59 = vadd.f32 %v935_v55, %v2638_v1  ;;  %2196 = vpow2.f32 %v739_v4 }
 0x1f4   : > { %1050 = vmax.xlane.f32.xlu1 %v1049_v58 }
 0x1f5   : > { %v941_v62 = vsel %vm728_vm3, %v2692_v59, -inf }
 0x1f6   : > { %v1042_v63 = vpop.f32.mrf.mxu0  ;;  %742 = vadd.xlane.f32.xlu0 %v741_v61  ;;  %942 = vmax.xlane.f32.xlu2 %v941_v62 }
 0x1f7   : > { %v1046_v2 = vmul.f32 0.35355338, %v1042_v63 }
 0x1f8   : > { %v1146_v5 = vpop.f32.mrf.mxu2 }
 0x1f9   : > { %v1152_v6 = vmul.f32 0.35355338, %v1146_v5  ;;  %v2701_v7 = vadd.f32 %v1046_v2, %v2638_v1  ;;  %v2711_v15 = vpop.eup %2196 }
 0x1fa   : > { %v744_v18 = vsel %vm728_vm3, %v2711_v15, 0.0 }
 0x1fb   : > { %v2703_v8 = vadd.f32 %v1154_v3, %v1152_v6  ;;  %v1052_v10 = vsel %vm728_vm3, %v2701_v7, -inf }
 0x1fd   : > { %v1157_v9 = vsel %vm728_vm3, %v2703_v8, -inf }
 0x1fe   : > { %1158 = vmax.xlane.f32.xlu1 %v1157_v9  ;;  %v1243_v11 = vpop.f32.mrf.mxu0  ;;  %1053 = vmax.xlane.f32.xlu0 %v1052_v10 }
 0x1ff   : > { %v1249_v12 = vmul.f32 0.35355338, %v1243_v11 }
 0x200   : > { %v1149_v0 = vpop.f32.mrf.mxu2 }
 0x201   : > { %v1153_v13 = vmul.f32 0.35355338, %v1149_v0  ;;  %v2709_v14 = vadd.f32 %v1249_v12, %v1154_v3  ;;  %v685_v12 = vadd.f32 %v2672_v38, %v2605_v46 }
 0x203   : > { %v1253_v1 = vsel %vm728_vm3, %v2709_v14, -inf  ;;  %v2715_v16 = vadd.f32 %v1154_v3, %v1153_v13 }
 0x204   : > { %1254 = vmax.xlane.f32.xlu2 %v1253_v1  ;;  %v682_v1 = vadd.f32 %v2665_v33, %v2605_v46 }
 0x205   : > { %v1160_v17 = vsel %vm728_vm3, %v2715_v16, -inf }
 0x206   : > { %v1246_v19 = vpop.f32.mrf.mxu0  ;;  %1161 = vmax.xlane.f32.xlu0 %v1160_v17  ;;  %745 = vadd.xlane.f32.xlu1 %v744_v18 }
 0x207   : > { %v1250_v20 = vmul.f32 0.35355338, %v1246_v19 }
 0x208   : > { %v1355_v21 = vpop.f32.mrf.mxu2 }
 0x209   : > { %v1361_v22 = vmul.f32 0.35355338, %v1355_v21  ;;  %v2721_v23 = vadd.f32 %v1250_v20, %v1154_v3 }
 0x20b   : > { %v2723_v24 = vadd.f32 %v1361_v22, %v1154_v3  ;;  %v1256_v26 = vsel %vm728_vm3, %v2721_v23, -inf }
 0x20d   : > { %v1365_v25 = vsel %vm728_vm3, %v2723_v24, -inf }
 0x20e   : > { %v1465_v27 = vpop.f32.mrf.mxu0  ;;  %1366 = vmax.xlane.f32.xlu2 %v1365_v25  ;;  %1257 = vmax.xlane.f32.xlu1 %v1256_v26 }
 0x20f   : > { %v1471_v28 = vmul.f32 0.35355338, %v1465_v27 }
 0x210   : > { %v1358_v29 = vpop.f32.mrf.mxu2 }
 0x211   : > { %v1362_v31 = vmul.f32 0.35355338, %v1358_v29  ;;  %v2729_v32 = vadd.f32 %v1471_v28, %v1154_v3 }
 0x213   : > { %v2731_v34 = vadd.f32 %v1362_v31, %v1154_v3  ;;  %v1475_v37 = vsel %vm728_vm3, %v2729_v32, -inf }
 0x215   : > { %v1368_v35 = vsel %vm728_vm3, %v2731_v34, -inf }
 0x216   : > { %v1468_v39 = vpop.f32.mrf.mxu0  ;;  %1369 = vmax.xlane.f32.xlu2 %v1368_v35  ;;  %1476 = vmax.xlane.f32.xlu1 %v1475_v37 }
 0x217   : > { %v1472_v40 = vmul.f32 0.35355338, %v1468_v39 }
 0x219   : > { %v2737_v41 = vadd.f32 %v1472_v40, %v1154_v3 }
 0x21b   : > { %v1478_v43 = vsel %vm728_vm3, %v2737_v41, -inf }
 0x21e   : > { %1479 = vmax.xlane.f32.xlu2 %v1478_v43 }
 0x253   : > { %v827_v44 = vpop.xlane.xlu1 %826 }
 0x254   : > { %v831_v45 = vsub.f32 %v2668_v36, %v827_v44 }
 0x256   : > { %v833_v47 = vmul.f32 1.442695, %v831_v45 }
 0x258   : > { %2198 = vpow2.f32 %v833_v47 }
 0x25c   : > { %v830_v48 = vpop.xlane.xlu2 %829 }
 0x25d   : > { %v832_v50 = vsub.f32 %v2675_v42, %v830_v48  ;;  %v2182_v48 = vpack.i.bf16 %v682_v1, %v685_v12 }
 0x25e   : > { %v2743_v51 = vpop.eup %2198 }
 0x25f   : > { %v835_v52 = vmul.f32 1.442695, %v832_v50  ;;  %v837_v53 = vsel %vm728_vm3, %v2743_v51, 0.0 }
 0x260   : > { %838 = vadd.xlane.f32.xlu0 %v837_v53 }
 0x261   : > { %2200 = vpow2.f32 %v835_v52  ;;  %v940_v54 = vpop.xlane.xlu0 %939 }
 0x262   : > { %v944_v55 = vsub.f32 %v2680_v49, %v940_v54 }
 0x264   : > { %v946_v58 = vmul.f32 1.442695, %v944_v55 }
 0x266   : > { %2202 = vpow2.f32 %v946_v58 }
 0x267   : > { %v2748_v60 = vpop.eup %2200  ;;  %v1051_v36 = vpop.xlane.xlu1 %1050 }
 0x268   : > { %v1055_v61 = vsub.f32 %v2685_v56, %v1051_v36  ;;  %v840_v42 = vsel %vm728_vm3, %v2748_v60, 0.0 }
 0x269   : > { %v743_v62 = vpop.xlane.xlu0 %742  ;;  %841 = vadd.xlane.f32.xlu1 %v840_v42  ;;  %v943_v63 = vpop.xlane.xlu2 %942 }
 0x26a   : > { %v1057_v2 = vmul.f32 1.442695, %v1055_v61  ;;  %2204 = vrcp.f32 %v743_v62  ;;  %v945_v3 = vsub.f32 %v2692_v59, %v943_v63 }
 0x26c   : > { %v2754_v4 = vpop.eup %2202  ;;  %2206 = vpow2.f32 %v1057_v2  ;;  %v948_v49 = vmul.f32 1.442695, %v945_v3 }
 0x26d   : > { %v950_v5 = vsel %vm728_vm3, %v2754_v4, 0.0 }
 0x26e   : > { %2208 = vpow2.f32 %v948_v49  ;;  %951 = vadd.xlane.f32.xlu2 %v950_v5 }
 0x270   : > { %v2205_v56 = vpop.eup %2204 }
 0x271   : > { %v1159_v6 = vpop.xlane.xlu1 %1158  ;;  %v1054_v9 = vpop.xlane.xlu0 %1053  ;;  %v749_v10 = vmul.f32 %v2205_v56, %v2687_v57 }
 0x272   : > { %v2759_v11 = vpop.eup %2206  ;;  %v1163_v59 = vsub.f32 %v2703_v8, %v1159_v6  ;;  %v1056_v0 = vsub.f32 %v2701_v7, %v1054_v9 }
 0x273   : > { %2049 = vmatmul.msk.f32.vlgmr.msrb.gmra.mxu3 %vm728_vm3, %v749_v10  ;;  %v1061_v57 = vsel %vm728_vm3, %v2759_v11, 0.0 }
 0x274   : > { %v2766_v13 = vpop.eup %2208  ;;  %v1165_v17 = vmul.f32 1.442695, %v1163_v59  ;;  %v1059_v18 = vmul.f32 1.442695, %v1056_v0  ;;  %1199 = vmatpush.msrb.mxu3 %v685_v12 }
 0x275   : > { %v953_v38 = vsel %vm728_vm3, %v2766_v13, 0.0 }
 0x276   : > { %2210 = vpow2.f32 %v1165_v17  ;;  %1200 = vmatpush.msrb.mxu3 %v682_v1  ;;  %1062 = vadd.xlane.f32.xlu2 %v1061_v57 }
 0x277   : > { %2212 = vpow2.f32 %v1059_v18  ;;  %954 = vadd.xlane.f32.xlu0 %v953_v38  ;;  %v1255_v7 = vpop.xlane.xlu2 %1254 }
 0x278   : > { %v1259_v33 = vsub.f32 %v2709_v14, %v1255_v7 }
 0x279   : > { %v1162_v8 = vpop.xlane.xlu0 %1161  ;;  %v746_v19 = vpop.xlane.xlu1 %745 }
 0x27a   : > { %v1164_v20 = vsub.f32 %v2715_v16, %v1162_v8  ;;  %2214 = vrcp.f32 %v746_v19  ;;  %v1261_v28 = vmul.f32 1.442695, %v1259_v33 }
 0x27c   : > { %v2775_v46 = vpop.eup %2210  ;;  %v1167_v21 = vmul.f32 1.442695, %v1164_v20 }
 0x27d   : > { %v2778_v22 = vpop.eup %2212  ;;  %v1169_v25 = vsel %vm728_vm3, %v2775_v46, 0.0 }
 0x27e   : > { %2216 = vpow2.f32 %v1167_v21  ;;  %1170 = vadd.xlane.f32.xlu2 %v1169_v25  ;;  %v1064_v26 = vsel %vm728_vm3, %v2778_v22, 0.0 }
 0x27f   : > { %1065 = vadd.xlane.f32.xlu1 %v1064_v26  ;;  %2218 = vpow2.f32 %v1261_v28 }
 0x280   : > { %v2215_v27 = vpop.eup %2214 }
 0x281   : > { %v1367_v16 = vpop.xlane.xlu2 %1366  ;;  %v750_v29 = vmul.f32 %v2215_v27, %v2711_v15  ;;  %v1258_v37 = vpop.xlane.xlu1 %1257 }
 0x282   : > { %v1371_v31 = vsub.f32 %v2723_v24, %v1367_v16  ;;  %v1260_v43 = vsub.f32 %v2721_v23, %v1258_v37 }
 0x283   : > { %2050 = vmatmul.msk.f32.gmra.mxu3 %vm728_vm3, %v750_v29 }
 0x284   : > { %v2786_v14 = vpop.eup %2216  ;;  %v1373_v39 = vmul.f32 1.442695, %v1371_v31  ;;  %v1263_v44 = vmul.f32 1.442695, %v1260_v43 }
 0x285   : > { %v1172_v35 = vsel %vm728_vm3, %v2786_v14, 0.0  ;;  %v2791_v40 = vpop.eup %2218 }
 0x286   : > { %1173 = vadd.xlane.f32.xlu0 %v1172_v35  ;;  %2220 = vpow2.f32 %v1373_v39  ;;  %v1265_v15 = vsel %vm728_vm3, %v2791_v40, 0.0 }
 0x287   : > { %2222 = vpow2.f32 %v1263_v44 }
 0x289   : > { %v1477_v45 = vpop.xlane.xlu1 %1476  ;;  %v1370_v54 = vpop.xlane.xlu2 %1369 }
 0x28a   : > { %v1481_v24 = vsub.f32 %v2729_v32, %v1477_v45  ;;  %v1372_v61 = vsub.f32 %v2731_v34, %v1370_v54 }
 0x28c   : > { %v2796_v47 = vpop.eup %2220  ;;  %v1483_v23 = vmul.f32 1.442695, %v1481_v24  ;;  %v1375_v62 = vmul.f32 1.442695, %v1372_v61 }
 0x28d   : > { %v1377_v50 = vsel %vm728_vm3, %v2796_v47, 0.0  ;;  %v2803_v52 = vpop.eup %2222 }
 0x28e   : > { %1266 = vadd.xlane.f32.xlu0 %v1265_v15  ;;  %2224 = vpow2.f32 %v1483_v23  ;;  %v1268_v53 = vsel %vm728_vm3, %v2803_v52, 0.0 }
 0x291   : > { %v1480_v58 = vpop.xlane.xlu2 %1479 }
 0x292   : > { %v1482_v36 = vsub.f32 %v2737_v41, %v1480_v58 }
 0x294   : > { %v2807_v55 = vpop.eup %2224  ;;  %v1485_v42 = vmul.f32 1.442695, %v1482_v36 }
 0x295   : > { %v1487_v32 = vsel %vm728_vm3, %v2807_v55, 0.0 }
 0x296   : > { %2183 = vrot.lane.b32.xlu2 %v2182_v48, %s2348_s15  ;;  %1378 = vadd.xlane.f32.xlu0 %v1377_v50  ;;  %2226 = vpow2.f32 %v1485_v42 }
 0x297   : > { %2228 = vpow2.f32 %v1375_v62 }
 0x298   : > { %2178 = vrot.lane.b32.xlu1 %v2182_v48, %s2349_s29 }
 0x29c   : > { %v2814_v63 = vpop.eup %2226 }
 0x29d   : > { %v2816_v2 = vpop.eup %2228  ;;  %v1490_v3 = vsel %vm728_vm3, %v2814_v63, 0.0 }
 0x29e   : > { %1269 = vadd.xlane.f32.xlu0 %v1268_v53  ;;  %v1380_v49 = vsel %vm728_vm3, %v2816_v2, 0.0 }
 0x2a6   : > { %1488 = vadd.xlane.f32.xlu0 %v1487_v32 }
 0x2ba   : > { %2188 = vrot.lane.b32.xlu0 %v2182_v48, %s2350_s30 }
 0x2bf   : > { %1491 = vadd.xlane.f32.xlu2 %v1490_v3 }
 0x2c2   : > { %1381 = vadd.xlane.f32.xlu1 %v1380_v49 }
 0x2d3   : > { %v839_v41 = vpop.xlane.xlu0 %838 }
 0x2d4   : > { %2230 = vrcp.f32 %v839_v41 }
 0x2da   : > { %v2231_v34 = vpop.eup %2230 }
 0x2db   : > { %v845_v5 = vmul.f32 %v2231_v34, %v2743_v51 }
 0x2dc   : > { %v842_v56 = vpop.xlane.xlu1 %841 }
 0x2dd   : > { %2232 = vrcp.f32 %v842_v56  ;;  %2055 = vmatmul.msk.f32.vlgmr.msra.gmra.mxu1 %vm728_vm3, %v845_v5 }
 0x2e1   : > { %v952_v6 = vpop.xlane.xlu2 %951 }
 0x2e2   : > { %2234 = vrcp.f32 %v952_v6  ;;  %v550_v6 = vld [vmem:[%s2485_s19 + $0x78] sm:$0xff] }
 0x2e3   : > { %v2233_v9 = vpop.eup %2232  ;;  %1571 = vmatpush.msra.mxu2 %v550_v6 }
 0x2e4   : > { %v846_v10 = vmul.f32 %v2233_v9, %v2748_v60  ;;  %v549_v9 = vld [vmem:[%s2485_s19 + $0x70] sm:$0xff] }
 0x2e5   : > { %1572 = vmatpush.msra.mxu2 %v549_v9 }
 0x2e6   : > { %2056 = vmatmul.msk.f32.gmra.mxu1 %vm728_vm3, %v846_v10  ;;  %v548_v10 = vld [vmem:[%s2485_s19 + $0x68] sm:$0xff] }
 0x2e7   : > { %1573 = vmatpush.msra.mxu2 %v548_v10 }
 0x2e8   : > { %v2235_v12 = vpop.eup %2234 }
 0x2e9   : > { %v958_v59 = vmul.f32 %v2235_v12, %v2754_v4  ;;  %v1063_v0 = vpop.xlane.xlu2 %1062 }
 0x2ea   : > { %v955_v1 = vpop.xlane.xlu0 %954  ;;  %2236 = vrcp.f32 %v1063_v0 }
 0x2eb   : > { %2238 = vrcp.f32 %v955_v1  ;;  %2061 = vmatmul.msk.f32.vlgmr.msra.gmra.mxu3 %vm728_vm3, %v958_v59  ;;  %v547_v59 = vld [vmem:[%s2485_s19 + $0x60] sm:$0xff] }
 0x2ec   : > { %1574 = vmatpush.msra.mxu2 %v547_v59  ;;  %v557_v59 = vld [vmem:[%s2516_s3 + $0x18] sm:$0xff] }
 0x2f0   : > { %v2237_v51 = vpop.eup %2236 }
 0x2f1   : > { %v2239_v17 = vpop.eup %2238  ;;  %v1069_v18 = vmul.f32 %v2237_v51, %v2759_v11  ;;  %v1171_v57 = vpop.xlane.xlu2 %1170 }
 0x2f2   : > { %v1066_v38 = vpop.xlane.xlu1 %1065  ;;  %2240 = vrcp.f32 %v1171_v57  ;;  %v959_v60 = vmul.f32 %v2239_v17, %v2766_v13 }
 0x2f3   : > { %2242 = vrcp.f32 %v1066_v38  ;;  %2067 = vmatmul.msk.f32.vlgmr.msrb.gmra.mxu1 %vm728_vm3, %v1069_v18 }
 0x2f4   : > { %2062 = vmatmul.msk.f32.gmra.mxu3 %vm728_vm3, %v959_v60 }
 0x2f6   : > { %v774_v4 = vpop.f32.mrf.mxu3 }
 0x2f7   : > { %780 = vst.msk [vmem:[#allocation3] sm:$0xff] %vm687_vm2, %v774_v4 }
 0x2f8   : > { %v2241_v7 = vpop.eup %2240 }
 0x2f9   : > { %v2243_v8 = vpop.eup %2242  ;;  %v1177_v19 = vmul.f32 %v2241_v7, %v2775_v46  ;;  %v1174_v20 = vpop.xlane.xlu0 %1173 }
 0x2fa   : > { %v2184_v33 = vpop.permute.xlu2 %2183  ;;  %2244 = vrcp.f32 %v1174_v20  ;;  %v1070_v21 = vmul.f32 %v2243_v8, %v2778_v22 }
 0x2fb   : > { %v2185_v11 = vunpack.i.l.bf16 %v2184_v33  ;;  %v2186_v13 = vunpack.i.h.bf16 %v2184_v33 }
 0x2fc   : > { %2068 = vmatmul.msk.f32.gmra.mxu1 %vm728_vm3, %v1070_v21  ;;  %2073 = vmatmul.msk.f32.vlgmr.msrb.gmra.mxu3 %vm728_vm3, %v1177_v19  ;;  %v1546_v21 = vperm.slane %v2582_v30, 3 }
 0x2fd   : > { %1413 = vmatpush.msra.mxu3 %v2185_v11 }
 0x2ff   : > { %1414 = vmatpush.msra.mxu3 %v2186_v13 }
 0x300   : > { %v2245_v25 = vpop.eup %2244 }
 0x301   : > { %v1267_v26 = vpop.xlane.xlu0 %1266  ;;  %v1178_v27 = vmul.f32 %v2245_v25, %v2786_v14  ;;  %1724 = vmatpush.msrb.mxu3 %v557_v59 }
 0x302   : > { %2246 = vrcp.f32 %v1267_v26  ;;  %v2276_v26 = vld [vmem:[#allocation2] sm:$0xff] }
 0x304   : > { %2074 = vmatmul.msk.f32.gmra.mxu3 %vm728_vm3, %v1178_v27 }
 0x306   : > { %v777_v46 = vpop.f32.mrf.mxu3 }
 0x307   : > { %781 = vst.msk [vmem:[#allocation3 + $0x8] sm:$0xff] %vm687_vm2, %v777_v46 }
 0x308   : > { %v2247_v22 = vpop.eup %2246 }
 0x309   : > { %v1379_v28 = vpop.xlane.xlu0 %1378  ;;  %v1273_v35 = vmul.f32 %v2247_v22, %v2791_v40  ;;  %v2277_v22 = vld [vmem:[#allocation2 + $0x8] sm:$0xff] }
 0x30a   : > { %v2179_v16 = vpop.permute.xlu1 %2178  ;;  %2248 = vrcp.f32 %v1379_v28 }
 0x30b   : > { %v2180_v29 = vunpack.i.l.bf16 %v2179_v16  ;;  %v2181_v31 = vunpack.i.h.bf16 %v2179_v16 }
 0x30d   : > { %1303 = vmatpush.msra.mxu1 %v2180_v29 }
 0x30f   : > { %1304 = vmatpush.msra.mxu1 %v2181_v31 }
 0x310   : > { %v2249_v37 = vpop.eup %2248  ;;  %2079 = vmatmul.msk.f32.vlgmr.msra.gmra.mxu1 %vm728_vm3, %v1273_v35 }
 0x311   : > { %v1385_v14 = vmul.f32 %v2249_v37, %v2796_v47  ;;  %v1270_v39 = vpop.xlane.xlu0 %1269 }
 0x312   : > { %2250 = vrcp.f32 %v1270_v39 }
 0x313   : > { %2085 = vmatmul.msk.f32.vlgmr.msra.gmra.mxu3 %vm728_vm3, %v1385_v14  ;;  %v2278_v14 = vld [vmem:[#allocation2 + $0x10] sm:$0xff] }
 0x318   : > { %v2251_v43 = vpop.eup %2250 }
 0x319   : > { %v1274_v15 = vmul.f32 %v2251_v43, %v2803_v52  ;;  %v1489_v44 = vpop.xlane.xlu0 %1488 }
 0x31a   : > { %2252 = vrcp.f32 %v1489_v44  ;;  %v2279_v44 = vld [vmem:[#allocation2 + $0x18] sm:$0xff] }
 0x31b   : > { %2080 = vmatmul.msk.f32.gmra.mxu1 %vm728_vm3, %v1274_v15 }
 0x320   : > { %v2253_v24 = vpop.eup %2252 }
 0x321   : > { %v1495_v50 = vmul.f32 %v2253_v24, %v2807_v55 }
 0x32c   : > { %v2189_v45 = vpop.permute.xlu0 %2188 }
 0x32d   : > { %v2190_v40 = vunpack.i.l.bf16 %v2189_v45  ;;  %v2191_v48 = vunpack.i.h.bf16 %v2189_v45 }
 0x32f   : > { %1523 = vmatpush.msrb.mxu1 %v2190_v40  ;;  %v2354_v40 = vmov 32.0  }
 0x331   : > { %1524 = vmatpush.msrb.mxu1 %v2191_v48 }
 0x332   : > { %2091 = vmatmul.msk.f32.vlgmr.msrb.gmra.mxu1 %vm728_vm3, %v1495_v50  ;;  %v1492_v47 = vpop.xlane.xlu2 %1491 }
 0x333   : > { %2254 = vrcp.f32 %v1492_v47 }
 0x335   : > { %v1382_v23 = vpop.xlane.xlu1 %1381 }
 0x336   : > { %2256 = vrcp.f32 %v1382_v23 }
 0x337   : > { %2258 = vrcp.f32 %v2354_v40 }
 0x339   : > { %v2255_v53 = vpop.eup %2254 }
 0x33a   : > { %v1496_v52 = vmul.f32 %v2255_v53, %v2814_v63 }
 0x33c   : > { %v2257_v54 = vpop.eup %2256  ;;  %2092 = vmatmul.msk.f32.gmra.mxu1 %vm728_vm3, %v1496_v52 }
 0x33d   : > { %v1386_v32 = vmul.f32 %v2257_v54, %v2816_v2  ;;  %v2259_v48 = vpop.eup %2258 }
 0x33e   : > { %v1605_v50 = vmul.f32 32.0, %v2259_v48  ;;  %vm1609_vm7 = vweird.f32 %v2259_v48 }
 0x33f   : > { %2086 = vmatmul.msk.f32.gmra.mxu3 %vm728_vm3, %v1386_v32 }
 0x340   : > { %v1606_v47 = vsub.f32 1.0, %v1605_v50 }
 0x342   : > { %v1607_v23 = vmul.f32 %v2259_v48, %v1606_v47 }
 0x344   : > { %v1608_v53 = vadd.f32 %v2259_v48, %v1607_v23  ;;  %v566_v23 = vld [vmem:[%s2530_s17 + $0x38] sm:$0xff] }
 0x345   : > { %1769 = vmatpush.msrb.mxu0 %v566_v23 }
 0x346   : > { %v2879_v52 = vsel %vm1609_vm7, %v2259_v48, %v1608_v53  ;;  %v565_v53 = vld [vmem:[%s2530_s17 + $0x30] sm:$0xff] }
 0x347   : > { %1770 = vmatpush.msrb.mxu0 %v565_v53 }
 0x35a   : > { %v878_v58 = vpop.f32.mrf.mxu1 }
 0x35b   : > { %886 = vrot.lane.b32.xlu0 %v878_v58, %s2351_s22 }
 0x363   : > { %v881_v55 = vpop.f32.mrf.mxu1 }
 0x364   : > { %888 = vrot.lane.b32.xlu1 %v881_v55, %s2351_s22 }
 0x36e   : > { %v989_v36 = vpop.f32.mrf.mxu3 }
 0x36f   : > { %997 = vrot.lane.b32.xlu0 %v989_v36, %s2352_s21 }
 0x370   : > { %v1100_v61 = vpop.f32.mrf.mxu1 }
 0x377   : > { %v992_v42 = vpop.f32.mrf.mxu3  ;;  %1108 = vrot.lane.b32.xlu0 %v1100_v61, %s2353_s25 }
 0x379   : > { %v1103_v62 = vpop.f32.mrf.mxu1 }
 0x37a   : > { %1110 = vrot.lane.b32.xlu2 %v1103_v62, %s2353_s25 }
 0x37f   : > { %v1202_v63 = vpop.f32.mrf.mxu3  ;;  %999 = vrot.lane.b32.xlu0 %v992_v42, %s2352_s21 }
 0x380   : > { %1208 = vst.msk [vmem:[#allocation3 + $0x10] sm:$0xff] %vm687_vm2, %v1202_v63 }
 0x387   : > { %v1205_v2 = vpop.f32.mrf.mxu3 }
 0x388   : > { %1209 = vst.msk [vmem:[#allocation3 + $0x18] sm:$0xff] %vm687_vm2, %v1205_v2 }
 0x38d   : > { %v1306_v3 = vpop.f32.mrf.mxu1 }
 0x38e   : > { %1314 = vrot.lane.b32.xlu0 %v1306_v3, %s2351_s22 }
 0x396   : > { %v1416_v49 = vpop.f32.mrf.mxu3 }
 0x397   : > { %1424 = vrot.lane.b32.xlu0 %v1416_v49, %s2352_s21 }
 0x398   : > { %v1309_v41 = vpop.f32.mrf.mxu1 }
 0x39f   : > { %1316 = vrot.lane.b32.xlu0 %v1309_v41, %s2351_s22 }
 0x3af   : > { %v1526_v34 = vpop.f32.mrf.mxu1 }
 0x3b0   : > { %1534 = vrot.lane.b32.xlu1 %v1526_v34, %s2353_s25 }
 0x3b9   : > { %v1529_v5 = vpop.f32.mrf.mxu1 }
 0x3ba   : > { %1536 = vrot.lane.b32.xlu2 %v1529_v5, %s2353_s25 }
 0x3c2   : > { %v1419_v56 = vpop.f32.mrf.mxu3 }
 0x3c3   : > { %1426 = vrot.lane.b32.xlu1 %v1419_v56, %s2352_s21 }
 0x3cd   : > { %v887_v12 = vpop.permute.xlu0 %886 }
 0x3ce   : > { %893 = vst.msk [vmem:[#allocation3] sm:$0xff] %vm892_vm4, %v887_v12 }
 0x3d4   : > { %v1111_v57 = vpop.permute.xlu2 %1110 }
 0x3d6   : > { %v889_v0 = vpop.permute.xlu1 %888 }
 0x3d7   : > { %894 = vst.msk [vmem:[#allocation3 + $0x8] sm:$0xff] %vm892_vm4, %v889_v0  ;;  %v556_v0 = vld [vmem:[%s2516_s3 + $0x10] sm:$0xff] }
 0x3d8   : > { %1725 = vmatpush.msrb.mxu3 %v556_v0 }
 0x3e1   : > { %v998_v1 = vpop.permute.xlu0 %997 }
 0x3e2   : > { %1004 = vst.msk [vmem:[#allocation3] sm:$0xff] %vm1003_vm5, %v998_v1  ;;  %v555_v1 = vld [vmem:[%s2516_s3 + $0x8] sm:$0xff] }
 0x3e3   : > { %1726 = vmatpush.msrb.mxu3 %v555_v1 }
 0x3e9   : > { %v1109_v51 = vpop.permute.xlu0 %1108 }
 0x3ea   : > { %1115 = vst.msk [vmem:[#allocation3] sm:$0xff] %vm1114_vm6, %v1109_v51  ;;  %v554_v51 = vld [vmem:[%s2516_s3] sm:$0xff] }
 0x3eb   : > { %1727 = vmatpush.msrb.mxu3 %v554_v51  ;;  %v561_v51 = vld [vmem:[%s2530_s17 + $0x10] sm:$0xff] }
 0x3f1   : > { %v1000_v17 = vpop.permute.xlu0 %999  ;;  %v1542_v18 = vld [vmem:[#allocation3] sm:$0xff] }
 0x3f2   : > { %1005 = vst.msk [vmem:[#allocation3 + $0x8] sm:$0xff] %vm1003_vm5, %v1000_v17  ;;  %2093 = vmatmul.msk.f32.vlgmr.msra.gmra.mxu2 %vm573_vm1, %v1542_v18 }
 0x3f3   : > { %1116 = vst.msk [vmem:[#allocation3 + $0x8] sm:$0xff] %vm1114_vm6, %v1111_v57 }
 0x3fa   : > { %v1543_v38 = vld [vmem:[#allocation3 + $0x8] sm:$0xff] }
 0x3fb   : > { %2094 = vmatmul.msk.f32.gmra.mxu2 %vm573_vm1, %v1543_v38 }
 0x400   : > { %v1315_v60 = vpop.permute.xlu0 %1314 }
 0x401   : > { %1320 = vst.msk [vmem:[#allocation3 + $0x10] sm:$0xff] %vm892_vm4, %v1315_v60 }
 0x409   : > { %v1425_v4 = vpop.permute.xlu0 %1424 }
 0x40a   : > { %1430 = vst.msk [vmem:[#allocation3 + $0x10] sm:$0xff] %vm1003_vm5, %v1425_v4 }
 0x411   : > { %v1317_v7 = vpop.permute.xlu0 %1316 }
 0x412   : > { %1321 = vst.msk [vmem:[#allocation3 + $0x18] sm:$0xff] %vm892_vm4, %v1317_v7 }
 0x414   : > { %v1537_v33 = vpop.permute.xlu2 %1536 }
 0x422   : > { %v1535_v8 = vpop.permute.xlu1 %1534 }
 0x423   : > { %1540 = vst.msk [vmem:[#allocation3 + $0x10] sm:$0xff] %vm1114_vm6, %v1535_v8 }
 0x42a   : > { %v1544_v19 = vld [vmem:[#allocation3 + $0x10] sm:$0xff] }
 0x42b   : > { %2095 = vmatmul.msk.f32.gmra.mxu2 %vm573_vm1, %v1544_v19 }
 0x435   : > { %v1427_v20 = vpop.permute.xlu1 %1426 }
 0x436   : > { %1431 = vst.msk [vmem:[#allocation3 + $0x18] sm:$0xff] %vm1003_vm5, %v1427_v20  ;;  %vm1748_vm5 = vcmask 523264  }
 0x437   : > { %1541 = vst.msk [vmem:[#allocation3 + $0x18] sm:$0xff] %vm1114_vm6, %v1537_v33  ;;  %v2904_v33 = vld [vmem:[%s2505_s26] sm:$0x3] }
 0x43e   : > { %v1545_v11 = vld [vmem:[#allocation3 + $0x18] sm:$0xff] }
 0x43f   : > { %2096 = vmatmul.msk.f32.gmra.mxu2 %vm573_vm1, %v1545_v11 }
 0x475   : > { %v1576_v13 = vpop.f32.mrf.mxu2 }
 0x476   : > { %v1577_v25 = vadd.f32 %v1576_v13, %v1546_v21 }
 0x478   : > { %v1588_v27 = vadd.f32 %v2276_v26, %v1577_v25  ;;  %v2907_v25 = vld [vmem:[%s2510_s14] sm:$0x3]  ;;  %v2910_v26 = vperm.slane %v2904_v33, 0 }
 0x47a   : > { %v1592_v46 = vsel %vm573_vm1, %v1588_v27, 0.0 }
 0x47b   : > { %1593 = vadd.xlane.f32.xlu0 %v1592_v46 }
 0x47e   : > { %v1579_v28 = vpop.f32.mrf.mxu2 }
 0x47f   : > { %v1580_v16 = vadd.f32 %v1579_v28, %v1546_v21 }
 0x481   : > { %v1589_v29 = vadd.f32 %v2277_v22, %v1580_v16  ;;  %v1692_v22 = vperm.slane %v2907_v25, 0 }
 0x483   : > { %v1595_v31 = vsel %vm573_vm1, %v1589_v29, 0.0 }
 0x484   : > { %1596 = vadd.xlane.f32.xlu1 %v1595_v31 }
 0x4ae   : > { %v1582_v35 = vpop.f32.mrf.mxu2 }
 0x4af   : > { %v1583_v37 = vadd.f32 %v1582_v35, %v1546_v21 }
 0x4b1   : > { %v1590_v39 = vadd.f32 %v2278_v14, %v1583_v37 }
 0x4b3   : > { %v1598_v30 = vsel %vm573_vm1, %v1590_v39, 0.0 }
 0x4b4   : > { %1599 = vadd.xlane.f32.xlu2 %v1598_v30 }
 0x4c2   : > { %v1585_v43 = vpop.f32.mrf.mxu2 }
 0x4c3   : > { %v1586_v15 = vadd.f32 %v1585_v43, %v1546_v21 }
 0x4c5   : > { %v1591_v45 = vadd.f32 %v2279_v44, %v1586_v15 }
 0x4c7   : > { %v1601_v24 = vsel %vm573_vm1, %v1591_v45, 0.0 }
 0x4c8   : > { %1602 = vadd.xlane.f32.xlu0 %v1601_v24 }
 0x4ee   : > { %v1594_v54 = vpop.xlane.xlu0 %1593 }
 0x4ef   : > { %v1611_v32 = vmul.f32 %v2879_v52, %v1594_v54 }
 0x4f1   : > { %v1615_v58 = vsub.f32 %v1588_v27, %v1611_v32  ;;  %v564_v32 = vld [vmem:[%s2530_s17 + $0x28] sm:$0xff] }
 0x4f2   : > { %1771 = vmatpush.msrb.mxu0 %v564_v32 }
 0x4f3   : > { %v1619_v55 = vmul.f32 %v1615_v58, %v1615_v58 }
 0x4f5   : > { %v1623_v36 = vsel %vm573_vm1, %v1619_v55, 0.0 }
 0x4f6   : > { %1624 = vadd.xlane.f32.xlu1 %v1623_v36 }
 0x4f7   : > { %v1597_v61 = vpop.xlane.xlu1 %1596 }
 0x4f8   : > { %v1612_v42 = vmul.f32 %v2879_v52, %v1597_v61  ;;  %v563_v61 = vld [vmem:[%s2530_s17 + $0x20] sm:$0xff] }
 0x4f9   : > { %1772 = vmatpush.msrb.mxu0 %v563_v61 }
 0x4fa   : > { %v1616_v62 = vsub.f32 %v1589_v29, %v1612_v42 }
 0x4fc   : > { %v1620_v63 = vmul.f32 %v1616_v62, %v1616_v62 }
 0x4fe   : > { %v1626_v2 = vsel %vm573_vm1, %v1620_v63, 0.0 }
 0x4ff   : > { %1627 = vadd.xlane.f32.xlu2 %v1626_v2  ;;  %v562_v2 = vld [vmem:[%s2530_s17 + $0x18] sm:$0xff] }
 0x500   : > { %1773 = vmatpush.msrb.mxu0 %v562_v2 }
 0x502   : > { %1774 = vmatpush.msrb.mxu0 %v561_v51 }
 0x527   : > { %v1600_v3 = vpop.xlane.xlu2 %1599 }
 0x528   : > { %v1613_v49 = vmul.f32 %v2879_v52, %v1600_v3 }
 0x52a   : > { %v2886_v41 = vsub.f32 %v1590_v39, %v1613_v49 }
 0x52c   : > { %v1621_v34 = vmul.f32 %v2886_v41, %v2886_v41 }
 0x52e   : > { %v1629_v5 = vsel %vm573_vm1, %v1621_v34, 0.0 }
 0x52f   : > { %1630 = vadd.xlane.f32.xlu0 %v1629_v5 }
 0x53b   : > { %v1603_v56 = vpop.xlane.xlu0 %1602 }
 0x53c   : > { %v1614_v6 = vmul.f32 %v2879_v52, %v1603_v56 }
 0x53e   : > { %v2892_v9 = vsub.f32 %v1591_v45, %v1614_v6 }
 0x540   : > { %v1622_v10 = vmul.f32 %v2892_v9, %v2892_v9 }
 0x542   : > { %v1632_v12 = vsel %vm573_vm1, %v1622_v10, 0.0 }
 0x543   : > { %1633 = vadd.xlane.f32.xlu1 %v1632_v12 }
 0x569   : > { %v1625_v17 = vpop.xlane.xlu1 %1624 }
 0x56a   : > { %v1635_v18 = vmul.f32 %v1625_v17, %v2879_v52  ;;  %v560_v17 = vld [vmem:[%s2530_s17 + $0x8] sm:$0xff] }
 0x56b   : > { %1775 = vmatpush.msrb.mxu0 %v560_v17 }
 0x56c   : > { %v1639_v57 = vadd.f32 1e-05, %v1635_v18  ;;  %v559_v18 = vld [vmem:[%s2530_s17] sm:$0xff] }
 0x56d   : > { %1776 = vmatpush.msrb.mxu0 %v559_v18 }
 0x56e   : > { %2260 = vrsqrt.f32 %v1639_v57  ;;  %vm1649_vm9 = vweird.f32 %v1639_v57 }
 0x572   : > { %v1628_v38 = vpop.xlane.xlu2 %1627 }
 0x573   : > { %v1636_v60 = vmul.f32 %v1628_v38, %v2879_v52 }
 0x574   : > { %v2261_v4 = vpop.eup %2260 }
 0x575   : > { %v1644_v7 = vmul.f32 %v2261_v4, %v1639_v57  ;;  %v1640_v8 = vadd.f32 1e-05, %v1636_v60  ;;  %vm1650_vm8 = vweird.f32 %v2261_v4  ;;  %v2192_v57 = vld [vmem:[%s504_s20] ss:$0 sm:$0xff] }
 0x576   : > { %vm1651_vm10 = vmor %vm1649_vm9, %vm1650_vm8 }
 0x577   : > { %v1645_v19 = vmul.f32 %v2261_v4, %v1644_v7  ;;  %2262 = vrsqrt.f32 %v1640_v8  ;;  %vm1659_vm12 = vweird.f32 %v1640_v8 }
 0x579   : > { %v1646_v20 = vmul.f32 0.5, %v1645_v19 }
 0x57b   : > { %v1647_v11 = vsub.f32 1.5, %v1646_v20 }
 0x57d   : > { %v2263_v21 = vpop.eup %2262  ;;  %v1648_v13 = vmul.f32 %v2261_v4, %v1647_v11 }
 0x57e   : > { %v1654_v27 = vmul.f32 %v2263_v21, %v1640_v8  ;;  %vm1660_vm11 = vweird.f32 %v2263_v21 }
 0x57f   : > { %v1652_v46 = vsel %vm1651_vm10, %v2261_v4, %v1648_v13  ;;  %vm1661_vm13 = vmor %vm1659_vm12, %vm1660_vm11 }
 0x580   : > { %v1683_v28 = vmul.f32 %v1652_v46, %v1615_v58  ;;  %v1655_v16 = vmul.f32 %v2263_v21, %v1654_v27  ;;  %v2193_v27 = vld [vmem:[%s512_s12] ss:$0 sm:$0xff] }
 0x582   : > { %v1688_v29 = vmul.f32 %v2910_v26, %v1683_v28  ;;  %v1656_v31 = vmul.f32 0.5, %v1655_v16 }
 0x584   : > { %v1657_v35 = vsub.f32 1.5, %v1656_v31  ;;  %v2914_v37 = vadd.f32 %v1692_v22, %v1688_v29 }
 0x586   : > { %v1658_v14 = vmul.f32 %v2263_v21, %v1657_v35  ;;  %2097 = vmatmul.msk.f32.vlgmr.msrb.gmra.mxu3 %vm573_vm1, %v2914_v37 }
 0x588   : > { %v1662_v39 = vsel %vm1661_vm13, %v2263_v21, %v1658_v14 }
 0x589   : > { %v1684_v30 = vmul.f32 %v1662_v39, %v1616_v62 }
 0x58b   : > { %v1689_v43 = vmul.f32 %v2910_v26, %v1684_v30 }
 0x58d   : > { %v2919_v15 = vadd.f32 %v1692_v22, %v1689_v43 }
 0x58f   : > { %2098 = vmatmul.msk.f32.gmra.mxu3 %vm573_vm1, %v2919_v15 }
 0x5a2   : > { %v1631_v44 = vpop.xlane.xlu0 %1630 }
 0x5a3   : > { %v1637_v45 = vmul.f32 %v1631_v44, %v2879_v52 }
 0x5a5   : > { %v1641_v24 = vadd.f32 1e-05, %v1637_v45 }
 0x5a7   : > { %2264 = vrsqrt.f32 %v1641_v24  ;;  %vm1669_vm15 = vweird.f32 %v1641_v24 }
 0x5ad   : > { %v2265_v40 = vpop.eup %2264 }
 0x5ae   : > { %v1664_v48 = vmul.f32 %v2265_v40, %v1641_v24  ;;  %vm1670_vm14 = vweird.f32 %v2265_v40 }
 0x5af   : > { %vm1671_vm0 = vmor %vm1669_vm15, %vm1670_vm14 }
 0x5b0   : > { %v1665_v50 = vmul.f32 %v2265_v40, %v1664_v48 }
 0x5b2   : > { %v1666_v47 = vmul.f32 0.5, %v1665_v50 }
 0x5b4   : > { %v1667_v54 = vsub.f32 1.5, %v1666_v47 }
 0x5b6   : > { %v1668_v58 = vmul.f32 %v2265_v40, %v1667_v54  ;;  %v1634_v55 = vpop.xlane.xlu1 %1633 }
 0x5b7   : > { %v1638_v36 = vmul.f32 %v1634_v55, %v2879_v52 }
 0x5b8   : > { %v1672_v42 = vsel %vm1671_vm0, %v2265_v40, %v1668_v58 }
 0x5b9   : > { %v1642_v62 = vadd.f32 1e-05, %v1638_v36  ;;  %v1685_v63 = vmul.f32 %v1672_v42, %v2886_v41 }
 0x5bb   : > { %2266 = vrsqrt.f32 %v1642_v62  ;;  %v1690_v3 = vmul.f32 %v2910_v26, %v1685_v63  ;;  %vm1679_vm3 = vweird.f32 %v1642_v62 }
 0x5bd   : > { %v1695_v49 = vadd.f32 %v1692_v22, %v1690_v3 }
 0x5bf   : > { %2099 = vmatmul.msk.f32.gmra.mxu3 %vm573_vm1, %v1695_v49 }
 0x5c1   : > { %v2267_v34 = vpop.eup %2266 }
 0x5c2   : > { %v1674_v5 = vmul.f32 %v2267_v34, %v1642_v62  ;;  %vm1680_vm2 = vweird.f32 %v2267_v34 }
 0x5c3   : > { %vm1681_vm4 = vmor %vm1679_vm3, %vm1680_vm2 }
 0x5c4   : > { %v1675_v56 = vmul.f32 %v2267_v34, %v1674_v5 }
 0x5c6   : > { %v1676_v6 = vmul.f32 0.5, %v1675_v56 }
 0x5c8   : > { %v1677_v10 = vsub.f32 1.5, %v1676_v6 }
 0x5ca   : > { %v1678_v41 = vmul.f32 %v2267_v34, %v1677_v10 }
 0x5cc   : > { %v1682_v12 = vsel %vm1681_vm4, %v2267_v34, %v1678_v41 }
 0x5cd   : > { %v1686_v59 = vmul.f32 %v1682_v12, %v2892_v9 }
 0x5cf   : > { %v1691_v0 = vmul.f32 %v2910_v26, %v1686_v59 }
 0x5d1   : > { %v1696_v1 = vadd.f32 %v1692_v22, %v1691_v0 }
 0x5d3   : > { %2100 = vmatmul.msk.f32.gmra.mxu3 %vm573_vm1, %v1696_v1 }
 0x609   : > { %v1729_v38 = vpop.f32.mrf.mxu3 }
 0x60a   : > { %v1730_v60 = vadd.f32 %v2192_v57, %v1729_v38 }
 0x60c   : > { %v1741_v9 = vmax.f32 %v1730_v60, 0.0  ;;  %v1882_v60 = vperm.slane %v2904_v33, 1 }
 0x60e   : > { %2101 = vmatmul.msk.f32.vlgmr.msrb.gmra.mxu0 %vm1748_vm5, %v1741_v9 }
 0x612   : > { %v1732_v4 = vpop.f32.mrf.mxu3 }
 0x613   : > { %v1733_v7 = vadd.f32 %v2192_v57, %v1732_v4 }
 0x615   : > { %v1742_v8 = vmax.f32 %v1733_v7, 0.0  ;;  %v1887_v7 = vperm.slane %v2907_v25, 1 }
 0x617   : > { %2102 = vmatmul.msk.f32.gmra.mxu0 %vm1748_vm5, %v1742_v8 }
 0x642   : > { %v1735_v19 = vpop.f32.mrf.mxu3 }
 0x643   : > { %v1736_v20 = vadd.f32 %v2192_v57, %v1735_v19 }
 0x645   : > { %v1743_v11 = vmax.f32 %v1736_v20, 0.0 }
 0x647   : > { %2103 = vmatmul.msk.f32.gmra.mxu0 %vm1748_vm5, %v1743_v11 }
 0x656   : > { %v1738_v21 = vpop.f32.mrf.mxu3 }
 0x657   : > { %v1739_v13 = vadd.f32 %v2192_v57, %v1738_v21 }
 0x659   : > { %v1744_v26 = vmax.f32 %v1739_v13, 0.0 }
 0x65b   : > { %2104 = vmatmul.msk.f32.gmra.mxu0 %vm1748_vm5, %v1744_v26 }
 0x68b   : > { %v1778_v46 = vpop.f32.mrf.mxu0 }
 0x68c   : > { %v1779_v28 = vadd.f32 %v2193_v27, %v1778_v46 }
 0x68e   : > { %v1790_v16 = vadd.f32 %v1779_v28, %v2914_v37 }
 0x690   : > { %v1794_v22 = vsel %vm573_vm1, %v1790_v16, 0.0 }
 0x691   : > { %1795 = vadd.xlane.f32.xlu2 %v1794_v22 }
 0x694   : > { %v1781_v29 = vpop.f32.mrf.mxu0 }
 0x695   : > { %v1782_v31 = vadd.f32 %v2193_v27, %v1781_v29 }
 0x697   : > { %v1791_v35 = vadd.f32 %v1782_v31, %v2919_v15 }
 0x699   : > { %v1797_v14 = vsel %vm573_vm1, %v1791_v35, 0.0 }
 0x69a   : > { %1798 = vadd.xlane.f32.xlu0 %v1797_v14 }
 0x6c4   : > { %v1784_v39 = vpop.f32.mrf.mxu0 }
 0x6c5   : > { %v1785_v30 = vadd.f32 %v2193_v27, %v1784_v39 }
 0x6c7   : > { %v1792_v43 = vadd.f32 %v1785_v30, %v1695_v49 }
 0x6c9   : > { %v1800_v44 = vsel %vm573_vm1, %v1792_v43, 0.0 }
 0x6ca   : > { %1801 = vadd.xlane.f32.xlu1 %v1800_v44 }
 0x6d8   : > { %v1787_v45 = vpop.f32.mrf.mxu0 }
 0x6d9   : > { %v1788_v24 = vadd.f32 %v2193_v27, %v1787_v45 }
 0x6db   : > { %v1793_v40 = vadd.f32 %v1788_v24, %v1696_v1 }
 0x6dd   : > { %v1803_v37 = vsel %vm573_vm1, %v1793_v40, 0.0 }
 0x6de   : > { %1804 = vadd.xlane.f32.xlu2 %v1803_v37 }
 0x704   : > { %v1796_v48 = vpop.xlane.xlu2 %1795 }
 0x705   : > { %v1806_v50 = vmul.f32 %v1796_v48, %v2879_v52 }
 0x707   : > { %v1810_v47 = vsub.f32 %v1790_v16, %v1806_v50 }
 0x709   : > { %v1814_v15 = vmul.f32 %v1810_v47, %v1810_v47 }
 0x70b   : > { %v1818_v23 = vsel %vm573_vm1, %v1814_v15, 0.0 }
 0x70c   : > { %1819 = vadd.xlane.f32.xlu0 %v1818_v23 }
 0x70d   : > { %v1799_v53 = vpop.xlane.xlu0 %1798 }
 0x70e   : > { %v1807_v54 = vmul.f32 %v1799_v53, %v2879_v52 }
 0x710   : > { %v1811_v32 = vsub.f32 %v1791_v35, %v1807_v54 }
 0x712   : > { %v1815_v58 = vmul.f32 %v1811_v32, %v1811_v32 }
 0x714   : > { %v1821_v55 = vsel %vm573_vm1, %v1815_v58, 0.0 }
 0x715   : > { %1822 = vadd.xlane.f32.xlu1 %v1821_v55 }
 0x73d   : > { %v1802_v36 = vpop.xlane.xlu1 %1801 }
 0x73e   : > { %v1808_v61 = vmul.f32 %v1802_v36, %v2879_v52 }
 0x740   : > { %v2960_v42 = vsub.f32 %v1792_v43, %v1808_v61 }
 0x742   : > { %v1816_v62 = vmul.f32 %v2960_v42, %v2960_v42 }
 0x744   : > { %v1824_v63 = vsel %vm573_vm1, %v1816_v62, 0.0 }
 0x745   : > { %1825 = vadd.xlane.f32.xlu2 %v1824_v63 }
 0x751   : > { %v1805_v2 = vpop.xlane.xlu2 %1804 }
 0x752   : > { %v1809_v3 = vmul.f32 %v1805_v2, %v2879_v52 }
 0x754   : > { %v2966_v49 = vsub.f32 %v1793_v40, %v1809_v3 }
 0x756   : > { %v1817_v34 = vmul.f32 %v2966_v49, %v2966_v49 }
 0x758   : > { %v1827_v5 = vsel %vm573_vm1, %v1817_v34, 0.0 }
 0x759   : > { %1828 = vadd.xlane.f32.xlu0 %v1827_v5 }
 0x77f   : > { %v1820_v56 = vpop.xlane.xlu0 %1819 }
 0x780   : > { %v1830_v6 = vmul.f32 %v1820_v56, %v2879_v52 }
 0x782   : > { %v1834_v10 = vadd.f32 1e-05, %v1830_v6 }
 0x784   : > { %2268 = vrsqrt.f32 %v1834_v10  ;;  %vm1844_vm7 = vweird.f32 %v1834_v10 }
 0x788   : > { %v1823_v41 = vpop.xlane.xlu1 %1822 }
 0x789   : > { %v1831_v12 = vmul.f32 %v1823_v41, %v2879_v52 }
 0x78a   : > { %v2269_v59 = vpop.eup %2268 }
 0x78b   : > { %v1839_v0 = vmul.f32 %v2269_v59, %v1834_v10  ;;  %v1835_v1 = vadd.f32 1e-05, %v1831_v12  ;;  %vm1845_vm6 = vweird.f32 %v2269_v59 }
 0x78c   : > { %vm1846_vm8 = vmor %vm1844_vm7, %vm1845_vm6 }
 0x78d   : > { %v1840_v51 = vmul.f32 %v2269_v59, %v1839_v0  ;;  %2270 = vrsqrt.f32 %v1835_v1  ;;  %vm1854_vm10 = vweird.f32 %v1835_v1 }
 0x78f   : > { %v1841_v17 = vmul.f32 0.5, %v1840_v51 }
 0x791   : > { %v1842_v18 = vsub.f32 1.5, %v1841_v17 }
 0x793   : > { %v2271_v57 = vpop.eup %2270  ;;  %v1843_v38 = vmul.f32 %v2269_v59, %v1842_v18 }
 0x794   : > { %v1849_v9 = vmul.f32 %v2271_v57, %v1835_v1  ;;  %vm1855_vm9 = vweird.f32 %v2271_v57 }
 0x795   : > { %v1847_v4 = vsel %vm1846_vm8, %v2269_v59, %v1843_v38  ;;  %vm1856_vm11 = vmor %vm1854_vm10, %vm1855_vm9 }
 0x796   : > { %v1878_v8 = vmul.f32 %v1847_v4, %v1810_v47  ;;  %v1850_v19 = vmul.f32 %v2271_v57, %v1849_v9 }
 0x798   : > { %v1883_v20 = vmul.f32 %v1882_v60, %v1878_v8  ;;  %v1851_v11 = vmul.f32 0.5, %v1850_v19 }
 0x79a   : > { %v1888_v21 = vadd.f32 %v1887_v7, %v1883_v20  ;;  %v1852_v13 = vsub.f32 1.5, %v1851_v11 }
 0x79c   : > { %1892 = vst.msk [vmem:[#allocation2] sm:$0xff] %vm573_vm1, %v1888_v21  ;;  %v1853_v26 = vmul.f32 %v2271_v57, %v1852_v13 }
 0x79d   : > { %1896 = vst.msk [vmem:[%s3023_s11] sm:$0xff] %vm573_vm1, %v1888_v21 }
 0x79e   : > { %v1857_v33 = vsel %vm1856_vm11, %v2271_v57, %v1853_v26 }
 0x79f   : > { %v1879_v27 = vmul.f32 %v1857_v33, %v1811_v32 }
 0x7a1   : > { %v1884_v25 = vmul.f32 %v1882_v60, %v1879_v27 }
 0x7a3   : > { %v1889_v46 = vadd.f32 %v1887_v7, %v1884_v25 }
 0x7a5   : > { %1893 = vst.msk [vmem:[#allocation2 + $0x8] sm:$0xff] %vm573_vm1, %v1889_v46 }
 0x7a6   : > { %1897 = vst.msk [vmem:[%s3023_s11 + $0x8] sm:$0xff] %vm573_vm1, %v1889_v46 }
 0x7b8   : > { %v1826_v28 = vpop.xlane.xlu2 %1825 }
 0x7b9   : > { %v1832_v16 = vmul.f32 %v1826_v28, %v2879_v52 }
 0x7bb   : > { %v1836_v22 = vadd.f32 1e-05, %v1832_v16 }
 0x7bd   : > { %2272 = vrsqrt.f32 %v1836_v22  ;;  %vm1864_vm13 = vweird.f32 %v1836_v22 }
 0x7c3   : > { %v2273_v29 = vpop.eup %2272 }
 0x7c4   : > { %v1859_v31 = vmul.f32 %v2273_v29, %v1836_v22  ;;  %vm1865_vm12 = vweird.f32 %v2273_v29 }
 0x7c5   : > { %vm1866_vm14 = vmor %vm1864_vm13, %vm1865_vm12 }
 0x7c6   : > { %v1860_v35 = vmul.f32 %v2273_v29, %v1859_v31 }
 0x7c8   : > { %v1861_v14 = vmul.f32 0.5, %v1860_v35 }
 0x7ca   : > { %v1862_v39 = vsub.f32 1.5, %v1861_v14 }
 0x7cc   : > { %v1863_v30 = vmul.f32 %v2273_v29, %v1862_v39  ;;  %v1829_v43 = vpop.xlane.xlu0 %1828 }
 0x7cd   : > { %v1833_v44 = vmul.f32 %v1829_v43, %v2879_v52 }
 0x7ce   : > { %v1867_v45 = vsel %vm1866_vm14, %v2273_v29, %v1863_v30 }
 0x7cf   : > { %v1880_v24 = vmul.f32 %v1867_v45, %v2960_v42  ;;  %v1837_v40 = vadd.f32 1e-05, %v1833_v44 }
 0x7d1   : > { %v1885_v37 = vmul.f32 %v1882_v60, %v1880_v24  ;;  %2274 = vrsqrt.f32 %v1837_v40  ;;  %vm1874_vm0 = vweird.f32 %v1837_v40 }
 0x7d3   : > { %v1890_v48 = vadd.f32 %v1887_v7, %v1885_v37 }
 0x7d5   : > { %1894 = vst.msk [vmem:[#allocation2 + $0x10] sm:$0xff] %vm573_vm1, %v1890_v48 }
 0x7d6   : > { %1898 = vst.msk [vmem:[%s3023_s11 + $0x10] sm:$0xff] %vm573_vm1, %v1890_v48 }
 0x7d7   : > { %v2275_v50 = vpop.eup %2274 }
 0x7d8   : > { %v1869_v47 = vmul.f32 %v2275_v50, %v1837_v40  ;;  %vm1875_vm15 = vweird.f32 %v2275_v50 }
 0x7d9   : > { %vm1876_vm2 = vmor %vm1874_vm0, %vm1875_vm15 }
 0x7da   : > { %v1870_v15 = vmul.f32 %v2275_v50, %v1869_v47 }
 0x7dc   : > { %v1871_v23 = vmul.f32 0.5, %v1870_v15 }
 0x7de   : > { %v1872_v53 = vsub.f32 1.5, %v1871_v23 }
 0x7e0   : > { %v1873_v52 = vmul.f32 %v2275_v50, %v1872_v53 }
 0x7e2   : > { %v1877_v54 = vsel %vm1876_vm2, %v2275_v50, %v1873_v52 }
 0x7e3   : > { %v1881_v32 = vmul.f32 %v1877_v54, %v2966_v49 }
 0x7e5   : > { %v1886_v58 = vmul.f32 %v1882_v60, %v1881_v32 }
 0x7e7   : > { %v1891_v55 = vadd.f32 %v1887_v7, %v1886_v58 }
 0x7e9   : > { %1895 = vst.msk [vmem:[#allocation2 + $0x18] sm:$0xff] %vm573_vm1, %v1891_v55 }
 0x7ea   : > { %1899 = vst.msk [vmem:[%s3023_s11 + $0x18] sm:$0xff] %vm573_vm1, %v1891_v55 }
 0x7eb PF: > { %s3041_s20 = sld [smem:[#allocation9_spill]] }
 0x7ec   : > { %s3042_s17 = sld [smem:[#allocation7_spill]] }
 0x7ed   : > { %s3043_s18 = sld [smem:[#allocation8_spill]] }
 0x7ee   : > { %s3044_s19 = sld [smem:[#allocation10_spill]] }
 0x7f1   : > { %p21_p8 = scmp.ge.s32.totalorder %s3041_s20, 4  }
 0x7f3   :  { %23 = sbr.rel (!%p21_p8) target bundleno = 7 (0x7), region = 125 }
 0x7f8   :  { %1911 = vsyncpa [#allocation5], 1 }
 0x7f9   :  { %1913 = vsyncpa [#allocation5 + $0x1], 1 }

// kernel: ksdn_detr_transformer_forward.3
= control target key start
LH: loop header
LB: loop body
LE: loop exit
PB: predicated region body
PF: predicated region fallthrough
CT: control target
= control target key end

     0   :  { %s3756_s0 = inlined_call_operand.vmem [shape: f32[16,32], index: 0, kind: input, shape index: {}]   ;;  %s3757_s1 = inlined_call_operand.vmem [shape: f32[16,32], index: 1, kind: input, shape index: {}]   ;;  %s3758_s2 = inlined_call_operand.vmem [shape: f32[32,32], index: 2, kind: input, shape index: {}]   ;;  %s3759_s3 = inlined_call_operand.vmem [shape: f32[32,32], index: 3, kind: input, shape index: {}]   ;;  %s3760_s4 = inlined_call_operand.vmem [shape: f32[2,16], index: 4, kind: input, shape index: {}]   ;;  %s3761_s5 = inlined_call_operand.vmem [shape: f32[8,8], index: 5, kind: input, shape index: {}]   ;;  %s3762_s6 = inlined_call_operand.hbm [shape: f32[2,8,32,32], index: 6, kind: input, shape index: {}]   ;;  %s3763_s7 = inlined_call_operand.vmem [shape: f32[2,8,32], index: 7, kind: input, shape index: {}]   ;;  %s3764_s8 = inlined_call_operand.vmem [shape: f32[2,3,32], index: 8, kind: input, shape index: {}]   ;;  %s3765_s9 = inlined_call_operand.vmem [shape: f32[2,3,32], index: 9, kind: input, shape index: {}]   ;;  %s3766_s10 = inlined_call_operand.vmem [shape: f32[2,32,64], index: 10, kind: input, shape index: {}]   ;;  %s3767_s11 = inlined_call_operand.vmem [shape: f32[2,1,64], index: 11, kind: input, shape index: {}]   ;;  %s3768_s12 = inlined_call_operand.vmem [shape: f32[2,64,32], index: 12, kind: input, shape index: {}]   ;;  %s3769_s13 = inlined_call_operand.vmem [shape: f32[2,1,32], index: 13, kind: input, shape index: {}]   ;;  %s3770_s14 = inlined_call_operand.vmem [shape: f32[1,32], index: 14, kind: input, shape index: {}]   ;;  %s3771_s15 = inlined_call_operand.vmem [shape: f32[1,32], index: 15, kind: input, shape index: {}]   ;;  %s3772_s16 = inlined_call_operand.hbm [shape: f32[2,16,32], index: 16, kind: output, shape index: {}]  }
   0x1   :  { %3785 = sst [smem:[#allocation20_spill]] %s3756_s0 }
   0x2   :  { %3786 = sst [smem:[#allocation21_spill]] %s3760_s4 }
   0x3   :  { %3787 = sst [smem:[#allocation22_spill]] %s3762_s6 }
   0x4   :  { %3788 = sst [smem:[#allocation23_spill]] %s3763_s7 }
   0x5   :  { %3789 = sst [smem:[#allocation24_spill]] %s3764_s8 }
   0x6   :  { %3790 = sst [smem:[#allocation25_spill]] %s3770_s14 }
   0x7   :  { %3791 = sst [smem:[#allocation26_spill]] %s3771_s15 }
   0x8   :  { %3792 = sst [smem:[#allocation27_spill]] %s3772_s16 }
   0x9   :  { %21 = vsyncpa [#allocation5], 0 }
   0xa   :  { %23 = vsyncpa [#allocation5 + $0x1], 0 }
   0xb   :  { %24 = vsyncpa [#allocation6], 0 }
   0xc   :  { %26 = vsyncpa [#allocation6 + $0x1], 0  ;;  %s3110_s21 = smov 0   ;;  %s3112_s22 = smov 0  }
   0xd   :  { %s3114_s23 = smov 0   ;;  %s3116_s24 = smov 0  }
   0xe LB: > { %3793 = sst [smem:[#allocation10_spill]] %s3001_s21  ;;  %s3131_s25 = sadd.s32 4294967295, %s3013_s24   ;;  %s3013_s24 = sphi %s3116_s24, %s3824_s24   ;;  %s3009_s23 = sphi %s3114_s23, %s3827_s23   ;;  %s3005_s22 = sphi %s3112_s22, %s3826_s22   ;;  %s3001_s21 = sphi %s3110_s21, %s3825_s21  }
   0xf   : > { %3794 = sst [smem:[#allocation11_spill]] %s3005_s22  ;;  %s2638_s26 = sadd.s32 4294967294, %s3013_s24  }
  0x10   : > { %3795 = sst [smem:[#allocation12_spill]] %s3009_s23  ;;  %s3135_s27 = sadd.s32 1, %s3013_s24  }
  0x11   : > { %3796 = sst [smem:[#allocation13_spill]] %s3013_s24  ;;  %s165_s28 = sadd.s32 1, %s3009_s23 }
  0x12   : > { %3797 = sst [smem:[#allocation14_spill]] %s3135_s27  ;;  %s162_s29 = ssub.s32 %s3013_s24, %s3135_s27 }
  0x13   : > { %p172_p0 = scmp.ne.s32.totalorder %s3009_s23, %s3005_s22  ;;  %p163_p1 = scmp.eq.s32.totalorder %s162_s29, 0 }
  0x14   : > { %p173_p2 = scmp.eq.s32.totalorder %s3013_s24, 0  ;;  %p178_p3 = scmp.ne.s32.totalorder %s3005_s22, %s3001_s21 }
  0x15   : > { %p179_p4 = scmp.eq.s32.totalorder %s3131_s25, 0  ;;  %p426_p7 = scmp.eq.s32.totalorder %s3131_s25, 1 }
  0x16   : > { %s3147_s30 = scalar_select %p163_p1, %s3009_s23, %s165_s28  }
  0x17   : > { %p3149_p5 = por %p173_p2, %p172_p0  ;;  %p3153_p6 = por %p179_p4, %p178_p3 }
  0x18   : > { %3798 = sst [smem:[#allocation15_spill]] %s3147_s30  ;;  %p432_p8 = scmp.eq.s32.totalorder %s2638_s26, 1 }
  0x19   : > { %p2756_p10 = scmp.lt.s32.totalorder %s3013_s24, 2  ;;  %p3160_p11 = por %p426_p7, %p172_p0 }
  0x1a   : > { %p3164_p12 = por %p432_p8, %p178_p3  ;;  %s476_s20 = sand.u32 1, %s3009_s23  }
  0x1b   : > { %s3801_s18 = scalar_select %p3160_p11, 1, 0 }
  0x1c   : > { %s3803_s19 = scalar_select %p3164_p12, 1, 0 }
  0x1d   : > { %3802 = sst [smem:[#allocation16_spill]] %s3801_s18  ;;  %s2740_s28 = sshll.u32 %s3013_s24, 8 }
  0x1e   : > { %3804 = sst [smem:[#allocation17_spill]] %s3803_s19  ;;  %s2641_s29 = sshll.u32 %s476_s20, 8 }
  0x1f   : > { %s3805_s6 = sld [smem:[#allocation22_spill]]  ;;  %s480_s26 = scalar_lea.vmem [#allocation4], %s2641_s29 }
  0x20   : > { %s488_s15 = sshll.u32 %s480_s26, 4  ;;  %p3175_p13 = pnand %p2756_p10, %p3149_p5  ;;  %s489_s15 = int_to_ptr.vmem [resolvable:$true] %s488_s15 }
  0x21   : > { %p2644_p0 = scmp.ge.s32.totalorder %s3013_s24, 1  ;;  %p545_p1 = scmp.lt.s32.totalorder %s3013_s24, 3 }
  0x22   : > { %s477_s23 = scalar_lea.sflag [#allocation5], %s476_s20  ;;  %p2921_p3 = pneg %p3175_p13 }
  0x25   : > { %s485_s21 = scalar_lea.hbm %s3805_s6, %s2740_s28  ;;  %s2924_s30 = scalar_lea.hbm %s3805_s6, 512 }
  0x26   : > { %s486_s16 = sshll.u32 %s485_s21, 4  ;;  %s487_s16 = int_to_ptr.hbm [resolvable:$true] %s486_s16 }
  0x27   : > { %s2917_s19 = sshra.s32 %s487_s16, 4  ;;  %s2918_s19 = int_to_ptr.hbm [resolvable:$true] %s2917_s19 }
  0x28   : > { %s2919_s18 = scalar_lea.hbm %s2918_s19, 256  ;;  %p2925_p5 = scmp.lt.s32.totalorder %s2918_s19, %s3805_s6 }
  0x29   : > { %p2920_p2 = scmp.ne.s32.totalorder %s2918_s19, %s2919_s18  ;;  %p2926_p8 = scmp.lt.s32.totalorder %s2924_s30, %s2919_s18 }
  0x2b   : > { %p2922_p4 = pnand %p2921_p3, %p2920_p2  ;;  %p2927_p10 = por %p2926_p8, %p2925_p5 }
  0x2d   : > { %p2923_p7 = pneg %p2922_p4 }
  0x2f   : > { %p2928_p9 = pnand %p2927_p10, %p2923_p7 }
  0x31   : > { %2931 = shalt.err (!%p2928_p9)
}
  0x32   : > { %s3015_s20 = smov 128   ;;  %s3016_s29 = smov 8  }
  0x33   : > { %2751 = dma.hbm_to_vmem [thread:$0]  (!%p3175_p13), %s487_s16, 4096, %s489_s15, %s477_s23, %s3015_s20, %s3015_s20, %s3016_s29  }
  0x34   : > { %p546_p2 = pnand %p2644_p0, %p545_p1 }
  0x36   : > { %549 = sbr.rel (%p546_p2) target bundleno = 3932 (0xf5c), region = 84 }
  0x3b   : > { %s3196_s26 = sand.u32 1, %s3005_s22  }
  0x3c   : > { %3807 = sst [smem:[#allocation18_spill]] %s3196_s26  ;;  %s2645_s18 = sshll.u32 %s3196_s26, 8 }
  0x3d   : > { %s552_s19 = scalar_lea.sflag [#allocation5], %s3196_s26  ;;  %s3200_s21 = scalar_lea.vmem [#allocation4], %s2645_s18 }
  0x3e   : > { %2992 = dma.done.wait (%p3153_p6), %s552_s19, 4096  }
  0x3f   : > { %2994 = vsyncadd (%p3153_p6), %s552_s19, 4294963200  ;;  %s2646_s14 = sshll.u32 %s3196_s26, 4  ;;  %p633_p9 = scmp.lt.s32.totalorder %s3131_s25, 1 }
  0x40   : > { %s3808_s7 = sld [smem:[#allocation23_spill]]  ;;  %s3248_s29 = scalar_lea.vmem [#allocation7], %s2646_s14 }
  0x41   : > { %s3209_s15 = scalar_select %p633_p9, %s3131_s25, 1 }
  0x42   : > { %s3809_s8 = sld [smem:[#allocation24_spill]]  ;;  %p2654_p6 = scmp.ne.s32.totalorder %s3131_s25, 0 }
  0x43   : > { %s2647_s16 = sshll.u32 %s3209_s15, 3  ;;  %s2648_s23 = sshll.u32 %s3209_s15, 2 }
  0x44   : > { %s3226_s19 = scalar_lea.vmem %s3765_s9, %s2648_s23  ;;  %s2741_s6 = sshll.u32 %s3209_s15, 5 }
  0x45   : > { %s3232_s26 = scalar_lea.vmem %s3766_s10, %s2741_s6  ;;  %s2742_s30 = sshll.u32 %s3209_s15, 6 }
  0x46   : > { %s3216_s17 = scalar_lea.vmem %s3808_s7, %s2647_s16  ;;  %s652_s16 = scalar_lea.vmem %s3767_s11, %s3209_s15 }
  0x47   : > { %s660_s28 = scalar_lea.vmem %s3769_s13, %s3209_s15  ;;  %664 = sbr.rel (%p2654_p6) target bundleno = 83 (0x53), region = 92 }
  0x48   : > { %s3221_s20 = scalar_lea.vmem %s3809_s8, %s2648_s23  ;;  %s3246_s23 = scalar_lea.vmem %s3768_s12, %s2742_s30 }
  0x49   : > { %3810 = sst [smem:[#allocation19_spill]] %s3221_s20 }
  0x4a   : > { %s3811_s24 = sld [smem:[#allocation20_spill]] (!%p2654_p6) }
  0x4c   : > { %vm667_vm0 = vcmask 261120  }
  0x50   : > { %s3812_s18 = smov %s3811_s24  ;;  %v665_v0 = vld [vmem:[%s3811_s24] sm:$0xff] }
  0x51   : > { %v666_v1 = vld [vmem:[%s3812_s18 + $0x8] sm:$0xff]  ;;  %668 = vst.msk [vmem:[#allocation2] sm:$0xff] %vm667_vm0, %v665_v0 }
  0x52   : > { %669 = vst.msk [vmem:[#allocation2 + $0x8] sm:$0xff] %vm667_vm0, %v666_v1 }
  0x53 PF: > { %v691_v2 = vld [vmem:[%s3200_s21 + $0x38] sm:$0xff]  ;;  %v690_v3 = vld [vmem:[%s3200_s21 + $0x30] sm:$0xff]  ;;  %v689_v5 = vld [vmem:[%s3200_s21 + $0x28] sm:$0xff]  ;;  %vm736_vm1 = vcmask 261120   ;;  %vm820_vm2 = vcmask 64512   ;;  %s3017_s30 = smov 112  }
  0x54   : > { %v687_v4 = vld [vmem:[%s3200_s21 + $0x18] sm:$0xff]  ;;  %779 = vmatpush.msra.mxu1 %v691_v2  ;;  %v686_v6 = vld [vmem:[%s3200_s21 + $0x10] sm:$0xff]  ;;  %v685_v7 = vld [vmem:[%s3200_s21 + $0x8] sm:$0xff]  ;;  %s3018_s0 = smov 120   ;;  %s3019_s6 = smov 104   ;;  %vm956_vm3 = vcmask 130112  }
  0x55   : > { %755 = vmatpush.msra.mxu0 %v687_v4  ;;  %v3268_v9 = vld [vmem:[%s3757_s1] sm:$0xff]  ;;  %v695_v10 = vld [vmem:[%s3200_s21 + $0x58] sm:$0xff]  ;;  %v694_v11 = vld [vmem:[%s3200_s21 + $0x50] sm:$0xff]  ;;  %s3020_s4 = smov 8   ;;  %s3021_s27 = smov 16   ;;  %vm1029_vm4 = vcmask 195712  }
  0x56   : > { %780 = vmatpush.msra.mxu1 %v690_v3  ;;  %v688_v12 = vld [vmem:[%s3200_s21 + $0x20] sm:$0xff]  ;;  %809 = vmatpush.msra.mxu2 %v695_v10  ;;  %v693_v15 = vld [vmem:[%s3200_s21 + $0x48] sm:$0xff]  ;;  %s3022_s7 = smov 24   ;;  %vm1102_vm5 = vcmask 261312   ;;  %s3813_s14 = sld [smem:[#allocation19_spill]]  ;;  %vm1627_vm13 = vcmask 130048  }
  0x57   : > { %756 = vmatpush.msra.mxu0 %v686_v6  ;;  %v684_v14 = vld [vmem:[%s3200_s21] sm:$0xff]  ;;  %v3285_v18 = vld [vmem:[%s3757_s1 + $0x8] sm:$0xff]  ;;  %s3814_s22 = sld [smem:[#allocation21_spill]] }
  0x58   : > { %v3263_v8 = vld [vmem:[#allocation2] sm:$0xff]  ;;  %781 = vmatpush.msra.mxu1 %v689_v5  ;;  %810 = vmatpush.msra.mxu2 %v694_v11 }
  0x59   : > { %v733_v13 = vadd.f32 %v3268_v9, %v3263_v8  ;;  %757 = vmatpush.msra.mxu0 %v685_v7  ;;  %v692_v16 = vld [vmem:[%s3200_s21 + $0x40] sm:$0xff]  ;;  %v3280_v17 = vld [vmem:[#allocation2 + $0x8] sm:$0xff] }
  0x5a   : > { %782 = vmatpush.msra.mxu1 %v688_v12  ;;  %811 = vmatpush.msra.mxu2 %v693_v15  ;;  %v734_v19 = vadd.f32 %v3285_v18, %v3280_v17  ;;  %v3296_v20 = vld [vmem:[%s3216_s17] sm:$0xff] }
  0x5b   : > { %758 = vmatpush.msra.mxu0 %v684_v14  ;;  %2657 = vmatmul.msk.f32.vlgmr.msra.gmra.mxu1 %vm736_vm1, %v733_v13  ;;  %v766_v21 = vperm.slane %v3296_v20, 1  ;;  %v735_v22 = vperm.slane %v3296_v20, 0  ;;  %v790_v27 = vperm.slane %v3296_v20, 2  ;;  %v3324_v37 = vld [vmem:[%s3761_s5] sm:$0xff] }
  0x5c   : > { %2655 = vmatmul.msk.f32.vlgmr.msra.gmra.mxu0 %vm736_vm1, %v733_v13  ;;  %812 = vmatpush.msra.mxu2 %v692_v16 }
  0x5d   : > { %2659 = vmatmul.msk.f32.vlgmr.msra.gmra.mxu2 %vm736_vm1, %v3263_v8 }
  0x63   : > { %2658 = vmatmul.msk.f32.gmra.mxu1 %vm736_vm1, %v734_v19 }
  0x64   : > { %2656 = vmatmul.msk.f32.gmra.mxu0 %vm736_vm1, %v734_v19 }
  0x65   : > { %2660 = vmatmul.msk.f32.gmra.mxu2 %vm736_vm1, %v3280_v17 }
  0xd8   : > { %v784_v23 = vpop.f32.mrf.mxu1 }
  0xd9   : > { %v760_v24 = vpop.f32.mrf.mxu0  ;;  %v785_v25 = vadd.f32 %v784_v23, %v766_v21 }
  0xda   : > { %v761_v26 = vadd.f32 %v760_v24, %v735_v22 }
  0xdb   : > { %960 = vrot.lane.b32.xlu2 %v785_v25, %s3017_s30  ;;  %886 = vrot.lane.b32.xlu1 %v785_v25, %s3018_s0 }
  0xdc   : > { %2661 = vmatpush.xpose.msk.msrb.mxu0 %vm820_vm2, %v785_v25 }
  0xdf   : > { %2662 = vmatmul.msk.f32.vlgmr.msrb.gmra.mxu0 %vm820_vm2, %v761_v26 }
  0xe0   : > { %v814_v28 = vpop.f32.mrf.mxu2  ;;  %v787_v29 = vpop.f32.mrf.mxu1 }
  0xe1   : > { %v788_v30 = vadd.f32 %v787_v29, %v766_v21  ;;  %v3310_v31 = vadd.f32 %v814_v28, %v790_v27  ;;  %v763_v32 = vpop.f32.mrf.mxu0 }
  0xe2   : > { %v764_v33 = vadd.f32 %v763_v32, %v735_v22 }
  0xe3   : > { %1033 = vrot.lane.b32.xlu2 %v785_v25, %s3019_s6  ;;  %884 = vrot.lane.b32.xlu1 %v761_v26, %s3018_s0 }
  0xe4   : > { %878 = vmatpush.msra.mxu3 %v3310_v31 }
  0xeb   : > { %1031 = vrot.lane.b32.xlu1 %v761_v26, %s3019_s6  ;;  %1169 = vrot.lane.b32.xlu2 %v788_v30, %s3018_s0 }
  0xf3   : > { %1242 = vrot.lane.b32.xlu2 %v788_v30, %s3017_s30  ;;  %1167 = vrot.lane.b32.xlu1 %v764_v33, %s3018_s0 }
  0xfb   : > { %1240 = vrot.lane.b32.xlu2 %v764_v33, %s3017_s30  ;;  %1314 = vrot.lane.b32.xlu1 %v788_v30, %s3019_s6 }
 0x135   : > { %v961_v34 = vpop.permute.xlu2 %960 }
 0x136   : > { %2667 = vmatpush.xpose.msk.msrb.mxu1 %vm820_vm2, %v961_v34 }
 0x13a   : > { %2673 = vmatpush.xpose.msk.msra.mxu1 %vm820_vm2, %v788_v30 }
 0x13d   : > { %v1034_v48 = vpop.permute.xlu2 %1033 }
 0x145   : > { %v1170_v52 = vpop.permute.xlu2 %1169 }
 0x14d   : > { %v887_v35 = vpop.permute.xlu1 %886  ;;  %v1243_v55 = vpop.permute.xlu2 %1242 }
 0x14e   : > { %2664 = vmatpush.xpose.msk.msrb.mxu3 %vm820_vm2, %v887_v35 }
 0x155   : > { %v885_v46 = vpop.permute.xlu1 %884  ;;  %v1241_v57 = vpop.permute.xlu2 %1240 }
 0x15c   : > { %v844_v36 = vpop.f32.mrf.mxu0 }
 0x15d   : > { %v847_v38 = vmul.f32 0.35355338, %v844_v36  ;;  %v1032_v50 = vpop.permute.xlu1 %1031 }
 0x15f   : > { %v848_v39 = vadd.f32 %v847_v38, %v3324_v37 }
 0x161   : > { %v849_v40 = vsel %vm820_vm2, %v848_v39, -inf }
 0x162   : > { %850 = vmax.xlane.f32.xlu0 %v849_v40 }
 0x165   : > { %v1168_v53 = vpop.permute.xlu1 %1167 }
 0x16d   : > { %v1315_v56 = vpop.permute.xlu1 %1314 }
 0x1d5   : > { %v851_v41 = vpop.xlane.xlu0 %850 }
 0x1d6   : > { %v852_v42 = vsub.f32 %v848_v39, %v851_v41 }
 0x1d8   : > { %v853_v43 = vmul.f32 1.442695, %v852_v42 }
 0x1da   : > { %2834 = vpow2.f32 %v853_v43 }
 0x1e0   : > { %v2835_v44 = vpop.eup %2834 }
 0x1e1   : > { %v855_v45 = vsel %vm820_vm2, %v2835_v44, 0.0 }
 0x1e2   : > { %856 = vadd.xlane.f32.xlu0 %v855_v45 }
 0x1f6   : > { %958 = vrot.lane.b32.xlu0 %v761_v26, %s3017_s30 }
 0x1fe   : > { %1312 = vrot.lane.b32.xlu0 %v764_v33, %s3019_s6 }
 0x255   : > { %v857_v47 = vpop.xlane.xlu0 %856 }
 0x256   : > { %2836 = vrcp.f32 %v857_v47 }
 0x25c   : > { %v2837_v49 = vpop.eup %2836 }
 0x25d   : > { %v859_v51 = vmul.f32 %v2837_v49, %v2835_v44 }
 0x25f   : > { %2663 = vmatmul.msk.f32.vlgmr.msra.gmra.mxu3 %vm820_vm2, %v859_v51 }
 0x260   : > { %2670 = vmatpush.xpose.msk.msra.mxu3 %vm820_vm2, %v1034_v48 }
 0x267   : > { %2665 = vmatmul.msk.f32.vlgmr.msrb.gmra.mxu3 %vm820_vm2, %v885_v46 }
 0x268   : > { %v959_v54 = vpop.permute.xlu0 %958  ;;  %2676 = vmatpush.xpose.msk.msrb.mxu3 %vm820_vm2, %v1170_v52 }
 0x269   : > { %2668 = vmatmul.msk.f32.vlgmr.msrb.gmra.mxu1 %vm820_vm2, %v959_v54 }
 0x26a   : > { %2679 = vmatpush.xpose.msk.msrb.mxu1 %vm820_vm2, %v1243_v55 }
 0x26f   : > { %2671 = vmatmul.msk.f32.vlgmr.msra.gmra.mxu3 %vm820_vm2, %v1032_v50 }
 0x270   : > { %2682 = vmatpush.xpose.msk.msra.mxu3 %vm820_vm2, %v1315_v56  ;;  %v1313_v58 = vpop.permute.xlu0 %1312 }
 0x271   : > { %2674 = vmatmul.msk.f32.vlgmr.msra.gmra.mxu1 %vm820_vm2, %v764_v33 }
 0x277   : > { %2677 = vmatmul.msk.f32.vlgmr.msrb.gmra.mxu3 %vm820_vm2, %v1168_v53 }
 0x279   : > { %2680 = vmatmul.msk.f32.vlgmr.msrb.gmra.mxu1 %vm820_vm2, %v1241_v57 }
 0x27f   : > { %2683 = vmatmul.msk.f32.vlgmr.msra.gmra.mxu3 %vm820_vm2, %v1313_v58 }
 0x2e2   : > { %v880_v59 = vpop.f32.mrf.mxu3 }
 0x2e3   : > { %883 = vst.msk [vmem:[#allocation3] sm:$0xff] %vm820_vm2, %v880_v59 }
 0x2e6   : > { %v983_v60 = vpop.f32.mrf.mxu1 }
 0x2e7   : > { %v986_v61 = vmul.f32 0.35355338, %v983_v60 }
 0x2e9   : > { %v987_v62 = vadd.f32 %v986_v61, %v3324_v37 }
 0x2ea   : > { %v909_v63 = vpop.f32.mrf.mxu3 }
 0x2eb   : > { %v912_v0 = vmul.f32 0.35355338, %v909_v63  ;;  %v988_v1 = vsel %vm820_vm2, %v987_v62, -inf }
 0x2ec   : > { %989 = vmax.xlane.f32.xlu2 %v988_v1 }
 0x2ed   : > { %v913_v2 = vadd.f32 %v912_v0, %v3324_v37 }
 0x2ee   : > { %v1127_v3 = vpop.f32.mrf.mxu1 }
 0x2ef   : > { %v1130_v4 = vmul.f32 0.35355338, %v1127_v3  ;;  %v914_v5 = vsel %vm820_vm2, %v913_v2, -inf }
 0x2f0   : > { %915 = vmax.xlane.f32.xlu1 %v914_v5 }
 0x2f1   : > { %v1131_v6 = vadd.f32 %v1130_v4, %v3324_v37 }
 0x2f2   : > { %v1056_v7 = vpop.f32.mrf.mxu3 }
 0x2f3   : > { %v1132_v10 = vsel %vm820_vm2, %v1131_v6, -inf  ;;  %v1059_v30 = vmul.f32 0.35355338, %v1056_v7 }
 0x2f4   : > { %1133 = vmax.xlane.f32.xlu2 %v1132_v10 }
 0x2f5   : > { %v1060_v35 = vadd.f32 %v1059_v30, %v3324_v37 }
 0x2f6   : > { %v1265_v11 = vpop.f32.mrf.mxu1 }
 0x2f7   : > { %v1268_v12 = vmul.f32 0.35355338, %v1265_v11  ;;  %v1061_v43 = vsel %vm820_vm2, %v1060_v35, -inf }
 0x2f9   : > { %v1269_v13 = vadd.f32 %v1268_v12, %v3324_v37 }
 0x2fa   : > { %v1192_v14 = vpop.f32.mrf.mxu3 }
 0x2fb   : > { %v1195_v15 = vmul.f32 0.35355338, %v1192_v14  ;;  %v1270_v16 = vsel %vm820_vm2, %v1269_v13, -inf }
 0x2fc   : > { %1271 = vmax.xlane.f32.xlu0 %v1270_v16 }
 0x2fd   : > { %v1196_v19 = vadd.f32 %v1195_v15, %v3324_v37 }
 0x2ff   : > { %v1197_v21 = vsel %vm820_vm2, %v1196_v19, -inf }
 0x300   : > { %1198 = vmax.xlane.f32.xlu1 %v1197_v21 }
 0x302   : > { %v1337_v36 = vpop.f32.mrf.mxu3 }
 0x303   : > { %v1340_v42 = vmul.f32 0.35355338, %v1337_v36 }
 0x305   : > { %v1341_v46 = vadd.f32 %v1340_v42, %v3324_v37  ;;  %v817_v37 = vpop.f32.mrf.mxu2 }
 0x306   : > { %v818_v54 = vadd.f32 %v817_v37, %v790_v27 }
 0x307   : > { %v1342_v48 = vsel %vm820_vm2, %v1341_v46, -inf }
 0x319   : > { %926 = vrot.lane.b32.xlu1 %v3310_v31, %s3018_s0 }
 0x35f   : > { %v990_v22 = vpop.xlane.xlu2 %989 }
 0x360   : > { %v991_v23 = vsub.f32 %v987_v62, %v990_v22 }
 0x362   : > { %v992_v24 = vmul.f32 1.442695, %v991_v23 }
 0x363   : > { %v916_v33 = vpop.xlane.xlu1 %915 }
 0x364   : > { %2838 = vpow2.f32 %v992_v24  ;;  %v917_v40 = vsub.f32 %v913_v2, %v916_v33 }
 0x366   : > { %v918_v45 = vmul.f32 1.442695, %v917_v40 }
 0x367   : > { %v1134_v25 = vpop.xlane.xlu2 %1133 }
 0x368   : > { %v1135_v26 = vsub.f32 %v1131_v6, %v1134_v25 }
 0x36a   : > { %v3356_v28 = vpop.eup %2838  ;;  %v1136_v29 = vmul.f32 1.442695, %v1135_v26 }
 0x36b   : > { %v994_v32 = vsel %vm820_vm2, %v3356_v28, 0.0 }
 0x36c   : > { %2840 = vpow2.f32 %v1136_v29  ;;  %995 = vadd.xlane.f32.xlu0 %v994_v32 }
 0x36f   : > { %v1272_v34 = vpop.xlane.xlu0 %1271 }
 0x370   : > { %v1273_v38 = vsub.f32 %v1269_v13, %v1272_v34 }
 0x372   : > { %v3361_v39 = vpop.eup %2840  ;;  %v1274_v41 = vmul.f32 1.442695, %v1273_v38 }
 0x373   : > { %v1138_v44 = vsel %vm820_vm2, %v3361_v39, 0.0  ;;  %v1199_v51 = vpop.xlane.xlu1 %1198 }
 0x374   : > { %2842 = vpow2.f32 %v1274_v41  ;;  %1062 = vmax.xlane.f32.xlu0 %v1061_v43  ;;  %1139 = vadd.xlane.f32.xlu2 %v1138_v44  ;;  %v1200_v55 = vsub.f32 %v1196_v19, %v1199_v51 }
 0x375   : > { %2844 = vpow2.f32 %v918_v45 }
 0x376   : > { %v1201_v56 = vmul.f32 1.442695, %v1200_v55  ;;  %v1386_v55 = vperm.slane %v3296_v20, 3 }
 0x378   : > { %2846 = vpow2.f32 %v1201_v56 }
 0x37a   : > { %v2843_v47 = vpop.eup %2842 }
 0x37b   : > { %v1276_v49 = vsel %vm820_vm2, %v2843_v47, 0.0  ;;  %v2845_v50 = vpop.eup %2844 }
 0x37c   : > { %1343 = vmax.xlane.f32.xlu2 %v1342_v48  ;;  %1277 = vadd.xlane.f32.xlu1 %v1276_v49  ;;  %v920_v52 = vsel %vm820_vm2, %v2845_v50, 0.0  ;;  %v697_v48 = vld [vmem:[%s3200_s21 + $0x68] sm:$0xff]  ;;  %v696_v49 = vld [vmem:[%s3200_s21 + $0x60] sm:$0xff] }
 0x37e   : > { %v2847_v57 = vpop.eup %2846 }
 0x37f   : > { %v1203_v58 = vsel %vm820_vm2, %v2847_v57, 0.0 }
 0x384   : > { %921 = vadd.xlane.f32.xlu1 %v920_v52 }
 0x388   : > { %999 = vrot.lane.b32.xlu0 %v3310_v31, %s3017_s30 }
 0x38b   : > { %v927_v53 = vpop.permute.xlu1 %926 }
 0x38c   : > { %947 = vmatpush.msra.mxu0 %v927_v53 }
 0x394   : > { %1072 = vrot.lane.b32.xlu2 %v3310_v31, %s3019_s6 }
 0x39d   : > { %1281 = vrot.lane.b32.xlu1 %v818_v54, %s3017_s30 }
 0x3b2   : > { %1204 = vadd.xlane.f32.xlu0 %v1203_v58 }
 0x3c6   : > { %1209 = vrot.lane.b32.xlu0 %v818_v54, %s3018_s0 }
 0x3df   : > { %v996_v59 = vpop.xlane.xlu0 %995 }
 0x3e7   : > { %v1140_v60 = vpop.xlane.xlu2 %1139  ;;  %v1063_v61 = vpop.xlane.xlu0 %1062 }
 0x3e8   : > { %v1064_v62 = vsub.f32 %v1060_v35, %v1063_v61 }
 0x3ea   : > { %v1065_v31 = vmul.f32 1.442695, %v1064_v62 }
 0x3ec   : > { %2848 = vpow2.f32 %v1065_v31 }
 0x3ed   : > { %2850 = vrcp.f32 %v996_v59 }
 0x3ef   : > { %v1344_v63 = vpop.xlane.xlu2 %1343  ;;  %v1278_v0 = vpop.xlane.xlu1 %1277 }
 0x3f0   : > { %v1345_v27 = vsub.f32 %v1341_v46, %v1344_v63  ;;  %v699_v46 = vld [vmem:[%s3200_s21 + $0x78] sm:$0xff]  ;;  %v3023_v63 = vmov 32.0  }
 0x3f1   : > { %1405 = vmatpush.msra.mxu1 %v699_v46 }
 0x3f2   : > { %v2849_v1 = vpop.eup %2848  ;;  %v1346_v2 = vmul.f32 1.442695, %v1345_v27 }
 0x3f3   : > { %v1067_v3 = vsel %vm820_vm2, %v2849_v1, 0.0  ;;  %v2851_v4 = vpop.eup %2850 }
 0x3f4   : > { %2852 = vpow2.f32 %v1346_v2  ;;  %1068 = vadd.xlane.f32.xlu2 %v1067_v3  ;;  %v998_v11 = vmul.f32 %v2851_v4, %v3356_v28  ;;  %v707_v2 = vld [vmem:[%s3200_s21 + $0xb8] sm:$0xff]  ;;  %v706_v3 = vld [vmem:[%s3200_s21 + $0xb0] sm:$0xff]  ;;  %v705_v4 = vld [vmem:[%s3200_s21 + $0xa8] sm:$0xff] }
 0x3f5   : > { %1536 = vmatpush.msrb.mxu3 %v707_v2 }
 0x3f7   : > { %v1073_v5 = vpop.permute.xlu2 %1072  ;;  %v922_v6 = vpop.xlane.xlu1 %921  ;;  %1537 = vmatpush.msrb.mxu3 %v706_v3 }
 0x3f8   : > { %2854 = vrcp.f32 %v922_v6  ;;  %1093 = vmatpush.msrb.mxu0 %v1073_v5  ;;  %v704_v6 = vld [vmem:[%s3200_s21 + $0xa0] sm:$0xff] }
 0x3f9   : > { %2856 = vrcp.f32 %v1140_v60  ;;  %1538 = vmatpush.msrb.mxu3 %v705_v4 }
 0x3fa   : > { %v2853_v7 = vpop.eup %2852  ;;  %v1000_v10 = vpop.permute.xlu0 %999  ;;  %2858 = vrcp.f32 %v1278_v0 }
 0x3fb   : > { %1020 = vmatpush.msrb.mxu2 %v1000_v10  ;;  %v1348_v12 = vsel %vm820_vm2, %v2853_v7, 0.0  ;;  %1539 = vmatpush.msrb.mxu3 %v704_v6 }
 0x3fc   : > { %1349 = vadd.xlane.f32.xlu2 %v1348_v12  ;;  %2669 = vmatmul.msk.f32.vlgmr.msrb.gmra.mxu2 %vm820_vm2, %v998_v11  ;;  %v3432_v11 = vld [vmem:[%s3758_s2 + $0x8] sm:$0xff] }
 0x3fd   : > { %1161 = vmatpush.msra.mxu2 %v818_v54  ;;  %v679_v12 = vld [vmem:[%s3759_s3 + $0x8] sm:$0xff] }
 0x3fe   : > { %v2855_v13 = vpop.eup %2854 }
 0x3ff   : > { %v2857_v14 = vpop.eup %2856  ;;  %v924_v15 = vmul.f32 %v2855_v13, %v2845_v50 }
 0x400   : > { %v1142_v16 = vmul.f32 %v2857_v14, %v3361_v39  ;;  %v2859_v19 = vpop.eup %2858  ;;  %v1478_v14 = vadd.f32 %v679_v12, %v3432_v11 }
 0x401   : > { %2666 = vmatmul.msk.f32.vlgmr.msra.gmra.mxu0 %vm820_vm2, %v924_v15  ;;  %v1280_v21 = vmul.f32 %v2859_v19, %v2843_v47  ;;  %v698_v47 = vld [vmem:[%s3200_s21 + $0x70] sm:$0xff] }
 0x402   : > { %1406 = vmatpush.msra.mxu1 %v698_v47 }
 0x404   : > { %2675 = vmatmul.msk.f32.vlgmr.msra.gmra.mxu2 %vm820_vm2, %v1142_v16  ;;  %1407 = vmatpush.msra.mxu1 %v697_v48 }
 0x406   : > { %1408 = vmatpush.msra.mxu1 %v696_v49 }
 0x40f   : > { %v1282_v22 = vpop.permute.xlu1 %1281 }
 0x410   : > { %1302 = vmatpush.msrb.mxu2 %v1282_v22 }
 0x411   : > { %2681 = vmatmul.msk.f32.vlgmr.msrb.gmra.mxu2 %vm820_vm2, %v1280_v21 }
 0x414   : > { %1353 = vrot.lane.b32.xlu2 %v818_v54, %s3019_s6 }
 0x425   : > { %v1205_v23 = vpop.xlane.xlu0 %1204 }
 0x438   : > { %v1210_v24 = vpop.permute.xlu0 %1209 }
 0x439   : > { %1230 = vmatpush.msra.mxu0 %v1210_v24 }
 0x467   : > { %v1069_v25 = vpop.xlane.xlu2 %1068 }
 0x468   : > { %2860 = vrcp.f32 %v1069_v25 }
 0x469   : > { %2862 = vrcp.f32 %v1205_v23 }
 0x46e   : > { %v2861_v26 = vpop.eup %2860 }
 0x46f   : > { %v1071_v28 = vmul.f32 %v2861_v26, %v2849_v1  ;;  %v1350_v29 = vpop.xlane.xlu2 %1349  ;;  %v2863_v30 = vpop.eup %2862 }
 0x470   : > { %2864 = vrcp.f32 %v1350_v29  ;;  %v1207_v32 = vmul.f32 %v2863_v30, %v2847_v57  ;;  %v3452_v29 = vld [vmem:[%s3758_s2 + $0x10] sm:$0xff] }
 0x471   : > { %2672 = vmatmul.msk.f32.vlgmr.msrb.gmra.mxu0 %vm820_vm2, %v1071_v28  ;;  %2866 = vrcp.f32 %v3023_v63  ;;  %v680_v30 = vld [vmem:[%s3759_s3 + $0x10] sm:$0xff] }
 0x476   : > { %v2865_v34 = vpop.eup %2864 }
 0x477   : > { %v1354_v33 = vpop.permute.xlu2 %1353  ;;  %v1352_v36 = vmul.f32 %v2865_v34, %v2853_v7  ;;  %v2867_v0 = vpop.eup %2866  ;;  %v702_v34 = vld [vmem:[%s3200_s21 + $0x90] sm:$0xff] }
 0x478   : > { %1374 = vmatpush.msrb.mxu0 %v1354_v33  ;;  %v1425_v27 = vmul.f32 32.0, %v2867_v0  ;;  %vm1429_vm6 = vweird.f32 %v2867_v0  ;;  %v703_v33 = vld [vmem:[%s3200_s21 + $0x98] sm:$0xff] }
 0x479   : > { %2678 = vmatmul.msk.f32.vlgmr.msra.gmra.mxu0 %vm820_vm2, %v1207_v32  ;;  %v1479_v32 = vadd.f32 %v680_v30, %v3452_v29  ;;  %1500 = vmatpush.msra.mxu2 %v703_v33 }
 0x47a   : > { %v1426_v1 = vsub.f32 1.0, %v1425_v27 }
 0x47b   : > { %1501 = vmatpush.msra.mxu2 %v702_v34 }
 0x47c   : > { %v1427_v5 = vmul.f32 %v2867_v0, %v1426_v1 }
 0x47e   : > { %v949_v35 = vpop.f32.mrf.mxu0  ;;  %v1428_v10 = vadd.f32 %v2867_v0, %v1427_v5 }
 0x47f   : > { %953 = vrot.lane.b32.xlu0 %v949_v35, %s3020_s4  ;;  %v1022_v38 = vpop.f32.mrf.mxu2  ;;  %v701_v35 = vld [vmem:[%s3200_s21 + $0x88] sm:$0xff] }
 0x480   : > { %1026 = vrot.lane.b32.xlu1 %v1022_v38, %s3021_s27  ;;  %v3437_v13 = vsel %vm1429_vm6, %v2867_v0, %v1428_v10  ;;  %1502 = vmatpush.msra.mxu2 %v701_v35 }
 0x481   : > { %2684 = vmatmul.msk.f32.vlgmr.msrb.gmra.mxu0 %vm820_vm2, %v1352_v36  ;;  %v700_v36 = vld [vmem:[%s3200_s21 + $0x80] sm:$0xff] }
 0x482   : > { %1503 = vmatpush.msra.mxu2 %v700_v36 }
 0x487   : > { %v1163_v39 = vpop.f32.mrf.mxu2 }
 0x488   : > { %1166 = vst.msk [vmem:[#allocation3 + $0x8] sm:$0xff] %vm820_vm2, %v1163_v39 }
 0x494   : > { %v1304_v43 = vpop.f32.mrf.mxu2 }
 0x4ee   : > { %v1095_v40 = vpop.f32.mrf.mxu0 }
 0x4ef   : > { %1099 = vrot.lane.b32.xlu0 %v1095_v40, %s3022_s7  ;;  %v3467_v40 = vld [vmem:[%s3758_s2 + $0x18] sm:$0xff] }
 0x4f1   : > { %v954_v41 = vpop.permute.xlu0 %953 }
 0x4f2   : > { %957 = vst.msk [vmem:[#allocation3] sm:$0xff] %vm956_vm3, %v954_v41  ;;  %v1027_v42 = vpop.permute.xlu1 %1026  ;;  %v681_v41 = vld [vmem:[%s3759_s3 + $0x18] sm:$0xff] }
 0x4f3   : > { %1030 = vst.msk [vmem:[#allocation3] sm:$0xff] %vm1029_vm4, %v1027_v42  ;;  %v1480_v42 = vadd.f32 %v681_v41, %v3467_v40  ;;  %v682_v41 = vld [vmem:[%s3814_s22] sm:$0x3]  ;;  %s2484_s22 = sshll.u32 %s3248_s29, 4  ;;  %s2485_s22 = int_to_ptr.vmem [resolvable:$true] %s2484_s22 }
 0x4f6   : > { %v1232_v44 = vpop.f32.mrf.mxu0 }
 0x4f7   : > { %1308 = vrot.lane.b32.xlu0 %v1304_v43, %s3021_s27  ;;  %1236 = vrot.lane.b32.xlu1 %v1232_v44, %s3020_s4  ;;  %v3475_v44 = vperm.slane %v3296_v20, 5 }
 0x4fe   : > { %v1376_v45 = vpop.f32.mrf.mxu0 }
 0x4ff   : > { %1380 = vrot.lane.b32.xlu2 %v1376_v45, %s3022_s7 }
 0x559   : > { %v1381_v37 = vpop.permute.xlu2 %1380 }
 0x561   : > { %v1100_v50 = vpop.permute.xlu0 %1099 }
 0x562   : > { %1103 = vst.msk [vmem:[#allocation3] sm:$0xff] %vm1102_vm5, %v1100_v50 }
 0x569   : > { %v1237_v51 = vpop.permute.xlu1 %1236  ;;  %v1309_v52 = vpop.permute.xlu0 %1308  ;;  %v1384_v53 = vld [vmem:[#allocation3] sm:$0xff] }
 0x56a   : > { %1239 = vst.msk [vmem:[#allocation3 + $0x8] sm:$0xff] %vm956_vm3, %v1237_v51  ;;  %2685 = vmatmul.msk.f32.vlgmr.msra.gmra.mxu1 %vm736_vm1, %v1384_v53 }
 0x56b   : > { %1311 = vst.msk [vmem:[#allocation3 + $0x8] sm:$0xff] %vm1029_vm4, %v1309_v52 }
 0x56c   : > { %1383 = vst.msk [vmem:[#allocation3 + $0x8] sm:$0xff] %vm1102_vm5, %v1381_v37 }
 0x573   : > { %v1385_v54 = vld [vmem:[#allocation3 + $0x8] sm:$0xff] }
 0x574   : > { %2686 = vmatmul.msk.f32.gmra.mxu1 %vm736_vm1, %v1385_v54  ;;  %v3482_v54 = vld [vmem:[%s3813_s14] sm:$0x7]  ;;  %s3818_s14 = sld [smem:[#allocation27_spill]] }
 0x5e7   : > { %v1410_v56 = vpop.f32.mrf.mxu1 }
 0x5e8   : > { %v1411_v57 = vadd.f32 %v1410_v56, %v1386_v55 }
 0x5ea   : > { %v1416_v58 = vadd.f32 %v1411_v57, %v3263_v8  ;;  %v3420_v8 = vld [vmem:[%s3758_s2] sm:$0xff] }
 0x5eb   : > { %v3486_v57 = vld [vmem:[%s3226_s19] sm:$0x7] }
 0x5ec   : > { %v1418_v59 = vsel %vm736_vm1, %v1416_v58, 0.0 }
 0x5ed   : > { %1419 = vadd.xlane.f32.xlu1 %v1418_v59 }
 0x5f1   : > { %v1413_v60 = vpop.f32.mrf.mxu1 }
 0x5f2   : > { %v1414_v61 = vadd.f32 %v1413_v60, %v1386_v55  ;;  %v1469_v60 = vperm.slane %v3482_v54, 0 }
 0x5f4   : > { %v1417_v62 = vadd.f32 %v1414_v61, %v3280_v17  ;;  %v678_v17 = vld [vmem:[%s3759_s3] sm:$0xff] }
 0x5f5   : > { %v1477_v7 = vadd.f32 %v678_v17, %v3420_v8 }
 0x5f6   : > { %v1421_v31 = vsel %vm736_vm1, %v1417_v62, 0.0 }
 0x5f7   : > { %1422 = vadd.xlane.f32.xlu0 %v1421_v31  ;;  %2689 = vmatmul.msk.f32.vlgmr.msrb.gmra.mxu3 %vm736_vm1, %v1477_v7  ;;  %v1472_v31 = vperm.slane %v3486_v57, 0 }
 0x5ff   : > { %2690 = vmatmul.msk.f32.gmra.mxu3 %vm736_vm1, %v1478_v14 }
 0x607   : > { %2691 = vmatmul.msk.f32.gmra.mxu3 %vm736_vm1, %v1479_v32 }
 0x60f   : > { %2692 = vmatmul.msk.f32.gmra.mxu3 %vm736_vm1, %v1480_v42 }
 0x660   : > { %v1420_v15 = vpop.xlane.xlu1 %1419 }
 0x661   : > { %v1431_v16 = vmul.f32 %v3437_v13, %v1420_v15 }
 0x663   : > { %v1433_v19 = vsub.f32 %v1416_v58, %v1431_v16 }
 0x665   : > { %v1435_v21 = vmul.f32 %v1433_v19, %v1433_v19 }
 0x667   : > { %v1437_v22 = vsel %vm736_vm1, %v1435_v21, 0.0  ;;  %v710_v21 = vld [vmem:[%s3200_s21 + $0xd0] sm:$0xff] }
 0x668   : > { %1438 = vadd.xlane.f32.xlu2 %v1437_v22  ;;  %v1481_v22 = vperm.slane %v3296_v20, 4 }
 0x66a   : > { %v1423_v23 = vpop.xlane.xlu0 %1422 }
 0x66b   : > { %v1432_v24 = vmul.f32 %v3437_v13, %v1423_v23 }
 0x66d   : > { %v3444_v25 = vsub.f32 %v1417_v62, %v1432_v24 }
 0x66f   : > { %v1436_v26 = vmul.f32 %v3444_v25, %v3444_v25 }
 0x671   : > { %v1440_v28 = vsel %vm736_vm1, %v1436_v26, 0.0 }
 0x672   : > { %1441 = vadd.xlane.f32.xlu1 %v1440_v28 }
 0x67a   : > { %v1541_v45 = vpop.f32.mrf.mxu3 }
 0x67b   : > { %v1542_v49 = vadd.f32 %v1541_v45, %v3475_v44 }
 0x680   : > { %1665 = vrot.lane.b32.xlu2 %v1542_v49, %s3018_s0 }
 0x682   : > { %v1544_v37 = vpop.f32.mrf.mxu3 }
 0x683   : > { %v1545_v56 = vadd.f32 %v1544_v37, %v3475_v44 }
 0x685   : > { %1667 = vrot.lane.b32.xlu0 %v1545_v56, %s3018_s0  ;;  %2697 = vmatpush.xpose.msk.msrb.mxu1 %vm820_vm2, %v1545_v56 }
 0x688   : > { %1827 = vrot.lane.b32.xlu2 %v1545_v56, %s3019_s6 }
 0x689   : > { %2698 = vmatpush.xpose.msk.msrb.mxu1 %vm820_vm2, %v1542_v49 }
 0x68b   : > { %1825 = vrot.lane.b32.xlu1 %v1542_v49, %s3019_s6 }
 0x68d   : > { %1748 = vrot.lane.b32.xlu0 %v1545_v56, %s3017_s30 }
 0x695   : > { %1746 = vrot.lane.b32.xlu0 %v1542_v49, %s3017_s30 }
 0x6db   : > { %v1439_v38 = vpop.xlane.xlu2 %1438 }
 0x6dc   : > { %v1443_v39 = vmul.f32 %v1439_v38, %v3437_v13 }
 0x6de   : > { %v1445_v43 = vadd.f32 1e-05, %v1443_v39 }
 0x6e0   : > { %2868 = vrsqrt.f32 %v1445_v43  ;;  %vm1453_vm8 = vweird.f32 %v1445_v43 }
 0x6e3   : > { %v1666_v16 = vpop.permute.xlu2 %1665 }
 0x6e5   : > { %v1442_v46 = vpop.xlane.xlu1 %1441 }
 0x6e6   : > { %v2869_v47 = vpop.eup %2868  ;;  %v1444_v48 = vmul.f32 %v1442_v46, %v3437_v13 }
 0x6e7   : > { %v1448_v50 = vmul.f32 %v2869_v47, %v1445_v43  ;;  %vm1454_vm7 = vweird.f32 %v2869_v47 }
 0x6e8   : > { %v1446_v51 = vadd.f32 1e-05, %v1444_v48  ;;  %vm1455_vm9 = vmor %vm1453_vm8, %vm1454_vm7 }
 0x6e9   : > { %v1449_v52 = vmul.f32 %v2869_v47, %v1448_v50 }
 0x6ea   : > { %2870 = vrsqrt.f32 %v1446_v51  ;;  %vm1463_vm11 = vweird.f32 %v1446_v51 }
 0x6eb   : > { %v1450_v53 = vmul.f32 0.5, %v1449_v52  ;;  %v1828_v28 = vpop.permute.xlu2 %1827 }
 0x6ec   : > { %2709 = vmatpush.xpose.msk.msra.mxu3 %vm820_vm2, %v1828_v28 }
 0x6ed   : > { %v1451_v55 = vsub.f32 1.5, %v1450_v53 }
 0x6ef   : > { %v1452_v58 = vmul.f32 %v2869_v47, %v1451_v55 }
 0x6f0   : > { %v2871_v59 = vpop.eup %2870 }
 0x6f1   : > { %v1456_v61 = vsel %vm1455_vm9, %v2869_v47, %v1452_v58  ;;  %v1458_v62 = vmul.f32 %v2871_v59, %v1446_v51  ;;  %vm1464_vm10 = vweird.f32 %v2871_v59  ;;  %v3555_v51 = vperm.slane %v3296_v20, 6 }
 0x6f2   : > { %v1467_v63 = vmul.f32 %v1456_v61, %v1433_v19  ;;  %vm1465_vm12 = vmor %vm1463_vm11, %vm1464_vm10  ;;  %v711_v19 = vld [vmem:[%s3200_s21 + $0xd8] sm:$0xff] }
 0x6f3   : > { %v1459_v0 = vmul.f32 %v2871_v59, %v1458_v62  ;;  %1578 = vmatpush.msra.mxu0 %v711_v19 }
 0x6f4   : > { %v1470_v27 = vmul.f32 %v1469_v60, %v1467_v63 }
 0x6f5   : > { %v1460_v1 = vmul.f32 0.5, %v1459_v0  ;;  %1579 = vmatpush.msra.mxu0 %v710_v21 }
 0x6f6   : > { %v3494_v2 = vadd.f32 %v1472_v31, %v1470_v27 }
 0x6f7   : > { %v1461_v3 = vsub.f32 1.5, %v1460_v1  ;;  %v1668_v15 = vpop.permute.xlu0 %1667 }
 0x6f8   : > { %v1475_v17 = vadd.f32 %v3494_v2, %v3268_v9  ;;  %v1547_v9 = vpop.f32.mrf.mxu3  ;;  %2701 = vmatpush.xpose.msk.msra.mxu1 %vm820_vm2, %v1668_v15  ;;  %v1932_v15 = vperm.slane %v682_v41, 1 }
 0x6f9   : > { %v1462_v4 = vmul.f32 %v2871_v59, %v1461_v3  ;;  %v1548_v14 = vadd.f32 %v1547_v9, %v3475_v44 }
 0x6fa   : > { %2687 = vmatmul.msk.f32.vlgmr.msra.gmra.mxu2 %vm736_vm1, %v1475_v17 }
 0x6fb   : > { %v1466_v5 = vsel %vm1465_vm12, %v2871_v59, %v1462_v4  ;;  %1971 = vrot.lane.b32.xlu2 %v1548_v14, %s3018_s0  ;;  %2052 = vrot.lane.b32.xlu0 %v1548_v14, %s3017_s30 }
 0x6fc   : > { %v1468_v6 = vmul.f32 %v1466_v5, %v3444_v25  ;;  %2702 = vmatpush.xpose.msk.msra.mxu1 %vm820_vm2, %v1666_v16  ;;  %v708_v25 = vld [vmem:[%s3200_s21 + $0xc0] sm:$0xff] }
 0x6fe   : > { %v1471_v7 = vmul.f32 %v1469_v60, %v1468_v6 }
 0x6ff   : > { %v1749_v30 = vpop.permute.xlu0 %1748 }
 0x700   : > { %v3502_v10 = vadd.f32 %v1472_v31, %v1471_v7  ;;  %v1550_v26 = vpop.f32.mrf.mxu3 }
 0x701   : > { %v1551_v32 = vadd.f32 %v1550_v26, %v3475_v44 }
 0x702   : > { %v1476_v12 = vadd.f32 %v3502_v10, %v3285_v18  ;;  %v709_v18 = vld [vmem:[%s3200_s21 + $0xc8] sm:$0xff] }
 0x703   : > { %1580 = vmatpush.msra.mxu0 %v709_v18 }
 0x704   : > { %2688 = vmatmul.msk.f32.gmra.mxu2 %vm736_vm1, %v1476_v12 }
 0x705   : > { %1581 = vmatpush.msra.mxu0 %v708_v25 }
 0x706   : > { %2693 = vmatmul.msk.f32.vlgmr.msra.gmra.mxu0 %vm736_vm1, %v3420_v8  ;;  %v1826_v8 = vpop.permute.xlu1 %1825 }
 0x707   : > { %v1747_v35 = vpop.permute.xlu0 %1746  ;;  %2710 = vmatpush.xpose.msk.msra.mxu3 %vm820_vm2, %v1826_v8 }
 0x70e   : > { %2694 = vmatmul.msk.f32.gmra.mxu0 %vm736_vm1, %v3432_v11 }
 0x716   : > { %2695 = vmatmul.msk.f32.gmra.mxu0 %vm736_vm1, %v3452_v29 }
 0x71e   : > { %2696 = vmatmul.msk.f32.gmra.mxu0 %vm736_vm1, %v3467_v40  ;;  %v1625_v40 = vperm.slane %v682_v41, 0 }
 0x755   : > { %v1972_v36 = vpop.permute.xlu2 %1971 }
 0x76d   : > { %v2053_v11 = vpop.permute.xlu0 %2052 }
 0x77d   : > { %v1505_v23 = vpop.f32.mrf.mxu2 }
 0x77e   : > { %v1506_v24 = vadd.f32 %v1505_v23, %v1481_v22 }
 0x780   : > { %1744 = vrot.lane.b32.xlu2 %v1506_v24, %s3017_s30  ;;  %2699 = vmatmul.msk.f32.vlgmr.msrb.gmra.mxu1 %vm820_vm2, %v1506_v24 }
 0x781   : > { %1823 = vrot.lane.b32.xlu0 %v1506_v24, %s3019_s6  ;;  %1663 = vrot.lane.b32.xlu1 %v1506_v24, %s3018_s0 }
 0x782   : > { %2705 = vmatpush.xpose.msk.msrb.mxu1 %vm820_vm2, %v1749_v30 }
 0x783   : > { %v1583_v47 = vpop.f32.mrf.mxu0 }
 0x784   : > { %v1584_v52 = vadd.f32 %v1583_v47, %v3555_v51 }
 0x786   : > { %2706 = vmatpush.xpose.msk.msrb.mxu1 %vm820_vm2, %v1747_v35 }
 0x787   : > { %v1508_v33 = vpop.f32.mrf.mxu2 }
 0x788   : > { %v1509_v34 = vadd.f32 %v1508_v33, %v1481_v22  ;;  %2133 = vrot.lane.b32.xlu2 %v1551_v32, %s3019_s6 }
 0x789   : > { %1973 = vrot.lane.b32.xlu1 %v1551_v32, %s3018_s0 }
 0x78a   : > { %1969 = vrot.lane.b32.xlu0 %v1509_v34, %s3018_s0 }
 0x78b   : > { %v1586_v53 = vpop.f32.mrf.mxu0 }
 0x78c   : > { %v1587_v37 = vadd.f32 %v1586_v53, %v3555_v51 }
 0x78e   : > { %v3562_v58 = vpack.i.bf16 %v1584_v52, %v1587_v37  ;;  %1656 = vmatpush.msrb.mxu2 %v1587_v37 }
 0x790   : > { %2050 = vrot.lane.b32.xlu2 %v1509_v34, %s3017_s30  ;;  %1657 = vmatpush.msrb.mxu2 %v1584_v52 }
 0x791   : > { %2054 = vrot.lane.b32.xlu1 %v1551_v32, %s3017_s30 }
 0x792   : > { %2129 = vrot.lane.b32.xlu0 %v1509_v34, %s3019_s6 }
 0x798   : > { %2801 = vrot.lane.b32.xlu2 %v3562_v58, %s3018_s0 }
 0x799   : > { %2131 = vrot.lane.b32.xlu1 %v1548_v14, %s3019_s6 }
 0x7da   : > { %v1745_v29 = vpop.permute.xlu2 %1744 }
 0x7e2   : > { %v2134_v45 = vpop.permute.xlu2 %2133 }
 0x7ea   : > { %v2051_v55 = vpop.permute.xlu2 %2050 }
 0x7f2   : > { %v2802_v1 = vpop.permute.xlu2 %2801 }
 0x7f3   : > { %v1664_v38 = vpop.permute.xlu1 %1663  ;;  %v1824_v39 = vpop.permute.xlu0 %1823  ;;  %v2804_v4 = vunpack.i.h.bf16 %v2802_v1  ;;  %v2803_v5 = vunpack.i.l.bf16 %v2802_v1 }
 0x7f4   : > { %2703 = vmatmul.msk.f32.vlgmr.msra.gmra.mxu1 %vm820_vm2, %v1664_v38  ;;  %2711 = vmatmul.msk.f32.vlgmr.msra.gmra.mxu3 %vm820_vm2, %v1824_v39  ;;  %v1589_v38 = vpop.f32.mrf.mxu0 }
 0x7f5   : > { %2713 = vmatpush.xpose.msk.msra.mxu1 %vm820_vm2, %v1551_v32  ;;  %1733 = vmatpush.msra.mxu2 %v2803_v5 }
 0x7f7   : > { %1734 = vmatpush.msra.mxu2 %v2804_v4 }
 0x7f9   : > { %2714 = vmatpush.xpose.msk.msra.mxu1 %vm820_vm2, %v1548_v14 }
 0x7fb   : > { %v1974_v42 = vpop.permute.xlu1 %1973 }
 0x7fc   : > { %2707 = vmatmul.msk.f32.vlgmr.msrb.gmra.mxu1 %vm820_vm2, %v1745_v29  ;;  %2717 = vmatpush.xpose.msk.msrb.mxu3 %vm820_vm2, %v1974_v42  ;;  %v1970_v48 = vpop.permute.xlu0 %1969  ;;  %v1592_v39 = vpop.f32.mrf.mxu0  ;;  %v3583_v29 = vadd.f32 %v1589_v38, %v3555_v51 }
 0x7fd   : > { %v1621_v43 = vpop.f32.mrf.mxu1  ;;  %v3586_v41 = vadd.f32 %v1592_v39, %v3555_v51 }
 0x7fe   : > { %v1624_v44 = vmul.f32 0.35355338, %v1621_v43 }
 0x7ff   : > { %v3590_v42 = vpack.i.bf16 %v3583_v29, %v3586_v41 }
 0x800   : > { %2718 = vmatpush.xpose.msk.msrb.mxu3 %vm820_vm2, %v1972_v36  ;;  %v1626_v46 = vadd.f32 %v1625_v40, %v1624_v44 }
 0x802   : > { %v1628_v49 = vsel %vm1627_vm13, %v1626_v46, -inf }
 0x803   : > { %v2055_v50 = vpop.permute.xlu1 %2054  ;;  %2719 = vmatmul.msk.f32.vlgmr.msrb.gmra.mxu3 %vm820_vm2, %v1970_v48  ;;  %1629 = vmax.xlane.f32.xlu1 %v1628_v49 }
 0x804   : > { %2725 = vmatpush.xpose.msk.msra.mxu3 %vm820_vm2, %v2134_v45  ;;  %2715 = vmatmul.msk.f32.vlgmr.msra.gmra.mxu1 %vm820_vm2, %v1509_v34  ;;  %v2130_v20 = vpop.permute.xlu0 %2129 }
 0x805   : > { %2721 = vmatpush.xpose.msk.msrb.mxu1 %vm820_vm2, %v2055_v50 }
 0x809   : > { %2722 = vmatpush.xpose.msk.msrb.mxu1 %vm820_vm2, %v2053_v11 }
 0x80b   : > { %v2132_v56 = vpop.permute.xlu1 %2131 }
 0x80c   : > { %2723 = vmatmul.msk.f32.vlgmr.msrb.gmra.mxu1 %vm820_vm2, %v2051_v55  ;;  %2726 = vmatpush.xpose.msk.msra.mxu3 %vm820_vm2, %v2132_v56 }
 0x80f   : > { %2727 = vmatmul.msk.f32.vlgmr.msra.gmra.mxu3 %vm820_vm2, %v2130_v20 }
 0x871   : > { %v1692_v59 = vpop.f32.mrf.mxu1 }
 0x872   : > { %v1695_v60 = vmul.f32 0.35355338, %v1692_v59 }
 0x874   : > { %v1696_v61 = vadd.f32 %v1695_v60, %v1625_v40 }
 0x876   : > { %v1630_v62 = vpop.xlane.xlu1 %1629  ;;  %v1697_v31 = vsel %vm1627_vm13, %v1696_v61, -inf }
 0x877   : > { %v1631_v63 = vsub.f32 %v1626_v46, %v1630_v62  ;;  %1698 = vmax.xlane.f32.xlu2 %v1697_v31  ;;  %v1852_v0 = vpop.f32.mrf.mxu3 }
 0x878   : > { %v1855_v27 = vmul.f32 0.35355338, %v1852_v0 }
 0x879   : > { %v1632_v3 = vmul.f32 1.442695, %v1631_v63  ;;  %v1773_v17 = vpop.f32.mrf.mxu1 }
 0x87a   : > { %v1776_v6 = vmul.f32 0.35355338, %v1773_v17  ;;  %v1856_v7 = vadd.f32 %v1855_v27, %v1625_v40 }
 0x87b   : > { %2872 = vpow2.f32 %v1632_v3 }
 0x87c   : > { %v1857_v12 = vsel %vm1627_vm13, %v1856_v7, -inf  ;;  %v1777_v9 = vadd.f32 %v1776_v6, %v1625_v40 }
 0x87d   : > { %1858 = vmax.xlane.f32.xlu1 %v1857_v12 }
 0x87e   : > { %v1778_v14 = vsel %vm1627_vm13, %v1777_v9, -inf }
 0x87f   : > { %1779 = vmax.xlane.f32.xlu0 %v1778_v14 }
 0x881   : > { %v1928_v16 = vpop.f32.mrf.mxu1  ;;  %v2873_v21 = vpop.eup %2872 }
 0x882   : > { %v1931_v19 = vmul.f32 0.35355338, %v1928_v16  ;;  %v1634_v24 = vsel %vm1627_vm13, %v2873_v21, 0.0 }
 0x884   : > { %v1933_v22 = vadd.f32 %v1932_v15, %v1931_v19 }
 0x886   : > { %v1998_v18 = vpop.f32.mrf.mxu3  ;;  %v1934_v23 = vsel %vm1627_vm13, %v1933_v22, -inf }
 0x887   : > { %v2001_v25 = vmul.f32 0.35355338, %v1998_v18  ;;  %1935 = vmax.xlane.f32.xlu2 %v1934_v23  ;;  %1635 = vadd.xlane.f32.xlu0 %v1634_v24 }
 0x889   : > { %v2079_v26 = vpop.f32.mrf.mxu1  ;;  %v2002_v30 = vadd.f32 %v2001_v25, %v1932_v15 }
 0x88a   : > { %v2082_v28 = vmul.f32 0.35355338, %v2079_v26 }
 0x88b   : > { %v2003_v34 = vsel %vm1627_vm13, %v2002_v30, -inf }
 0x88c   : > { %v3574_v32 = vadd.f32 %v2082_v28, %v1932_v15 }
 0x88e   : > { %v2084_v33 = vsel %vm1627_vm13, %v3574_v32, -inf }
 0x88f   : > { %2085 = vmax.xlane.f32.xlu1 %v2084_v33  ;;  %2004 = vmax.xlane.f32.xlu0 %v2003_v34 }
 0x892   : > { %v2158_v8 = vpop.f32.mrf.mxu3 }
 0x893   : > { %v2161_v35 = vmul.f32 0.35355338, %v2158_v8 }
 0x895   : > { %v2162_v11 = vadd.f32 %v2161_v35, %v1932_v15 }
 0x897   : > { %v2163_v36 = vsel %vm1627_vm13, %v2162_v11, -inf }
 0x898   : > { %2164 = vmax.xlane.f32.xlu2 %v2163_v36 }
 0x8b0   : > { %2811 = vrot.lane.b32.xlu2 %v3562_v58, %s3019_s6 }
 0x8b8   : > { %2816 = vrot.lane.b32.xlu2 %v3590_v42, %s3018_s0 }
 0x8ea   : > { %v1699_v40 = vpop.xlane.xlu2 %1698 }
 0x8eb   : > { %v1700_v43 = vsub.f32 %v1696_v61, %v1699_v40 }
 0x8ed   : > { %v1701_v44 = vmul.f32 1.442695, %v1700_v43 }
 0x8ef   : > { %2874 = vpow2.f32 %v1701_v44 }
 0x8f0   : > { %v1859_v45 = vpop.xlane.xlu1 %1858 }
 0x8f1   : > { %v1860_v46 = vsub.f32 %v1856_v7, %v1859_v45 }
 0x8f2   : > { %v1780_v47 = vpop.xlane.xlu0 %1779 }
 0x8f3   : > { %v1861_v48 = vmul.f32 1.442695, %v1860_v46  ;;  %v1781_v49 = vsub.f32 %v1777_v9, %v1780_v47 }
 0x8f5   : > { %v3594_v50 = vpop.eup %2874  ;;  %2876 = vpow2.f32 %v1861_v48  ;;  %v1782_v51 = vmul.f32 1.442695, %v1781_v49 }
 0x8f6   : > { %v1703_v52 = vsel %vm1627_vm13, %v3594_v50, 0.0 }
 0x8f7   : > { %1704 = vadd.xlane.f32.xlu1 %v1703_v52  ;;  %2878 = vpow2.f32 %v1782_v51 }
 0x8fa   : > { %v1936_v53 = vpop.xlane.xlu2 %1935  ;;  %v1636_v37 = vpop.xlane.xlu0 %1635 }
 0x8fb   : > { %v2877_v55 = vpop.eup %2876  ;;  %v1937_v56 = vsub.f32 %v1933_v22, %v1936_v53  ;;  %2880 = vrcp.f32 %v1636_v37 }
 0x8fc   : > { %v1863_v20 = vsel %vm1627_vm13, %v2877_v55, 0.0 }
 0x8fd   : > { %1864 = vadd.xlane.f32.xlu0 %v1863_v20  ;;  %v1938_v59 = vmul.f32 1.442695, %v1937_v56  ;;  %v3599_v60 = vpop.eup %2878 }
 0x8fe   : > { %v1784_v0 = vsel %vm1627_vm13, %v3599_v60, 0.0 }
 0x8ff   : > { %2882 = vpow2.f32 %v1938_v59 }
 0x901   : > { %v2881_v61 = vpop.eup %2880 }
 0x902   : > { %v1638_v62 = vmul.f32 %v2881_v61, %v2873_v21  ;;  %v2005_v31 = vpop.xlane.xlu0 %2004  ;;  %v2086_v19 = vpop.xlane.xlu1 %2085 }
 0x903   : > { %v2006_v63 = vsub.f32 %v2002_v30, %v2005_v31  ;;  %v2087_v21 = vsub.f32 %v3574_v32, %v2086_v19 }
 0x904   : > { %2700 = vmatmul.msk.f32.vlgmr.msrb.gmra.mxu2 %vm1627_vm13, %v1638_v62 }
 0x905   : > { %1785 = vadd.xlane.f32.xlu0 %v1784_v0  ;;  %v2007_v27 = vmul.f32 1.442695, %v2006_v63  ;;  %v3604_v1 = vpop.eup %2882  ;;  %v2088_v23 = vmul.f32 1.442695, %v2087_v21 }
 0x906   : > { %v1940_v4 = vsel %vm1627_vm13, %v3604_v1, 0.0 }
 0x907   : > { %2884 = vpow2.f32 %v2007_v27  ;;  %v715_v27 = vld [vmem:[%s3200_s21 + $0xf8] sm:$0xff] }
 0x908   : > { %2229 = vmatpush.msra.mxu1 %v715_v27 }
 0x90b   : > { %v2165_v3 = vpop.xlane.xlu2 %2164 }
 0x90c   : > { %v2166_v17 = vsub.f32 %v2162_v11, %v2165_v3  ;;  %v713_v3 = vld [vmem:[%s3200_s21 + $0xe8] sm:$0xff] }
 0x90d   : > { %1941 = vadd.xlane.f32.xlu0 %v1940_v4  ;;  %v2885_v6 = vpop.eup %2884 }
 0x90e   : > { %v2167_v5 = vmul.f32 1.442695, %v2166_v17  ;;  %v2009_v9 = vsel %vm1627_vm13, %v2885_v6, 0.0  ;;  %v712_v17 = vld [vmem:[%s3200_s21 + $0xe0] sm:$0xff] }
 0x910   : > { %2886 = vpow2.f32 %v2167_v5  ;;  %2806 = vrot.lane.b32.xlu1 %v3562_v58, %s3017_s30 }
 0x911   : > { %2888 = vpow2.f32 %v2088_v23 }
 0x913   : > { %v2812_v7 = vpop.permute.xlu2 %2811 }
 0x914   : > { %v2813_v12 = vunpack.i.l.bf16 %v2812_v7  ;;  %v2814_v15 = vunpack.i.h.bf16 %v2812_v7 }
 0x915   : > { %2010 = vadd.xlane.f32.xlu0 %v2009_v9 }
 0x916   : > { %v3611_v14 = vpop.eup %2886  ;;  %1891 = vmatpush.msrb.mxu0 %v2813_v12 }
 0x917   : > { %v2169_v16 = vsel %vm1627_vm13, %v3611_v14, 0.0  ;;  %v2889_v24 = vpop.eup %2888 }
 0x918   : > { %2170 = vadd.xlane.f32.xlu2 %v2169_v16  ;;  %1892 = vmatpush.msrb.mxu0 %v2814_v15  ;;  %v2090_v25 = vsel %vm1627_vm13, %v2889_v24, 0.0  ;;  %v2916_v16 = vld [vmem:[%s3216_s17] sm:$0xff] }
 0x919   : > { %v2210_v19 = vperm.slane %v2916_v16, 7 }
 0x91b   : > { %v2817_v58 = vpop.permute.xlu2 %2816 }
 0x91c   : > { %v2819_v22 = vunpack.i.h.bf16 %v2817_v58  ;;  %v2818_v18 = vunpack.i.l.bf16 %v2817_v58 }
 0x91e   : > { %2039 = vmatpush.msra.mxu0 %v2818_v18 }
 0x920   : > { %2040 = vmatpush.msra.mxu0 %v2819_v22 }
 0x929   : > { %2821 = vrot.lane.b32.xlu0 %v3590_v42, %s3017_s30 }
 0x931   : > { %2826 = vrot.lane.b32.xlu0 %v3590_v42, %s3019_s6  ;;  %s3816_s6 = sld [smem:[#allocation26_spill]] }
 0x93a   : > { %2091 = vadd.xlane.f32.xlu1 %v2090_v25 }
 0x96a   : > { %v1705_v26 = vpop.xlane.xlu1 %1704 }
 0x96b   : > { %2890 = vrcp.f32 %v1705_v26 }
 0x970   : > { %v1865_v28 = vpop.xlane.xlu0 %1864 }
 0x971   : > { %v2891_v30 = vpop.eup %2890  ;;  %2892 = vrcp.f32 %v1865_v28 }
 0x972   : > { %v1707_v32 = vmul.f32 %v2891_v30, %v3594_v50 }
 0x974   : > { %2704 = vmatmul.msk.f32.vlgmr.msra.gmra.mxu2 %vm1627_vm13, %v1707_v32 }
 0x977   : > { %v2893_v33 = vpop.eup %2892 }
 0x978   : > { %v1867_v34 = vmul.f32 %v2893_v33, %v2877_v55  ;;  %v1786_v8 = vpop.xlane.xlu0 %1785 }
 0x979   : > { %2894 = vrcp.f32 %v1786_v8 }
 0x97a   : > { %2712 = vmatmul.msk.f32.vlgmr.msrb.gmra.mxu0 %vm1627_vm13, %v1867_v34 }
 0x97f   : > { %v2895_v36 = vpop.eup %2894 }
 0x980   : > { %v1942_v35 = vpop.xlane.xlu0 %1941  ;;  %v1788_v42 = vmul.f32 %v2895_v36, %v3599_v60  ;;  %v722_v36 = vld [vmem:[%s3232_s26 + $0x18] sm:$0xff] }
 0x981   : > { %2896 = vrcp.f32 %v1942_v35 }
 0x982   : > { %v2807_v11 = vpop.permute.xlu1 %2806 }
 0x983   : > { %v2808_v38 = vunpack.i.l.bf16 %v2807_v11  ;;  %v2809_v39 = vunpack.i.h.bf16 %v2807_v11 }
 0x985   : > { %1812 = vmatpush.msrb.mxu2 %v2808_v38  ;;  %v721_v38 = vld [vmem:[%s3232_s26 + $0x10] sm:$0xff] }
 0x987   : > { %v1659_v40 = vpop.f32.mrf.mxu2  ;;  %1813 = vmatpush.msrb.mxu2 %v2809_v39  ;;  %v2897_v44 = vpop.eup %2896  ;;  %v720_v39 = vld [vmem:[%s3232_s26 + $0x8] sm:$0xff] }
 0x988   : > { %1662 = vst.msk [vmem:[#allocation3] sm:$0xff] %vm820_vm2, %v1659_v40  ;;  %2708 = vmatmul.msk.f32.vlgmr.msrb.gmra.mxu2 %vm1627_vm13, %v1788_v42  ;;  %v2011_v43 = vpop.xlane.xlu0 %2010  ;;  %v1944_v45 = vmul.f32 %v2897_v44, %v3604_v1  ;;  %v714_v1 = vld [vmem:[%s3200_s21 + $0xf0] sm:$0xff]  ;;  %v719_v42 = vld [vmem:[%s3232_s26] sm:$0xff] }
 0x989   : > { %1962 = vmatpush.msra.mxu2 %v3586_v41  ;;  %2898 = vrcp.f32 %v2011_v43  ;;  %2230 = vmatpush.msra.mxu1 %v714_v1 }
 0x98b   : > { %1963 = vmatpush.msra.mxu2 %v3583_v29  ;;  %v2171_v48 = vpop.xlane.xlu2 %2170  ;;  %2231 = vmatpush.msra.mxu1 %v713_v3 }
 0x98c   : > { %2900 = vrcp.f32 %v2171_v48 }
 0x98d   : > { %2232 = vmatpush.msra.mxu1 %v712_v17 }
 0x98f   : > { %v2899_v46 = vpop.eup %2898 }
 0x990   : > { %v2013_v47 = vmul.f32 %v2899_v46, %v2885_v6  ;;  %2716 = vmatmul.msk.f32.vlgmr.msra.gmra.mxu2 %vm1627_vm13, %v1944_v45 }
 0x992   : > { %2720 = vmatmul.msk.f32.vlgmr.msra.gmra.mxu0 %vm1627_vm13, %v2013_v47  ;;  %v2901_v52 = vpop.eup %2900 }
 0x993   : > { %v2173_v29 = vmul.f32 %v2901_v52, %v3611_v14 }
 0x99b   : > { %v2822_v49 = vpop.permute.xlu0 %2821 }
 0x99c   : > { %v2823_v50 = vunpack.i.l.bf16 %v2822_v49  ;;  %v2824_v51 = vunpack.i.h.bf16 %v2822_v49 }
 0x99e   : > { %2118 = vmatpush.msrb.mxu2 %v2823_v50 }
 0x9a0   : > { %2119 = vmatpush.msrb.mxu2 %v2824_v51  ;;  %v2286_v51 = vperm.slane %v3482_v54, 1 }
 0x9a2   : > { %2313 = vmatpush.msra.mxu2 %v722_v36 }
 0x9a3   : > { %v2827_v41 = vpop.permute.xlu0 %2826 }
 0x9a4   : > { %v2828_v53 = vunpack.i.l.bf16 %v2827_v41  ;;  %v2829_v37 = vunpack.i.h.bf16 %v2827_v41  ;;  %2314 = vmatpush.msra.mxu2 %v721_v38 }
 0x9a6   : > { %2197 = vmatpush.msrb.mxu0 %v2828_v53  ;;  %2315 = vmatpush.msra.mxu2 %v720_v39  ;;  %v2289_v53 = vperm.slane %v3486_v57, 1 }
 0x9a8   : > { %2198 = vmatpush.msrb.mxu0 %v2829_v37  ;;  %2316 = vmatpush.msra.mxu2 %v719_v42  ;;  %v731_v37 = vld [vmem:[%s3246_s23 + $0x38] sm:$0xff] }
 0x9a9   : > { %2728 = vmatmul.msk.f32.vlgmr.msrb.gmra.mxu0 %vm1627_vm13, %v2173_v29  ;;  %v730_v29 = vld [vmem:[%s3246_s23 + $0x30] sm:$0xff]  ;;  %2344 = vmatpush.msrb.mxu3 %v731_v37  ;;  %v2408_v37 = vperm.slane %v3486_v57, 2 }
 0x9ab   : > { %2345 = vmatpush.msrb.mxu3 %v730_v29 }
 0x9ad   : > { %v2092_v55 = vpop.xlane.xlu1 %2091 }
 0x9ae   : > { %2902 = vrcp.f32 %v2092_v55 }
 0x9b4   : > { %v2903_v56 = vpop.eup %2902 }
 0x9b5   : > { %v2094_v20 = vmul.f32 %v2903_v56, %v2889_v24  ;;  %v729_v56 = vld [vmem:[%s3246_s23 + $0x28] sm:$0xff] }
 0x9b6   : > { %2346 = vmatpush.msrb.mxu3 %v729_v56 }
 0x9b7   : > { %2724 = vmatmul.msk.f32.vlgmr.msrb.gmra.mxu2 %vm1627_vm13, %v2094_v20 }
 0x9f7   : > { %v1736_v59 = vpop.f32.mrf.mxu2  ;;  %v1894_v60 = vpop.f32.mrf.mxu0 }
 0x9f8   : > { %1740 = vrot.lane.b32.xlu0 %v1736_v59, %s3020_s4  ;;  %1898 = vrot.lane.b32.xlu1 %v1894_v60, %s3022_s7 }
 0xa0b   : > { %v1815_v61 = vpop.f32.mrf.mxu2 }
 0xa0c   : > { %1819 = vrot.lane.b32.xlu0 %v1815_v61, %s3021_s27  ;;  %v728_v61 = vld [vmem:[%s3246_s23 + $0x20] sm:$0xff] }
 0xa0d   : > { %2347 = vmatpush.msrb.mxu3 %v728_v61 }
 0xa0f   : > { %v2042_v62 = vpop.f32.mrf.mxu0 }
 0xa13   : > { %v1965_v31 = vpop.f32.mrf.mxu2 }
 0xa14   : > { %1968 = vst.msk [vmem:[#allocation3 + $0x8] sm:$0xff] %vm820_vm2, %v1965_v31  ;;  %2046 = vrot.lane.b32.xlu0 %v2042_v62, %s3020_s4  ;;  %v727_v31 = vld [vmem:[%s3246_s23 + $0x18] sm:$0xff] }
 0xa15   : > { %2348 = vmatpush.msrb.mxu3 %v727_v31 }
 0xa26   : > { %v2200_v63 = vpop.f32.mrf.mxu0 }
 0xa27   : > { %2204 = vrot.lane.b32.xlu0 %v2200_v63, %s3022_s7  ;;  %s2743_s7 = sshll.u32 %s3131_s25, 4 }
 0xa28   : > { %s2483_s20 = scalar_lea.hbm %s3818_s14, %s2743_s7 }
 0xa29   : > { %s2486_s26 = sshll.u32 %s2483_s20, 4  ;;  %s2487_s26 = int_to_ptr.hbm [resolvable:$true] %s2486_s26 }
 0xa2a   : > { %s2961_s25 = sshra.s32 %s2487_s26, 4  ;;  %s2962_s25 = int_to_ptr.hbm [resolvable:$true] %s2961_s25 }
 0xa2b   : > { %s2963_s17 = scalar_lea.hbm %s2962_s25, 16  ;;  %p2968_p3 = scmp.lt.s32.totalorder %s2962_s25, %s3818_s14 }
 0xa2c   : > { %p2964_p13 = scmp.ne.s32.totalorder %s2962_s25, %s2963_s17 }
 0xa2e   : > { %p2965_p0 = pnand %p2964_p13, %p3160_p11 }
 0xa30   : > { %p2966_p1 = pneg %p2965_p0 }
 0xa3a   : > { %v2121_v0 = vpop.f32.mrf.mxu2 }
 0xa3b   : > { %2125 = vrot.lane.b32.xlu2 %v2121_v0, %s3021_s27  ;;  %s3817_s27 = sld [smem:[#allocation18_spill]] }
 0xa41   : > { %s2472_s21 = scalar_lea.sflag [#allocation6], %s3817_s27 }
 0xa6a   : > { %v1741_v4 = vpop.permute.xlu0 %1740  ;;  %v1899_v6 = vpop.permute.xlu1 %1898 }
 0xa6b   : > { %1743 = vst.msk [vmem:[#allocation3] sm:$0xff] %vm956_vm3, %v1741_v4 }
 0xa7e   : > { %v1820_v5 = vpop.permute.xlu0 %1819 }
 0xa7f   : > { %1822 = vst.msk [vmem:[#allocation3] sm:$0xff] %vm1029_vm4, %v1820_v5 }
 0xa80   : > { %1901 = vst.msk [vmem:[#allocation3] sm:$0xff] %vm1102_vm5, %v1899_v6 }
 0xa86   : > { %v2047_v7 = vpop.permute.xlu0 %2046 }
 0xa87   : > { %2049 = vst.msk [vmem:[#allocation3 + $0x8] sm:$0xff] %vm956_vm3, %v2047_v7  ;;  %v2208_v12 = vld [vmem:[#allocation3] sm:$0xff] }
 0xa88   : > { %2729 = vmatmul.msk.f32.vlgmr.msra.gmra.mxu1 %vm736_vm1, %v2208_v12  ;;  %v726_v12 = vld [vmem:[%s3246_s23 + $0x10] sm:$0xff] }
 0xa89   : > { %2349 = vmatpush.msrb.mxu3 %v726_v12 }
 0xa95   : > { %v2126_v9 = vpop.permute.xlu2 %2125 }
 0xa96   : > { %2128 = vst.msk [vmem:[#allocation3 + $0x8] sm:$0xff] %vm1029_vm4, %v2126_v9  ;;  %v725_v9 = vld [vmem:[%s3246_s23 + $0x8] sm:$0xff] }
 0xa97   : > { %2350 = vmatpush.msrb.mxu3 %v725_v9 }
 0xa99   : > { %v2205_v14 = vpop.permute.xlu0 %2204 }
 0xa9a   : > { %2207 = vst.msk [vmem:[#allocation3 + $0x8] sm:$0xff] %vm1102_vm5, %v2205_v14  ;;  %v724_v14 = vld [vmem:[%s3246_s23] sm:$0xff]  ;;  %vm2329_vm5 = vcmask 523264  }
 0xa9b   : > { %2351 = vmatpush.msrb.mxu3 %v724_v14 }
 0xaa1   : > { %v2209_v15 = vld [vmem:[#allocation3 + $0x8] sm:$0xff] }
 0xaa2   : > { %2730 = vmatmul.msk.f32.gmra.mxu1 %vm736_vm1, %v2209_v15  ;;  %v2830_v15 = vld [vmem:[%s652_s16] ss:$0 sm:$0xff]  ;;  %s2967_s16 = scalar_lea.hbm %s3818_s14, 32 }
 0xaa3   : > { %p2969_p4 = scmp.lt.s32.totalorder %s2967_s16, %s2963_s17 }
 0xaa5   : > { %p2970_p7 = por %p2969_p4, %p2968_p3 }
 0xaa7   : > { %p2971_p5 = pnand %p2970_p7, %p2966_p1 }
 0xb05   : > { %v2234_v21 = vpop.f32.mrf.mxu1 }
 0xb06   : > { %v2235_v58 = vadd.f32 %v2234_v21, %v2210_v19 }
 0xb08   : > { %v2240_v22 = vadd.f32 %v2235_v58, %v3494_v2 }
 0xb0a   : > { %v2242_v18 = vsel %vm736_vm1, %v2240_v22, 0.0 }
 0xb0b   : > { %2243 = vadd.xlane.f32.xlu0 %v2242_v18 }
 0xb1f   : > { %v2237_v23 = vpop.f32.mrf.mxu1 }
 0xb20   : > { %v2238_v24 = vadd.f32 %v2237_v23, %v2210_v19  ;;  %v2831_v23 = vld [vmem:[%s660_s28] ss:$0 sm:$0xff]  ;;  %s3815_s28 = sld [smem:[#allocation25_spill]] }
 0xb22   : > { %v2241_v25 = vadd.f32 %v2238_v24, %v3502_v10 }
 0xb24   : > { %v2245_v26 = vsel %vm736_vm1, %v2241_v25, 0.0 }
 0xb25   : > { %2246 = vadd.xlane.f32.xlu1 %v2245_v26 }
 0xb7e   : > { %v2244_v28 = vpop.xlane.xlu0 %2243 }
 0xb7f   : > { %v2248_v30 = vmul.f32 %v2244_v28, %v3437_v13 }
 0xb81   : > { %v2250_v32 = vsub.f32 %v2240_v22, %v2248_v30 }
 0xb83   : > { %v2252_v33 = vmul.f32 %v2250_v32, %v2250_v32 }
 0xb85   : > { %v2254_v2 = vsel %vm736_vm1, %v2252_v33, 0.0 }
 0xb86   : > { %2255 = vadd.xlane.f32.xlu2 %v2254_v2 }
 0xb98   : > { %v2247_v34 = vpop.xlane.xlu1 %2246 }
 0xb99   : > { %v2249_v8 = vmul.f32 %v2247_v34, %v3437_v13 }
 0xb9b   : > { %v2251_v35 = vsub.f32 %v2241_v25, %v2249_v8 }
 0xb9d   : > { %v2253_v11 = vmul.f32 %v2251_v35, %v2251_v35 }
 0xb9f   : > { %v2257_v10 = vsel %vm736_vm1, %v2253_v11, 0.0 }
 0xba0   : > { %2258 = vadd.xlane.f32.xlu0 %v2257_v10 }
 0xbf9   : > { %v2256_v40 = vpop.xlane.xlu2 %2255 }
 0xbfa   : > { %v2260_v43 = vmul.f32 %v2256_v40, %v3437_v13 }
 0xbfc   : > { %v2262_v44 = vadd.f32 1e-05, %v2260_v43 }
 0xbfe   : > { %2904 = vrsqrt.f32 %v2262_v44  ;;  %vm2270_vm15 = vweird.f32 %v2262_v44 }
 0xc04   : > { %v2905_v45 = vpop.eup %2904 }
 0xc05   : > { %v2265_v46 = vmul.f32 %v2905_v45, %v2262_v44  ;;  %vm2271_vm14 = vweird.f32 %v2905_v45 }
 0xc06   : > { %vm2272_vm0 = vmor %vm2270_vm15, %vm2271_vm14 }
 0xc07   : > { %v2266_v47 = vmul.f32 %v2905_v45, %v2265_v46 }
 0xc09   : > { %v2267_v48 = vmul.f32 0.5, %v2266_v47 }
 0xc0b   : > { %v2268_v49 = vsub.f32 1.5, %v2267_v48 }
 0xc0d   : > { %v2269_v50 = vmul.f32 %v2905_v45, %v2268_v49 }
 0xc0f   : > { %v2273_v41 = vsel %vm2272_vm0, %v2905_v45, %v2269_v50 }
 0xc10   : > { %v2284_v52 = vmul.f32 %v2273_v41, %v2250_v32  ;;  %v2405_v41 = vperm.slane %v3482_v54, 2 }
 0xc12   : > { %v2287_v55 = vmul.f32 %v2286_v51, %v2284_v52 }
 0xc13   : > { %v2259_v20 = vpop.xlane.xlu0 %2258 }
 0xc14   : > { %v2261_v59 = vmul.f32 %v2259_v20, %v3437_v13  ;;  %v2290_v60 = vadd.f32 %v2289_v53, %v2287_v55 }
 0xc16   : > { %v2263_v62 = vadd.f32 1e-05, %v2261_v59  ;;  %2731 = vmatmul.msk.f32.vlgmr.msra.gmra.mxu2 %vm736_vm1, %v2290_v60 }
 0xc18   : > { %2906 = vrsqrt.f32 %v2263_v62  ;;  %vm2280_vm3 = vweird.f32 %v2263_v62 }
 0xc1e   : > { %v2907_v63 = vpop.eup %2906 }
 0xc1f   : > { %v2275_v0 = vmul.f32 %v2907_v63, %v2263_v62  ;;  %vm2281_vm2 = vweird.f32 %v2907_v63 }
 0xc20   : > { %vm2282_vm4 = vmor %vm2280_vm3, %vm2281_vm2 }
 0xc21   : > { %v2276_v27 = vmul.f32 %v2907_v63, %v2275_v0 }
 0xc23   : > { %v2277_v1 = vmul.f32 0.5, %v2276_v27 }
 0xc25   : > { %v2278_v3 = vsub.f32 1.5, %v2277_v1 }
 0xc27   : > { %v2279_v17 = vmul.f32 %v2907_v63, %v2278_v3 }
 0xc29   : > { %v2283_v4 = vsel %vm2282_vm4, %v2907_v63, %v2279_v17 }
 0xc2a   : > { %v2285_v5 = vmul.f32 %v2283_v4, %v2251_v35 }
 0xc2c   : > { %v2288_v6 = vmul.f32 %v2286_v51, %v2285_v5 }
 0xc2e   : > { %v2291_v7 = vadd.f32 %v2289_v53, %v2288_v6 }
 0xc30   : > { %2732 = vmatmul.msk.f32.gmra.mxu2 %vm736_vm1, %v2291_v7 }
 0xc99   : > { %v2318_v16 = vpop.f32.mrf.mxu2 }
 0xc9a   : > { %v2319_v19 = vadd.f32 %v2830_v15, %v2318_v16 }
 0xc9c   : > { %v2324_v21 = vmax.f32 %v2319_v19, 0.0 }
 0xc9e   : > { %2733 = vmatmul.msk.f32.vlgmr.msrb.gmra.mxu3 %vm2329_vm5, %v2324_v21 }
 0xcb3   : > { %v2321_v58 = vpop.f32.mrf.mxu2 }
 0xcb4   : > { %v2322_v22 = vadd.f32 %v2830_v15, %v2321_v58 }
 0xcb6   : > { %v2325_v18 = vmax.f32 %v2322_v22, 0.0 }
 0xcb8   : > { %2734 = vmatmul.msk.f32.gmra.mxu3 %vm2329_vm5, %v2325_v18 }
 0xd21   : > { %v2353_v24 = vpop.f32.mrf.mxu3 }
 0xd22   : > { %v2354_v25 = vadd.f32 %v2831_v23, %v2353_v24 }
 0xd24   : > { %v2359_v26 = vadd.f32 %v2354_v25, %v2290_v60 }
 0xd26   : > { %v2361_v28 = vsel %vm736_vm1, %v2359_v26, 0.0 }
 0xd27   : > { %2362 = vadd.xlane.f32.xlu1 %v2361_v28 }
 0xd3b   : > { %v2356_v30 = vpop.f32.mrf.mxu3 }
 0xd3c   : > { %v2357_v32 = vadd.f32 %v2831_v23, %v2356_v30  ;;  %v2832_v30 = vld [vmem:[%s3815_s28] ss:$0 sm:$0xff] }
 0xd3e   : > { %v2360_v33 = vadd.f32 %v2357_v32, %v2291_v7 }
 0xd40   : > { %v2364_v2 = vsel %vm736_vm1, %v2360_v33, 0.0 }
 0xd41   : > { %2365 = vadd.xlane.f32.xlu0 %v2364_v2  ;;  %v2833_v2 = vld [vmem:[%s3816_s6] ss:$0 sm:$0xff] }
 0xd9a   : > { %v2363_v34 = vpop.xlane.xlu1 %2362 }
 0xd9b   : > { %v2367_v8 = vmul.f32 %v2363_v34, %v3437_v13 }
 0xd9d   : > { %v2369_v35 = vsub.f32 %v2359_v26, %v2367_v8 }
 0xd9f   : > { %v2371_v11 = vmul.f32 %v2369_v35, %v2369_v35 }
 0xda1   : > { %v2373_v10 = vsel %vm736_vm1, %v2371_v11, 0.0 }
 0xda2   : > { %2374 = vadd.xlane.f32.xlu2 %v2373_v10 }
 0xdb4   : > { %v2366_v36 = vpop.xlane.xlu0 %2365 }
 0xdb5   : > { %v2368_v38 = vmul.f32 %v2366_v36, %v3437_v13 }
 0xdb7   : > { %v2370_v39 = vsub.f32 %v2360_v33, %v2368_v38 }
 0xdb9   : > { %v2372_v42 = vmul.f32 %v2370_v39, %v2370_v39 }
 0xdbb   : > { %v2376_v40 = vsel %vm736_vm1, %v2372_v42, 0.0 }
 0xdbc   : > { %2377 = vadd.xlane.f32.xlu1 %v2376_v40 }
 0xe15   : > { %v2375_v43 = vpop.xlane.xlu2 %2374 }
 0xe16   : > { %v2379_v44 = vmul.f32 %v2375_v43, %v3437_v13 }
 0xe18   : > { %v2381_v45 = vadd.f32 1e-05, %v2379_v44 }
 0xe1a   : > { %2908 = vrsqrt.f32 %v2381_v45  ;;  %vm2389_vm7 = vweird.f32 %v2381_v45 }
 0xe20   : > { %v2909_v46 = vpop.eup %2908 }
 0xe21   : > { %v2384_v47 = vmul.f32 %v2909_v46, %v2381_v45  ;;  %vm2390_vm6 = vweird.f32 %v2909_v46 }
 0xe22   : > { %vm2391_vm8 = vmor %vm2389_vm7, %vm2390_vm6 }
 0xe23   : > { %v2385_v48 = vmul.f32 %v2909_v46, %v2384_v47 }
 0xe25   : > { %v2386_v49 = vmul.f32 0.5, %v2385_v48 }
 0xe27   : > { %v2387_v50 = vsub.f32 1.5, %v2386_v49 }
 0xe29   : > { %v2388_v51 = vmul.f32 %v2909_v46, %v2387_v50 }
 0xe2b   : > { %v2392_v52 = vsel %vm2391_vm8, %v2909_v46, %v2388_v51 }
 0xe2c   : > { %v2403_v53 = vmul.f32 %v2392_v52, %v2369_v35 }
 0xe2e   : > { %v2406_v29 = vmul.f32 %v2405_v41, %v2403_v53 }
 0xe2f   : > { %v2378_v55 = vpop.xlane.xlu1 %2377 }
 0xe30   : > { %v2380_v56 = vmul.f32 %v2378_v55, %v3437_v13  ;;  %v2409_v20 = vadd.f32 %v2408_v37, %v2406_v29 }
 0xe32   : > { %v2382_v59 = vadd.f32 1e-05, %v2380_v56  ;;  %v2415_v60 = vsel %vm736_vm1, %v2409_v20, 0.0  ;;  %2411 = vst.msk [vmem:[#allocation2] sm:$0xff] %vm736_vm1, %v2409_v20 }
 0xe33   : > { %2416 = vadd.xlane.f32.xlu0 %v2415_v60 }
 0xe34   : > { %2910 = vrsqrt.f32 %v2382_v59  ;;  %vm2399_vm10 = vweird.f32 %v2382_v59 }
 0xe3a   : > { %v2911_v61 = vpop.eup %2910 }
 0xe3b   : > { %v2394_v62 = vmul.f32 %v2911_v61, %v2382_v59  ;;  %vm2400_vm9 = vweird.f32 %v2911_v61 }
 0xe3c   : > { %vm2401_vm11 = vmor %vm2399_vm10, %vm2400_vm9 }
 0xe3d   : > { %v2395_v31 = vmul.f32 %v2911_v61, %v2394_v62 }
 0xe3f   : > { %v2396_v54 = vmul.f32 0.5, %v2395_v31 }
 0xe41   : > { %v2397_v63 = vsub.f32 1.5, %v2396_v54 }
 0xe43   : > { %v2398_v0 = vmul.f32 %v2911_v61, %v2397_v63 }
 0xe45   : > { %v2402_v57 = vsel %vm2401_vm11, %v2911_v61, %v2398_v0 }
 0xe46   : > { %v2404_v27 = vmul.f32 %v2402_v57, %v2370_v39 }
 0xe48   : > { %v2407_v1 = vmul.f32 %v2405_v41, %v2404_v27 }
 0xe4a   : > { %v2410_v3 = vadd.f32 %v2408_v37, %v2407_v1 }
 0xe4c   : > { %v2418_v17 = vsel %vm736_vm1, %v2410_v3, 0.0  ;;  %2412 = vst.msk [vmem:[#allocation2 + $0x8] sm:$0xff] %vm736_vm1, %v2410_v3 }
 0xe4d   : > { %2419 = vadd.xlane.f32.xlu2 %v2418_v17 }
 0xea6   : > { %v2417_v4 = vpop.xlane.xlu0 %2416 }
 0xea7   : > { %v2421_v5 = vmul.f32 %v2417_v4, %v3437_v13 }
 0xea9   : > { %v2423_v6 = vsub.f32 %v2409_v20, %v2421_v5 }
 0xeab   : > { %v2425_v7 = vmul.f32 %v2423_v6, %v2423_v6 }
 0xead   : > { %v2427_v12 = vsel %vm736_vm1, %v2425_v7, 0.0 }
 0xeae   : > { %2428 = vadd.xlane.f32.xlu1 %v2427_v12 }
 0xec0   : > { %v2420_v9 = vpop.xlane.xlu2 %2419 }
 0xec1   : > { %v2422_v14 = vmul.f32 %v2420_v9, %v3437_v13 }
 0xec3   : > { %v2424_v15 = vsub.f32 %v2410_v3, %v2422_v14 }
 0xec5   : > { %v2426_v16 = vmul.f32 %v2424_v15, %v2424_v15 }
 0xec7   : > { %v2430_v19 = vsel %vm736_vm1, %v2426_v16, 0.0 }
 0xec8   : > { %2431 = vadd.xlane.f32.xlu0 %v2430_v19 }
 0xf21   : > { %v2429_v21 = vpop.xlane.xlu1 %2428 }
 0xf22   : > { %v2433_v58 = vmul.f32 %v2429_v21, %v3437_v13 }
 0xf24   : > { %v2435_v22 = vadd.f32 1e-05, %v2433_v58 }
 0xf26   : > { %2912 = vrsqrt.f32 %v2435_v22  ;;  %vm2443_vm13 = vweird.f32 %v2435_v22 }
 0xf2c   : > { %v2913_v18 = vpop.eup %2912 }
 0xf2d   : > { %v2438_v23 = vmul.f32 %v2913_v18, %v2435_v22  ;;  %vm2444_vm12 = vweird.f32 %v2913_v18 }
 0xf2e   : > { %vm2445_vm14 = vmor %vm2443_vm13, %vm2444_vm12 }
 0xf2f   : > { %v2439_v24 = vmul.f32 %v2913_v18, %v2438_v23 }
 0xf31   : > { %v2440_v25 = vmul.f32 0.5, %v2439_v24 }
 0xf33   : > { %v2441_v26 = vsub.f32 1.5, %v2440_v25 }
 0xf35   : > { %v2442_v28 = vmul.f32 %v2913_v18, %v2441_v26 }
 0xf37   : > { %v2446_v32 = vsel %vm2445_vm14, %v2913_v18, %v2442_v28 }
 0xf38   : > { %v2457_v33 = vmul.f32 %v2446_v32, %v2423_v6 }
 0xf3a   : > { %v2462_v34 = vmul.f32 %v2832_v30, %v2457_v33 }
 0xf3b   : > { %v2432_v8 = vpop.xlane.xlu0 %2431 }
 0xf3c   : > { %v2434_v35 = vmul.f32 %v2432_v8, %v3437_v13  ;;  %v2467_v11 = vadd.f32 %v2833_v2, %v2462_v34 }
 0xf3e   : > { %v2436_v10 = vadd.f32 1e-05, %v2434_v35  ;;  %2469 = vst.msk [vmem:[%s3248_s29] sm:$0xff] %vm736_vm1, %v2467_v11 }
 0xf40   : > { %2914 = vrsqrt.f32 %v2436_v10  ;;  %vm2453_vm0 = vweird.f32 %v2436_v10 }
 0xf46   : > { %v2915_v36 = vpop.eup %2914 }
 0xf47   : > { %v2448_v38 = vmul.f32 %v2915_v36, %v2436_v10  ;;  %vm2454_vm15 = vweird.f32 %v2915_v36 }
 0xf48   : > { %vm2455_vm2 = vmor %vm2453_vm0, %vm2454_vm15 }
 0xf49   : > { %v2449_v39 = vmul.f32 %v2915_v36, %v2448_v38 }
 0xf4b   : > { %v2450_v42 = vmul.f32 0.5, %v2449_v39 }
 0xf4d   : > { %v2451_v40 = vsub.f32 1.5, %v2450_v42 }
 0xf4f   : > { %v2452_v43 = vmul.f32 %v2915_v36, %v2451_v40 }
 0xf51   : > { %v2456_v13 = vsel %vm2455_vm2, %v2915_v36, %v2452_v43 }
 0xf52   : > { %v2458_v44 = vmul.f32 %v2456_v13, %v2424_v15 }
 0xf54   : > { %v2463_v45 = vmul.f32 %v2832_v30, %v2458_v44 }
 0xf56   : > { %v2468_v46 = vadd.f32 %v2833_v2, %v2463_v45 }
 0xf58   : > { %2470 = vst.msk [vmem:[%s3248_s29 + $0x8] sm:$0xff] %vm736_vm1, %v2468_v46 }
 0xf59   : > { %2974 = shalt.err (!%p2971_p5)
}
 0xf5a   : > { %s3024_s29 = smov 128  }
 0xf5b   : > { %2746 = dma.vmem_to_hbm [thread:$0]  (%p3160_p11), %s2485_s22, 256, %s2487_s26, %s2472_s21, %s3024_s29, %s3024_s29, %s3020_s4  }
 0xf5c PF: > { %s3820_s0 = sld [smem:[#allocation10_spill]] }
 0xf5d   : > { %s3822_s27 = sld [smem:[#allocation13_spill]] }
 0xf62   : > { %s2501_s7 = sand.u32 1, %s3820_s0  }
 0xf63   : > { %p3823_p8 = scmp.ge.s32.totalorder %s3822_s27, 2  ;;  %s2502_s24 = scalar_lea.sflag [#allocation6], %s2501_s7 }
 0xf65   : > { %p2753_p10 = pnand %p3823_p8, %p3164_p12 }
 0xf67   : > { %p2754_p2 = pneg %p2753_p10 }
 0xf69   : > { %2996 = dma.done.wait (%p2754_p2), %s2502_s24, 256  }
 0xf6a   : > { %2998 = vsyncadd (%p2754_p2), %s2502_s24, 4294967040  ;;  %s3824_s24 = sld [smem:[#allocation14_spill]] }
 0xf6b   : > { %s3825_s21 = sld [smem:[#allocation11_spill]] }
 0xf6c   : > { %s3826_s22 = sld [smem:[#allocation12_spill]] }
 0xf6d   : > { %s3827_s23 = sld [smem:[#allocation15_spill]] }
 0xf70   : > { %p29_p9 = scmp.ge.s32.totalorder %s3824_s24, 4  }
 0xf72   :  { %31 = sbr.rel (!%p29_p9) target bundleno = 14 (0xe), region = 154 }
 0xf77   :  { %2508 = vsyncpa [#allocation5], 1 }
 0xf78   :  { %2510 = vsyncpa [#allocation5 + $0x1], 1 }
 0xf79   :  { %2511 = vsyncpa [#allocation6], 1 }
 0xf7a   :  { %2513 = vsyncpa [#allocation6 + $0x1], 1 }

</bundles_post_ra>
